<compile_context>
chip_gen: v7x
topology: tpu7x:2x2x1
jax: 0.10.0
libtpu: 0.0.40
codegen_flags: <defaults>
</compile_context>

<pallas_src>
import functools

import jax
import jax.numpy as jnp
from jax.experimental import pallas as pl
from jax.experimental.pallas import tpu as pltpu


def _round_up(n, m):
    return ((n + m - 1) // m) * m


def _pick_tile_b(batch):
    # 256 rows fills the 2x256x256 MXU on v6e/v7x; keep >= 2 grid tiles so the
    # "parallel" batch axis can shard across both v7x TensorCores.  128 rows
    # already fills the 4x128x128 MXU on v5e.
    if batch >= 512:
        return 256
    return 128


# ----------------------------- Pallas kernel ------------------------------ #

def _linear(x_bf16, w_ref, b_ref, *, relu, out_bf16):
    """bf16 x bf16 matmul with f32 accumulation; bias/ReLU/downcast fused."""
    y = jnp.dot(x_bf16, w_ref[...], preferred_element_type=jnp.float32)
    y = y + b_ref[...]
    if relu:
        y = jnp.maximum(y, 0.0)
    if out_bf16:
        y = y.astype(jnp.bfloat16)
    return y


def _softplus(pre):
    # PyTorch-style softplus with threshold 20 for numerical stability.
    return jnp.where(pre > 20.0, pre,
                     jnp.log1p(jnp.exp(jnp.minimum(pre, 20.0))))


def _ave_kernel(x_ref, eps_ref,
                ew1, eb1, ew2, eb2, ew3, eb3, ew4, eb4,
                dw1, db1, dw2, db2, dw3, db3, dw4, db4,
                out_ref,
                *, dim_z, n_output, y_slot, z_slot):
    # -------- Encoder: num_input -> 512 -> 512 -> 128 -> 2*dim_z --------
    h = x_ref[...].astype(jnp.bfloat16)
    h = _linear(h, ew1, eb1, relu=True, out_bf16=True)
    h = _linear(h, ew2, eb2, relu=True, out_bf16=True)
    h = _linear(h, ew3, eb3, relu=True, out_bf16=True)
    ms = _linear(h, ew4, eb4, relu=False, out_bf16=False)   # f32 (tile, 2*dim_z)

    mu = ms[:, :dim_z]
    sigma = 1e-6 + _softplus(ms[:, dim_z:])

    # -------- Reparameterization: z = mu + sigma * eps (f32) --------
    z = mu + sigma * eps_ref[...]

    # -------- Decoder: dim_z -> 128 -> 512 -> 512 -> n_output --------
    h = _linear(z.astype(jnp.bfloat16), dw1, db1, relu=True, out_bf16=True)
    h = _linear(h, dw2, db2, relu=True, out_bf16=True)
    h = _linear(h, dw3, db3, relu=True, out_bf16=True)
    y = _linear(h, dw4, db4, relu=False, out_bf16=False)     # f32 (tile, n_output)

    # 128-lane-aligned output slots: [ y | mu | sigma | z ] (unused lanes junk).
    out_ref[:, 0:n_output] = y
    out_ref[:, y_slot:y_slot + dim_z] = mu
    out_ref[:, y_slot + z_slot:y_slot + z_slot + dim_z] = sigma
    out_ref[:, y_slot + 2 * z_slot:y_slot + 2 * z_slot + dim_z] = z


# ------------------------------ JAX wrapper -------------------------------- #

def ave_forward(x, eps, params, *, dim_z, n_output):
    """params: flat list [ew1, eb1, ..., ew4, eb4, dw1, db1, ..., dw4, db4] (f32)."""
    batch, num_input = x.shape

    # bf16 weight storage (biases stay f32); fed straight to bf16 MXU matmuls.
    kernel_params = tuple(
        p.astype(jnp.bfloat16) if i % 2 == 0 else p for i, p in enumerate(params))

    tile_b = _pick_tile_b(batch)
    pad = (-batch) % tile_b
    if pad:
        x = jnp.pad(x, ((0, pad), (0, 0)))
        eps = jnp.pad(eps, ((0, pad), (0, 0)))
    padded = batch + pad
    grid = (padded // tile_b,)

    # 128-lane-aligned output layout.
    y_slot = _round_up(n_output, 128)
    z_slot = _round_up(dim_z, 128)
    out_width = y_slot + 3 * z_slot

    x_spec = pl.BlockSpec((tile_b, num_input), lambda i: (i, 0))
    eps_spec = pl.BlockSpec((tile_b, dim_z), lambda i: (i, 0))
    # Weights/biases: full-array blocks, constant index_map -> DMA'd once and
    # VMEM-resident across all batch tiles.
    param_specs = [pl.BlockSpec(p.shape, lambda i: (0, 0)) for p in kernel_params]
    out_spec = pl.BlockSpec((tile_b, out_width), lambda i: (i, 0))

    kernel = functools.partial(_ave_kernel, dim_z=dim_z, n_output=n_output,
                               y_slot=y_slot, z_slot=z_slot)

    # Advisory cost estimate for XLA's scheduler.
    layer_dims = [(num_input, 512), (512, 512), (512, 128), (128, 2 * dim_z),
                  (dim_z, 128), (128, 512), (512, 512), (512, n_output)]
    flops = 2 * padded * sum(k * n for k, n in layer_dims)
    param_bytes = sum(int(p.size) * p.dtype.itemsize for p in kernel_params)
    bytes_accessed = (param_bytes + int(x.size) * 4 + int(eps.size) * 4
                      + padded * out_width * 4)
    cost = pl.CostEstimate(flops=flops,
                           transcendentals=padded * dim_z,
                           bytes_accessed=bytes_accessed)

    out = pl.pallas_call(
        kernel,
        out_shape=jax.ShapeDtypeStruct((padded, out_width), jnp.float32),
        grid_spec=pltpu.PrefetchScalarGridSpec(
            num_scalar_prefetch=0,
            grid=grid,
            in_specs=[x_spec, eps_spec] + param_specs,
            out_specs=out_spec,
        ),
        compiler_params=pltpu.CompilerParams(
            dimension_semantics=("parallel",),        # megacore over batch tiles
            vmem_limit_bytes=32 * 1024 * 1024,
        ),
        cost_estimate=cost,
    )(x, eps, *kernel_params)

    y = out[:batch, :n_output]
    mu = out[:batch, y_slot:y_slot + dim_z]
    sigma = out[:batch, y_slot + z_slot:y_slot + z_slot + dim_z]
    z = out[:batch, y_slot + 2 * z_slot:y_slot + 2 * z_slot + dim_z]
    return y, mu, sigma, z


# --------------------------- Parameter creation ----------------------------- #

def _init_linear(key, fan_in, fan_out):
    """Deterministic init mimicking nn.Linear: U(-1/sqrt(fan_in), +1/sqrt(fan_in))."""
    kw, kb = jax.random.split(key)
    bound = 1.0 / jnp.sqrt(float(fan_in))
    w = jax.random.uniform(kw, (fan_in, fan_out), jnp.float32, -bound, bound)
    b = jax.random.uniform(kb, (1, fan_out), jnp.float32, -bound, bound)
    return w, b


def make_params(key, num_input, n_output, dim_z):
    enc_dims = [(num_input, 512), (512, 512), (512, 128), (128, 2 * dim_z)]
    dec_dims = [(dim_z, 128), (128, 512), (512, 512), (512, n_output)]
    params = []
    keys = jax.random.split(key, len(enc_dims) + len(dec_dims))
    for k, (fi, fo) in zip(keys, enc_dims + dec_dims):
        w, b = _init_linear(k, fi, fo)
        params.extend([w, b])
    return params


# ------------------------------ Reference ---------------------------------- #

def ave_ref(x, eps, params, *, dim_z):
    # Mirrors the kernel's dtypes exactly: bf16 weights, bf16 inter-layer
    # activations, f32 MXU accumulation -> differences are accumulation order.
    wb = [p.astype(jnp.bfloat16) if i % 2 == 0 else p for i, p in enumerate(params)]

    def lin(h, w, b, relu, out_bf16):
        y = jnp.dot(h, w, preferred_element_type=jnp.float32) + b
        if relu:
            y = jnp.maximum(y, 0.0)
        return y.astype(jnp.bfloat16) if out_bf16 else y

    h = x.astype(jnp.bfloat16)
    for i in range(3):
        h = lin(h, wb[2 * i], wb[2 * i + 1], True, True)
    ms = lin(h, wb[6], wb[7], False, False)
    mu = ms[:, :dim_z]
    sigma = 1e-6 + _softplus(ms[:, dim_z:])
    z = mu + sigma * eps
    h = z.astype(jnp.bfloat16)
    for i in range(4, 7):
        h = lin(h, wb[2 * i], wb[2 * i + 1], True, True)
    y = lin(h, wb[14], wb[15], False, False)
    return y, mu, sigma, z


# --------------------------------- Main ------------------------------------ #

if __name__ == "__main__":
    num_input, n_output, dim_z = 64, 64, 32
    batch = 256  # 2 tiles of 128 rows -> both v7x TensorCores engaged

    root = jax.random.PRNGKey(0)
    k_param, k_x, k_eps = jax.random.split(root, 3)

    params = make_params(k_param, num_input, n_output, dim_z)
    x = jax.random.normal(k_x, (batch, num_input), jnp.float32)
    # torch.randn_like(mu) equivalent, sampled in the wrapper and fed to the
    # kernel so the reparameterization itself happens in-kernel.
    eps = jax.random.normal(k_eps, (batch, dim_z), jnp.float32)

    y, mu, sigma, z = ave_forward(x, eps, params, dim_z=dim_z, n_output=n_output)
    jax.block_until_ready((y, mu, sigma, z))

    # Sanity check against a pure-JAX reference using the same bf16 data path;
    # tolerances account for bf16 inter-layer activations / accumulation order.
    y_r, mu_r, sigma_r, z_r = ave_ref(x, eps, params, dim_z=dim_z)
    assert jnp.allclose(y, y_r, atol=1e-2, rtol=1e-2)
    assert jnp.allclose(mu, mu_r, atol=1e-2, rtol=1e-2)
    assert jnp.allclose(sigma, sigma_r, atol=1e-2, rtol=1e-2)
    assert jnp.allclose(z, z_r, atol=1e-2, rtol=1e-2)

    print("KERNEL_OK")
</pallas_src>

<mosaic_0001>
module attributes {stable_mosaic.version = 11 : i64} {
  func.func @_ave_kernel(%arg0: i32, %arg1: memref<128x64xf32, #tpu.memory_space<vmem>>, %arg2: memref<128x32xf32, #tpu.memory_space<vmem>>, %arg3: memref<64x512xbf16, #tpu.memory_space<vmem>>, %arg4: memref<1x512xf32, #tpu.memory_space<vmem>>, %arg5: memref<512x512xbf16, #tpu.memory_space<vmem>>, %arg6: memref<1x512xf32, #tpu.memory_space<vmem>>, %arg7: memref<512x128xbf16, #tpu.memory_space<vmem>>, %arg8: memref<1x128xf32, #tpu.memory_space<vmem>>, %arg9: memref<128x64xbf16, #tpu.memory_space<vmem>>, %arg10: memref<1x64xf32, #tpu.memory_space<vmem>>, %arg11: memref<32x128xbf16, #tpu.memory_space<vmem>>, %arg12: memref<1x128xf32, #tpu.memory_space<vmem>>, %arg13: memref<128x512xbf16, #tpu.memory_space<vmem>>, %arg14: memref<1x512xf32, #tpu.memory_space<vmem>>, %arg15: memref<512x512xbf16, #tpu.memory_space<vmem>>, %arg16: memref<1x512xf32, #tpu.memory_space<vmem>>, %arg17: memref<512x64xbf16, #tpu.memory_space<vmem>>, %arg18: memref<1x64xf32, #tpu.memory_space<vmem>>, %arg19: memref<128x512xf32, #tpu.memory_space<vmem>>) attributes {dimension_semantics = [#tpu.dimension_semantics<parallel>], iteration_bounds = array<i64: 2>, scalar_prefetch = 0 : i64, scratch_operands = 0 : i64, tpu.core_type = #tpu.core_type<tc>, window_params = [{transform_indices = @transform_0, window_bounds = array<i64: 128, 64>}, {transform_indices = @transform_1, window_bounds = array<i64: 128, 32>}, {pipeline_mode = #tpu.pipeline_mode<synchronous>, transform_indices = @transform_2, window_bounds = array<i64: 64, 512>}, {pipeline_mode = #tpu.pipeline_mode<synchronous>, transform_indices = @transform_3, window_bounds = array<i64: 1, 512>}, {pipeline_mode = #tpu.pipeline_mode<synchronous>, transform_indices = @transform_4, window_bounds = array<i64: 512, 512>}, {pipeline_mode = #tpu.pipeline_mode<synchronous>, transform_indices = @transform_5, window_bounds = array<i64: 1, 512>}, {pipeline_mode = #tpu.pipeline_mode<synchronous>, transform_indices = @transform_6, window_bounds = array<i64: 512, 128>}, {pipeline_mode = #tpu.pipeline_mode<synchronous>, transform_indices = @transform_7, window_bounds = array<i64: 1, 128>}, {pipeline_mode = #tpu.pipeline_mode<synchronous>, transform_indices = @transform_8, window_bounds = array<i64: 128, 64>}, {pipeline_mode = #tpu.pipeline_mode<synchronous>, transform_indices = @transform_9, window_bounds = array<i64: 1, 64>}, {pipeline_mode = #tpu.pipeline_mode<synchronous>, transform_indices = @transform_10, window_bounds = array<i64: 32, 128>}, {pipeline_mode = #tpu.pipeline_mode<synchronous>, transform_indices = @transform_11, window_bounds = array<i64: 1, 128>}, {pipeline_mode = #tpu.pipeline_mode<synchronous>, transform_indices = @transform_12, window_bounds = array<i64: 128, 512>}, {pipeline_mode = #tpu.pipeline_mode<synchronous>, transform_indices = @transform_13, window_bounds = array<i64: 1, 512>}, {pipeline_mode = #tpu.pipeline_mode<synchronous>, transform_indices = @transform_14, window_bounds = array<i64: 512, 512>}, {pipeline_mode = #tpu.pipeline_mode<synchronous>, transform_indices = @transform_15, window_bounds = array<i64: 1, 512>}, {pipeline_mode = #tpu.pipeline_mode<synchronous>, transform_indices = @transform_16, window_bounds = array<i64: 512, 64>}, {pipeline_mode = #tpu.pipeline_mode<synchronous>, transform_indices = @transform_17, window_bounds = array<i64: 1, 64>}, {transform_indices = @transform_18, window_bounds = array<i64: 128, 512>}]} {
    %c0 = arith.constant 0 : index
    %c0_0 = arith.constant 0 : index
    %0 = vector.load %arg1[%c0, %c0_0] : memref<128x64xf32, #tpu.memory_space<vmem>>, vector<128x64xf32>
    %1 = arith.truncf %0 : vector<128x64xf32> to vector<128x64xbf16>
    %c0_1 = arith.constant 0 : index
    %c0_2 = arith.constant 0 : index
    %2 = vector.load %arg3[%c0_1, %c0_2] : memref<64x512xbf16, #tpu.memory_space<vmem>>, vector<64x512xbf16>
    %cst = arith.constant dense<0.000000e+00> : vector<128x512xf32>
    %3 = tpu.matmul %1, %2, %cst {dimension_numbers = #tpu.dot_dimension_numbers<[1], [0], [0], [1], [0, 0, 1, 1], [], []>} : vector<128x64xbf16>, vector<64x512xbf16>, vector<128x512xf32> -> vector<128x512xf32>
    %c0_3 = arith.constant 0 : index
    %c0_4 = arith.constant 0 : index
    %4 = vector.load %arg4[%c0_3, %c0_4] : memref<1x512xf32, #tpu.memory_space<vmem>>, vector<1x512xf32>
    %5 = vector.broadcast %4 : vector<1x512xf32> to vector<128x512xf32>
    %6 = arith.addf %3, %5 : vector<128x512xf32>
    %cst_5 = arith.constant 0.000000e+00 : f32
    %7 = vector.broadcast %cst_5 : f32 to vector<128x512xf32>
    %8 = arith.maximumf %6, %7 : vector<128x512xf32>
    %9 = arith.truncf %8 : vector<128x512xf32> to vector<128x512xbf16>
    %c0_6 = arith.constant 0 : index
    %c0_7 = arith.constant 0 : index
    %10 = vector.load %arg5[%c0_6, %c0_7] : memref<512x512xbf16, #tpu.memory_space<vmem>>, vector<512x512xbf16>
    %cst_8 = arith.constant dense<0.000000e+00> : vector<128x512xf32>
    %11 = tpu.matmul %9, %10, %cst_8 {dimension_numbers = #tpu.dot_dimension_numbers<[1], [0], [0], [1], [0, 0, 1, 1], [], []>} : vector<128x512xbf16>, vector<512x512xbf16>, vector<128x512xf32> -> vector<128x512xf32>
    %c0_9 = arith.constant 0 : index
    %c0_10 = arith.constant 0 : index
    %12 = vector.load %arg6[%c0_9, %c0_10] : memref<1x512xf32, #tpu.memory_space<vmem>>, vector<1x512xf32>
    %13 = vector.broadcast %12 : vector<1x512xf32> to vector<128x512xf32>
    %14 = arith.addf %11, %13 : vector<128x512xf32>
    %cst_11 = arith.constant 0.000000e+00 : f32
    %15 = vector.broadcast %cst_11 : f32 to vector<128x512xf32>
    %16 = arith.maximumf %14, %15 : vector<128x512xf32>
    %17 = arith.truncf %16 : vector<128x512xf32> to vector<128x512xbf16>
    %c0_12 = arith.constant 0 : index
    %c0_13 = arith.constant 0 : index
    %18 = vector.load %arg7[%c0_12, %c0_13] : memref<512x128xbf16, #tpu.memory_space<vmem>>, vector<512x128xbf16>
    %cst_14 = arith.constant dense<0.000000e+00> : vector<128x128xf32>
    %19 = tpu.matmul %17, %18, %cst_14 {dimension_numbers = #tpu.dot_dimension_numbers<[1], [0], [0], [1], [0, 0, 1, 1], [], []>} : vector<128x512xbf16>, vector<512x128xbf16>, vector<128x128xf32> -> vector<128x128xf32>
    %c0_15 = arith.constant 0 : index
    %c0_16 = arith.constant 0 : index
    %20 = vector.load %arg8[%c0_15, %c0_16] : memref<1x128xf32, #tpu.memory_space<vmem>>, vector<1x128xf32>
    %21 = vector.broadcast %20 : vector<1x128xf32> to vector<128x128xf32>
    %22 = arith.addf %19, %21 : vector<128x128xf32>
    %cst_17 = arith.constant 0.000000e+00 : f32
    %23 = vector.broadcast %cst_17 : f32 to vector<128x128xf32>
    %24 = arith.maximumf %22, %23 : vector<128x128xf32>
    %25 = arith.truncf %24 : vector<128x128xf32> to vector<128x128xbf16>
    %c0_18 = arith.constant 0 : index
    %c0_19 = arith.constant 0 : index
    %26 = vector.load %arg9[%c0_18, %c0_19] : memref<128x64xbf16, #tpu.memory_space<vmem>>, vector<128x64xbf16>
    %cst_20 = arith.constant dense<0.000000e+00> : vector<128x64xf32>
    %27 = tpu.matmul %25, %26, %cst_20 {dimension_numbers = #tpu.dot_dimension_numbers<[1], [0], [0], [1], [0, 0, 1, 1], [], []>} : vector<128x128xbf16>, vector<128x64xbf16>, vector<128x64xf32> -> vector<128x64xf32>
    %c0_21 = arith.constant 0 : index
    %c0_22 = arith.constant 0 : index
    %28 = vector.load %arg10[%c0_21, %c0_22] : memref<1x64xf32, #tpu.memory_space<vmem>>, vector<1x64xf32>
    %29 = vector.broadcast %28 : vector<1x64xf32> to vector<128x64xf32>
    %30 = arith.addf %27, %29 : vector<128x64xf32>
    %31 = vector.extract_strided_slice %30 {offsets = [0, 0], sizes = [128, 32], strides = [1, 1]} : vector<128x64xf32> to vector<128x32xf32>
    %32 = vector.extract_strided_slice %30 {offsets = [0, 32], sizes = [128, 32], strides = [1, 1]} : vector<128x64xf32> to vector<128x32xf32>
    %cst_23 = arith.constant 2.000000e+01 : f32
    %33 = vector.broadcast %cst_23 : f32 to vector<128x32xf32>
    %34 = arith.cmpf ogt, %32, %33 : vector<128x32xf32>
    %cst_24 = arith.constant 2.000000e+01 : f32
    %35 = vector.broadcast %cst_24 : f32 to vector<128x32xf32>
    %36 = arith.minimumf %32, %35 : vector<128x32xf32>
    %37 = math.exp %36 : vector<128x32xf32>
    %38 = math.log1p %37 : vector<128x32xf32>
    %39 = arith.select %34, %32, %38 : vector<128x32xi1>, vector<128x32xf32>
    %cst_25 = arith.constant 9.99999997E-7 : f32
    %40 = vector.broadcast %cst_25 : f32 to vector<128x32xf32>
    %41 = arith.addf %40, %39 : vector<128x32xf32>
    %c0_26 = arith.constant 0 : index
    %c0_27 = arith.constant 0 : index
    %42 = vector.load %arg2[%c0_26, %c0_27] : memref<128x32xf32, #tpu.memory_space<vmem>>, vector<128x32xf32>
    %43 = arith.mulf %41, %42 : vector<128x32xf32>
    %44 = arith.addf %31, %43 : vector<128x32xf32>
    %45 = arith.truncf %44 : vector<128x32xf32> to vector<128x32xbf16>
    %c0_28 = arith.constant 0 : index
    %c0_29 = arith.constant 0 : index
    %46 = vector.load %arg11[%c0_28, %c0_29] : memref<32x128xbf16, #tpu.memory_space<vmem>>, vector<32x128xbf16>
    %cst_30 = arith.constant dense<0.000000e+00> : vector<128x128xf32>
    %47 = tpu.matmul %45, %46, %cst_30 {dimension_numbers = #tpu.dot_dimension_numbers<[1], [0], [0], [1], [0, 0, 1, 1], [], []>} : vector<128x32xbf16>, vector<32x128xbf16>, vector<128x128xf32> -> vector<128x128xf32>
    %c0_31 = arith.constant 0 : index
    %c0_32 = arith.constant 0 : index
    %48 = vector.load %arg12[%c0_31, %c0_32] : memref<1x128xf32, #tpu.memory_space<vmem>>, vector<1x128xf32>
    %49 = vector.broadcast %48 : vector<1x128xf32> to vector<128x128xf32>
    %50 = arith.addf %47, %49 : vector<128x128xf32>
    %cst_33 = arith.constant 0.000000e+00 : f32
    %51 = vector.broadcast %cst_33 : f32 to vector<128x128xf32>
    %52 = arith.maximumf %50, %51 : vector<128x128xf32>
    %53 = arith.truncf %52 : vector<128x128xf32> to vector<128x128xbf16>
    %c0_34 = arith.constant 0 : index
    %c0_35 = arith.constant 0 : index
    %54 = vector.load %arg13[%c0_34, %c0_35] : memref<128x512xbf16, #tpu.memory_space<vmem>>, vector<128x512xbf16>
    %cst_36 = arith.constant dense<0.000000e+00> : vector<128x512xf32>
    %55 = tpu.matmul %53, %54, %cst_36 {dimension_numbers = #tpu.dot_dimension_numbers<[1], [0], [0], [1], [0, 0, 1, 1], [], []>} : vector<128x128xbf16>, vector<128x512xbf16>, vector<128x512xf32> -> vector<128x512xf32>
    %c0_37 = arith.constant 0 : index
    %c0_38 = arith.constant 0 : index
    %56 = vector.load %arg14[%c0_37, %c0_38] : memref<1x512xf32, #tpu.memory_space<vmem>>, vector<1x512xf32>
    %57 = vector.broadcast %56 : vector<1x512xf32> to vector<128x512xf32>
    %58 = arith.addf %55, %57 : vector<128x512xf32>
    %cst_39 = arith.constant 0.000000e+00 : f32
    %59 = vector.broadcast %cst_39 : f32 to vector<128x512xf32>
    %60 = arith.maximumf %58, %59 : vector<128x512xf32>
    %61 = arith.truncf %60 : vector<128x512xf32> to vector<128x512xbf16>
    %c0_40 = arith.constant 0 : index
    %c0_41 = arith.constant 0 : index
    %62 = vector.load %arg15[%c0_40, %c0_41] : memref<512x512xbf16, #tpu.memory_space<vmem>>, vector<512x512xbf16>
    %cst_42 = arith.constant dense<0.000000e+00> : vector<128x512xf32>
    %63 = tpu.matmul %61, %62, %cst_42 {dimension_numbers = #tpu.dot_dimension_numbers<[1], [0], [0], [1], [0, 0, 1, 1], [], []>} : vector<128x512xbf16>, vector<512x512xbf16>, vector<128x512xf32> -> vector<128x512xf32>
    %c0_43 = arith.constant 0 : index
    %c0_44 = arith.constant 0 : index
    %64 = vector.load %arg16[%c0_43, %c0_44] : memref<1x512xf32, #tpu.memory_space<vmem>>, vector<1x512xf32>
    %65 = vector.broadcast %64 : vector<1x512xf32> to vector<128x512xf32>
    %66 = arith.addf %63, %65 : vector<128x512xf32>
    %cst_45 = arith.constant 0.000000e+00 : f32
    %67 = vector.broadcast %cst_45 : f32 to vector<128x512xf32>
    %68 = arith.maximumf %66, %67 : vector<128x512xf32>
    %69 = arith.truncf %68 : vector<128x512xf32> to vector<128x512xbf16>
    %c0_46 = arith.constant 0 : index
    %c0_47 = arith.constant 0 : index
    %70 = vector.load %arg17[%c0_46, %c0_47] : memref<512x64xbf16, #tpu.memory_space<vmem>>, vector<512x64xbf16>
    %cst_48 = arith.constant dense<0.000000e+00> : vector<128x64xf32>
    %71 = tpu.matmul %69, %70, %cst_48 {dimension_numbers = #tpu.dot_dimension_numbers<[1], [0], [0], [1], [0, 0, 1, 1], [], []>} : vector<128x512xbf16>, vector<512x64xbf16>, vector<128x64xf32> -> vector<128x64xf32>
    %c0_49 = arith.constant 0 : index
    %c0_50 = arith.constant 0 : index
    %72 = vector.load %arg18[%c0_49, %c0_50] : memref<1x64xf32, #tpu.memory_space<vmem>>, vector<1x64xf32>
    %73 = vector.broadcast %72 : vector<1x64xf32> to vector<128x64xf32>
    %74 = arith.addf %71, %73 : vector<128x64xf32>
    %c0_51 = arith.constant 0 : index
    %c0_52 = arith.constant 0 : index
    %75 = vector.load %arg19[%c0_51, %c0_52] : memref<128x512xf32, #tpu.memory_space<vmem>>, vector<128x64xf32>
    tpu.vector_store %arg19[%c0_51, %c0_52], %74 {strides = array<i32>} : memref<128x512xf32, #tpu.memory_space<vmem>>, vector<128x64xf32>,
    %c0_53 = arith.constant 0 : index
    %c128 = arith.constant 128 : index
    %76 = vector.load %arg19[%c0_53, %c128] : memref<128x512xf32, #tpu.memory_space<vmem>>, vector<128x32xf32>
    tpu.vector_store %arg19[%c0_53, %c128], %31 {strides = array<i32>} : memref<128x512xf32, #tpu.memory_space<vmem>>, vector<128x32xf32>,
    %c0_54 = arith.constant 0 : index
    %c256 = arith.constant 256 : index
    %77 = vector.load %arg19[%c0_54, %c256] : memref<128x512xf32, #tpu.memory_space<vmem>>, vector<128x32xf32>
    tpu.vector_store %arg19[%c0_54, %c256], %41 {strides = array<i32>} : memref<128x512xf32, #tpu.memory_space<vmem>>, vector<128x32xf32>,
    %c0_55 = arith.constant 0 : index
    %c384 = arith.constant 384 : index
    %78 = vector.load %arg19[%c0_55, %c384] : memref<128x512xf32, #tpu.memory_space<vmem>>, vector<128x32xf32>
    tpu.vector_store %arg19[%c0_55, %c384], %44 {strides = array<i32>} : memref<128x512xf32, #tpu.memory_space<vmem>>, vector<128x32xf32>,
    return
  }
  func.func @transform_0(%arg0: i32) -> (i32, i32) {
    %c0_i32 = arith.constant 0 : i32
    %c0_i32_0 = arith.constant 0 : i32
    return %arg0, %c0_i32 : i32, i32
  }
  func.func @transform_1(%arg0: i32) -> (i32, i32) {
    %c0_i32 = arith.constant 0 : i32
    %c0_i32_0 = arith.constant 0 : i32
    return %arg0, %c0_i32 : i32, i32
  }
  func.func @transform_2(%arg0: i32) -> (i32, i32) {
    %c0_i32 = arith.constant 0 : i32
    %c0_i32_0 = arith.constant 0 : i32
    %c0_i32_1 = arith.constant 0 : i32
    return %c0_i32, %c0_i32_0 : i32, i32
  }
  func.func @transform_3(%arg0: i32) -> (i32, i32) {
    %c0_i32 = arith.constant 0 : i32
    %c0_i32_0 = arith.constant 0 : i32
    %c0_i32_1 = arith.constant 0 : i32
    return %c0_i32, %c0_i32_0 : i32, i32
  }
  func.func @transform_4(%arg0: i32) -> (i32, i32) {
    %c0_i32 = arith.constant 0 : i32
    %c0_i32_0 = arith.constant 0 : i32
    %c0_i32_1 = arith.constant 0 : i32
    return %c0_i32, %c0_i32_0 : i32, i32
  }
  func.func @transform_5(%arg0: i32) -> (i32, i32) {
    %c0_i32 = arith.constant 0 : i32
    %c0_i32_0 = arith.constant 0 : i32
    %c0_i32_1 = arith.constant 0 : i32
    return %c0_i32, %c0_i32_0 : i32, i32
  }
  func.func @transform_6(%arg0: i32) -> (i32, i32) {
    %c0_i32 = arith.constant 0 : i32
    %c0_i32_0 = arith.constant 0 : i32
    %c0_i32_1 = arith.constant 0 : i32
    return %c0_i32, %c0_i32_0 : i32, i32
  }
  func.func @transform_7(%arg0: i32) -> (i32, i32) {
    %c0_i32 = arith.constant 0 : i32
    %c0_i32_0 = arith.constant 0 : i32
    %c0_i32_1 = arith.constant 0 : i32
    return %c0_i32, %c0_i32_0 : i32, i32
  }
  func.func @transform_8(%arg0: i32) -> (i32, i32) {
    %c0_i32 = arith.constant 0 : i32
    %c0_i32_0 = arith.constant 0 : i32
    %c0_i32_1 = arith.constant 0 : i32
    return %c0_i32, %c0_i32_0 : i32, i32
  }
  func.func @transform_9(%arg0: i32) -> (i32, i32) {
    %c0_i32 = arith.constant 0 : i32
    %c0_i32_0 = arith.constant 0 : i32
    %c0_i32_1 = arith.constant 0 : i32
    return %c0_i32, %c0_i32_0 : i32, i32
  }
  func.func @transform_10(%arg0: i32) -> (i32, i32) {
    %c0_i32 = arith.constant 0 : i32
    %c0_i32_0 = arith.constant 0 : i32
    %c0_i32_1 = arith.constant 0 : i32
    return %c0_i32, %c0_i32_0 : i32, i32
  }
  func.func @transform_11(%arg0: i32) -> (i32, i32) {
    %c0_i32 = arith.constant 0 : i32
    %c0_i32_0 = arith.constant 0 : i32
    %c0_i32_1 = arith.constant 0 : i32
    return %c0_i32, %c0_i32_0 : i32, i32
  }
  func.func @transform_12(%arg0: i32) -> (i32, i32) {
    %c0_i32 = arith.constant 0 : i32
    %c0_i32_0 = arith.constant 0 : i32
    %c0_i32_1 = arith.constant 0 : i32
    return %c0_i32, %c0_i32_0 : i32, i32
  }
  func.func @transform_13(%arg0: i32) -> (i32, i32) {
    %c0_i32 = arith.constant 0 : i32
    %c0_i32_0 = arith.constant 0 : i32
    %c0_i32_1 = arith.constant 0 : i32
    return %c0_i32, %c0_i32_0 : i32, i32
  }
  func.func @transform_14(%arg0: i32) -> (i32, i32) {
    %c0_i32 = arith.constant 0 : i32
    %c0_i32_0 = arith.constant 0 : i32
    %c0_i32_1 = arith.constant 0 : i32
    return %c0_i32, %c0_i32_0 : i32, i32
  }
  func.func @transform_15(%arg0: i32) -> (i32, i32) {
    %c0_i32 = arith.constant 0 : i32
    %c0_i32_0 = arith.constant 0 : i32
    %c0_i32_1 = arith.constant 0 : i32
    return %c0_i32, %c0_i32_0 : i32, i32
  }
  func.func @transform_16(%arg0: i32) -> (i32, i32) {
    %c0_i32 = arith.constant 0 : i32
    %c0_i32_0 = arith.constant 0 : i32
    %c0_i32_1 = arith.constant 0 : i32
    return %c0_i32, %c0_i32_0 : i32, i32
  }
  func.func @transform_17(%arg0: i32) -> (i32, i32) {
    %c0_i32 = arith.constant 0 : i32
    %c0_i32_0 = arith.constant 0 : i32
    %c0_i32_1 = arith.constant 0 : i32
    return %c0_i32, %c0_i32_0 : i32, i32
  }
  func.func @transform_18(%arg0: i32) -> (i32, i32) {
    %c0_i32 = arith.constant 0 : i32
    %c0_i32_0 = arith.constant 0 : i32
    return %arg0, %c0_i32 : i32, i32
  }
}

</mosaic_0001>

<bundles_post_ra>
// kernel: tpu_custom_call.1
= control target key start
LH: loop header
LB: loop body
LE: loop exit
PB: predicated region body
PF: predicated region fallthrough
CT: control target
= control target key end

     0   :  { %s10154_s0 = inlined_call_operand.vmem [shape: f32[256,64], index: 0, kind: input, shape index: {}]   ;;  %s10155_s1 = inlined_call_operand.vmem [shape: f32[256,32], index: 1, kind: input, shape index: {}]   ;;  %s10156_s2 = inlined_call_operand.hbm [shape: bf16[64,512], index: 2, kind: input, shape index: {}]   ;;  %s10157_s3 = inlined_call_operand.vmem [shape: f32[1,512], index: 3, kind: input, shape index: {}]   ;;  %s10158_s4 = inlined_call_operand.vmem [shape: bf16[512,512], index: 4, kind: input, shape index: {}]   ;;  %s10159_s5 = inlined_call_operand.vmem [shape: f32[1,512], index: 5, kind: input, shape index: {}]   ;;  %s10160_s6 = inlined_call_operand.hbm [shape: bf16[512,128], index: 6, kind: input, shape index: {}]   ;;  %s10161_s7 = inlined_call_operand.vmem [shape: f32[1,128], index: 7, kind: input, shape index: {}]   ;;  %s10162_s8 = inlined_call_operand.vmem [shape: bf16[128,64], index: 8, kind: input, shape index: {}]   ;;  %s10163_s9 = inlined_call_operand.vmem [shape: f32[1,64], index: 9, kind: input, shape index: {}]   ;;  %s10164_s10 = inlined_call_operand.vmem [shape: bf16[32,128], index: 10, kind: input, shape index: {}]   ;;  %s10165_s11 = inlined_call_operand.vmem [shape: f32[1,128], index: 11, kind: input, shape index: {}]   ;;  %s10166_s12 = inlined_call_operand.hbm [shape: bf16[128,512], index: 12, kind: input, shape index: {}]   ;;  %s10167_s13 = inlined_call_operand.vmem [shape: f32[1,512], index: 13, kind: input, shape index: {}]   ;;  %s10168_s14 = inlined_call_operand.hbm [shape: bf16[512,512], index: 14, kind: input, shape index: {}]   ;;  %s10169_s15 = inlined_call_operand.vmem [shape: f32[1,512], index: 15, kind: input, shape index: {}]   ;;  %s10170_s16 = inlined_call_operand.vmem [shape: bf16[512,64], index: 16, kind: input, shape index: {}]   ;;  %s10171_s17 = inlined_call_operand.vmem [shape: f32[1,64], index: 17, kind: input, shape index: {}]   ;;  %s10172_s18 = inlined_call_operand.hbm [shape: f32[256,512], index: 18, kind: output, shape index: {}]  }
   0x1   :  { %10187 = sst [smem:[#allocation22_spill]] %s10154_s0 }
   0x2   :  { %10188 = sst [smem:[#allocation23_spill]] %s10155_s1 }
   0x3   :  { %10189 = sst [smem:[#allocation24_spill]] %s10156_s2 }
   0x4   :  { %10190 = sst [smem:[#allocation25_spill]] %s10160_s6 }
   0x5   :  { %10191 = sst [smem:[#allocation26_spill]] %s10169_s15 }
   0x6   :  { %10192 = sst [smem:[#allocation27_spill]] %s10170_s16 }
   0x7   :  { %10193 = sst [smem:[#allocation28_spill]] %s10171_s17 }
   0x8   :  { %10194 = sst [smem:[#allocation29_spill]] %s10172_s18 }
   0x9   :  { %23 = vsyncpa [#allocation3], 0 }
   0xa   :  { %24 = vsyncpa [#allocation6], 0 }
   0xb   :  { %25 = vsyncpa [#allocation9], 0 }
   0xc   :  { %26 = vsyncpa [#allocation4], 0 }
   0xd   :  { %28 = vsyncpa [#allocation4 + $0x1], 0  ;;  %s8316_s27 = smov 0   ;;  %s8318_s28 = smov 0  }
   0xe   :  { %s8320_s29 = smov 0   ;;  %s8322_s30 = smov 0  }
   0xf LB: > { %10195 = sst [smem:[#allocation15_spill]] %s8194_s27  ;;  %s8337_s0 = sadd.s32 4294967295, %s8206_s30   ;;  %s8206_s30 = sphi %s8322_s30, %s10240_s30   ;;  %s8202_s29 = sphi %s8320_s29, %s10242_s29   ;;  %s8198_s28 = sphi %s8318_s28, %s10244_s28   ;;  %s8194_s27 = sphi %s8316_s27, %s10243_s27  }
  0x10   : > { %10196 = sst [smem:[#allocation16_spill]] %s8202_s29  ;;  %s6317_s19 = sadd.s32 4294967294, %s8206_s30  }
  0x11   : > { %10197 = sst [smem:[#allocation17_spill]] %s8206_s30  ;;  %s8341_s1 = sadd.s32 1, %s8206_s30  }
  0x12   : > { %10198 = sst [smem:[#allocation18_spill]] %s8341_s1  ;;  %s429_s20 = sadd.s32 1, %s8202_s29 }
  0x13   : > { %s426_s21 = ssub.s32 %s8206_s30, %s8341_s1  ;;  %p439_p0 = scmp.ne.s32.totalorder %s8202_s29, %s8198_s28 }
  0x14   : > { %p427_p1 = scmp.eq.s32.totalorder %s426_s21, 0  ;;  %p440_p2 = scmp.eq.s32.totalorder %s8337_s0, 1 }
  0x15   : > { %p445_p3 = scmp.ne.s32.totalorder %s8198_s28, %s8194_s27  ;;  %p446_p4 = scmp.eq.s32.totalorder %s6317_s19, 1 }
  0x16   : > { %s8352_s22 = scalar_select %p427_p1, %s8202_s29, %s429_s20  }
  0x17   : > { %p8354_p5 = por %p440_p2, %p439_p0  ;;  %p8358_p6 = por %p446_p4, %p445_p3 }
  0x18   : > { %10199 = sst [smem:[#allocation19_spill]] %s8352_s22  ;;  %p6318_p7 = scmp.ge.s32.totalorder %s8206_s30, 1 }
  0x19   : > { %s10200_s2 = scalar_select %p8354_p5, 1, 0 }
  0x1a   : > { %s10202_s23 = scalar_select %p8358_p6, 1, 0 }
  0x1b   : > { %10201 = sst [smem:[#allocation20_spill]] %s10200_s2  ;;  %p453_p8 = scmp.lt.s32.totalorder %s8206_s30, 3 }
  0x1c   : > { %10203 = sst [smem:[#allocation21_spill]] %s10202_s23  ;;  %p10180_p9 = scmp.eq.s32.totalorder %s8337_s0, 0 }
  0x1d   : > { %p8365_p10 = pnand %p6318_p7, %p453_p8  ;;  %s8208_s25 = smov [#allocation5]  }
  0x1e   : > { %s487_s26 = sshll.u32 %s8208_s25, 4  ;;  %s8209_s20 = smov [#allocation2]   ;;  %s488_s26 = int_to_ptr.vmem [resolvable:$true] %s487_s26 }
  0x1f   : > { %s10204_s24 = scalar_select %p8365_p10, 1, 0 }
  0x20   : > { %p7356_p11 = pneg %p8365_p10  ;;  %s465_s21 = sshll.u32 %s8209_s20, 4  ;;  %s8377_s21 = int_to_ptr.vmem [resolvable:$true] %s465_s21 }
  0x21   : > { %s10206_s6 = sld [smem:[#allocation25_spill]] }
  0x22   : > { %p8373_p12 = pnand %p10180_p9, %p7356_p11 }
  0x24   : > { %p8387_p0 = pneg %p8373_p12 }
  0x27   : > { %s8020_s1 = scalar_lea.hbm %s10206_s6, 4096 }
  0x28   : > { %p8021_p13 = scmp.ne.s32.totalorder %s10206_s6, %s8020_s1  ;;  %p8027_p3 = scmp.lt.u32.totalorder %s8020_s1, %s10206_s6 }
  0x2a   : > { %p8023_p1 = pnand %p8387_p0, %p8021_p13 }
  0x2c   : > { %p8024_p2 = pneg %p8023_p1 }
  0x2e   : > { %p8029_p4 = pnand %p8027_p3, %p8024_p2 }
  0x30   : > { %8032 = shalt.err (!%p8029_p4)
}
  0x31   : > { %s8033_s29 = scalar_lea.vmem %s488_s26, 4096  ;;  %p8041_p9 = scmp.lt.s32.totalorder %s488_s26, %s488_s26 }
  0x32   : > { %p8034_p7 = scmp.ne.s32.totalorder %s488_s26, %s8033_s29  ;;  %p8042_p6 = scmp.lt.s32.totalorder %s8033_s29, %s8033_s29 }
  0x34   : > { %p8036_p8 = pnand %p8034_p7, %p8387_p0  ;;  %p8043_p5 = por %p8042_p6, %p8041_p9 }
  0x36   : > { %p8037_p11 = pneg %p8036_p8 }
  0x38   : > { %p8044_p10 = pnand %p8043_p5, %p8037_p11 }
  0x3a   : > { %8047 = shalt.err (!%p8044_p10)
}
  0x3b   : > { %s8210_s27 = smov 64   ;;  %s8211_s22 = smov 4  }
  0x3c   : > { %7362 = dma.hbm_to_vmem [thread:$0]  (!%p8373_p12), %s10206_s6, 4096, %s488_s26, [#allocation6], %s8210_s27, %s8210_s27, %s8211_s22  }
  0x3d   : > { %s10208_s18 = sld [smem:[#allocation24_spill]] }
  0x43   : > { %s8048_s2 = scalar_lea.hbm %s10208_s18, 2048 }
  0x44   : > { %p8049_p13 = scmp.ne.s32.totalorder %s10208_s18, %s8048_s2  ;;  %p8055_p9 = scmp.lt.u32.totalorder %s8048_s2, %s10208_s18 }
  0x46   : > { %p8051_p5 = pnand %p8049_p13, %p8387_p0 }
  0x48   : > { %p8052_p6 = pneg %p8051_p5 }
  0x4a   : > { %p8057_p10 = pnand %p8055_p9, %p8052_p6 }
  0x4c   : > { %8060 = shalt.err (!%p8057_p10)
}
  0x4d   : > { %s8061_s26 = scalar_lea.vmem %s8377_s21, 2048  ;;  %p8069_p4 = scmp.lt.s32.totalorder %s8377_s21, %s8377_s21 }
  0x4e   : > { %p8062_p1 = scmp.ne.s32.totalorder %s8377_s21, %s8061_s26  ;;  %p8070_p7 = scmp.lt.s32.totalorder %s8061_s26, %s8061_s26 }
  0x50   : > { %p8064_p2 = pnand %p8062_p1, %p8387_p0  ;;  %p8071_p8 = por %p8070_p7, %p8069_p4 }
  0x52   : > { %p8065_p3 = pneg %p8064_p2 }
  0x54   : > { %p8072_p11 = pnand %p8071_p8, %p8065_p3 }
  0x56   : > { %8075 = shalt.err (!%p8072_p11)
}
  0x57   : > { %s8212_s15 = smov 256   ;;  %s8213_s16 = smov 16  }
  0x58   : > { %7359 = dma.hbm_to_vmem [thread:$0]  (!%p8373_p12), %s10208_s18, 2048, %s8377_s21, [#allocation3], %s8212_s15, %s8212_s15, %s8213_s16  }
  0x59   : > { %s8214_s27 = smov [#allocation7]   ;;  %s8215_s30 = smov [#allocation8]  }
  0x5a   : > { %s515_s22 = sshll.u32 %s8214_s27, 4  ;;  %s531_s1 = sshll.u32 %s8215_s30, 4  ;;  %s516_s22 = int_to_ptr.vmem [resolvable:$true] %s515_s22  ;;  %s8429_s1 = int_to_ptr.vmem [resolvable:$true] %s531_s1 }
  0x5b   : > { %s8076_s29 = scalar_lea.hbm %s10166_s12, 4096 }
  0x5c   : > { %p8077_p13 = scmp.ne.s32.totalorder %s10166_s12, %s8076_s29  ;;  %p8083_p9 = scmp.lt.u32.totalorder %s8076_s29, %s10166_s12 }
  0x5e   : > { %p8079_p5 = pnand %p8077_p13, %p8387_p0 }
  0x60   : > { %p8080_p6 = pneg %p8079_p5 }
  0x62   : > { %p8085_p10 = pnand %p8083_p9, %p8080_p6 }
  0x64   : > { %8088 = shalt.err (!%p8085_p10)
}
  0x65   : > { %s8089_s2 = scalar_lea.vmem %s516_s22, 4096  ;;  %p8097_p4 = scmp.lt.s32.totalorder %s516_s22, %s516_s22 }
  0x66   : > { %p8090_p1 = scmp.ne.s32.totalorder %s516_s22, %s8089_s2  ;;  %p8098_p7 = scmp.lt.s32.totalorder %s8089_s2, %s8089_s2 }
  0x68   : > { %p8092_p2 = pnand %p8090_p1, %p8387_p0  ;;  %p8099_p8 = por %p8098_p7, %p8097_p4 }
  0x6a   : > { %p8093_p3 = pneg %p8092_p2 }
  0x6c   : > { %p8100_p11 = pnand %p8099_p8, %p8093_p3 }
  0x6e   : > { %8103 = shalt.err (!%p8100_p11)
}
  0x6f   : > { %7365 = dma.hbm_to_vmem [thread:$0]  (!%p8373_p12), %s10166_s12, 4096, %s516_s22, [#allocation6], %s8212_s15, %s8212_s15, %s8213_s16  }
  0x70   : > { %s8104_s20 = scalar_lea.hbm %s10168_s14, 16384 }
  0x71   : > { %p8105_p13 = scmp.ne.s32.totalorder %s10168_s14, %s8104_s20  ;;  %p8111_p9 = scmp.lt.u32.totalorder %s8104_s20, %s10168_s14 }
  0x73   : > { %p8107_p5 = pnand %p8105_p13, %p8387_p0 }
  0x75   : > { %p8108_p6 = pneg %p8107_p5 }
  0x77   : > { %p8113_p10 = pnand %p8111_p9, %p8108_p6 }
  0x79   : > { %8116 = shalt.err (!%p8113_p10)
}
  0x7a   : > { %s8117_s22 = scalar_lea.vmem %s8429_s1, 16384  ;;  %p8125_p4 = scmp.lt.s32.totalorder %s8429_s1, %s8429_s1 }
  0x7b   : > { %p8118_p1 = scmp.ne.s32.totalorder %s8429_s1, %s8117_s22  ;;  %p8126_p7 = scmp.lt.s32.totalorder %s8117_s22, %s8117_s22 }
  0x7d   : > { %p8120_p2 = pnand %p8118_p1, %p8387_p0  ;;  %p8127_p8 = por %p8126_p7, %p8125_p4 }
  0x7f   : > { %p8121_p3 = pneg %p8120_p2 }
  0x81   : > { %p8128_p11 = pnand %p8127_p8, %p8121_p3 }
  0x83   : > { %8131 = shalt.err (!%p8128_p11)
}
  0x84   : > { %7368 = dma.hbm_to_vmem [thread:$0]  (!%p8373_p12), %s10168_s14, 16384, %s8429_s1, [#allocation9], %s8212_s15, %s8212_s15, %s8213_s16  }
  0x85   : > { %p10209_p13 = scmp.ne.s32.totalorder %s10204_s24, 0 }
  0x86   : > { %p10210_p0 = scmp.eq.s32.totalorder (!%p10209_p13), %s8337_s0, 0 }
  0x87   : > { %574 = sbr.rel (%p10209_p13) target bundleno = 2312 (0x908), region = 92 }
  0x8e   : > { %8177 = dma.done.wait (%p10210_p0), [#allocation3], 2048   ;;  %p10211_p5 = pmov %p10210_p0 }
  0x8f   : > { %p10212_p6 = pmov %p10210_p0 }
  0x90   : > { %8179 = vsyncadd (%p10211_p5), [#allocation3], 4294965248 }
  0x91   : > { %8181 = dma.done.wait (%p10212_p6), [#allocation6], 8192   ;;  %p10213_p9 = pmov %p10210_p0 }
  0x92   : > { %p10214_p10 = pmov %p10210_p0 }
  0x93   : > { %8183 = vsyncadd (%p10213_p9), [#allocation6], 4294959104 }
  0x94   : > { %8185 = dma.done.wait (%p10214_p10), [#allocation9], 16384   ;;  %p10215_p12 = pmov %p10210_p0 }
  0x95   : > { %s6330_s24 = sshll.u32 %s8337_s0, 4  ;;  %v8216_v0 = vmov 0   ;;  %v7426_v1 = vld [vmem:[#allocation2 + $0x4] ss:$16 sps:$4 sm:$0xff]   ;;  %v7428_v2 = vld [vmem:[#allocation2] ss:$16 sps:$4 sm:$0xff]  }
  0x96   : > { %8187 = vsyncadd (%p10215_p12), [#allocation9], 4294950912  ;;  %858 = vmatprep.mubr.bf16.mxu0 %v8216_v0  ;;  %971 = vmatprep.mubr.bf16.mxu1 %v8216_v0  ;;  %p646_p1 = scmp.lt.s32.totalorder %s6330_s24, 31  ;;  %v7429_v3 = vld [vmem:[#allocation2 + $0x24] ss:$16 sps:$4 sm:$0xff]   ;;  %s10216_s16 = sld [smem:[#allocation22_spill]] }
  0x97   : > { %826 = vmatprep.subr.bf16.mxu0 %v7426_v1  ;;  %v7431_v4 = vld [vmem:[#allocation2 + $0x20] ss:$16 sps:$4 sm:$0xff]   ;;  %v7432_v5 = vld [vmem:[#allocation2 + $0x44] ss:$16 sps:$4 sm:$0xff]   ;;  %v7438_v10 = vld [vmem:[#allocation2 + $0xc] ss:$16 sps:$4 sm:$0xff]  }
  0x98   : > { %s10246_s24 = smov (!%p646_p1, %s6330_s24), 31  ;;  %827 = vmatpush1.bf16.msra.mxu0 %v7428_v2  ;;  %v7434_v6 = vld [vmem:[#allocation2 + $0x40] ss:$16 sps:$4 sm:$0xff]   ;;  %v7435_v7 = vld [vmem:[#allocation2 + $0x64] ss:$16 sps:$4 sm:$0xff]   ;;  %939 = vmatprep.subr.bf16.mxu1 %v7438_v10  ;;  %vm801_vm0 = vcmask 523264  }
  0x99   : > { %828 = vmatprep.subr.bf16.mxu0 %v7429_v3  ;;  %s6331_s19 = sshll.u32 %s10246_s24, 3  ;;  %v7437_v8 = vld [vmem:[#allocation2 + $0x60] ss:$16 sps:$4 sm:$0xff]   ;;  %v7440_v11 = vld [vmem:[#allocation2 + $0x8] ss:$16 sps:$4 sm:$0xff]   ;;  %s10217_s27 = sld [smem:[#allocation23_spill]] }
  0x9a   : > { %v7441_v13 = vld [vmem:[#allocation2 + $0x2c] ss:$16 sps:$4 sm:$0xff]   ;;  %940 = vmatpush1.bf16.msra.mxu1 %v7440_v11  ;;  %v7443_v14 = vld [vmem:[#allocation2 + $0x28] ss:$16 sps:$4 sm:$0xff]   ;;  %v7450_v18 = vld [vmem:[%s10158_s4] ss:$16 sps:$4 sm:$0xff]  }
  0x9b   : > { %941 = vmatprep.subr.bf16.mxu1 %v7441_v13  ;;  %v7444_v16 = vld [vmem:[#allocation2 + $0x4c] ss:$16 sps:$4 sm:$0xff]   ;;  %v7446_v17 = vld [vmem:[#allocation2 + $0x48] ss:$16 sps:$4 sm:$0xff]   ;;  %v7452_v19 = vld [vmem:[%s10158_s4 + $0x4] ss:$16 sps:$4 sm:$0xff]  }
  0x9c   : > { %829 = vmatpush1.bf16.msra.mxu0 %v7431_v4  ;;  %s8503_s1 = scalar_lea.vmem %s10216_s16, %s6331_s19  ;;  %v7447_v21 = vld [vmem:[#allocation2 + $0x6c] ss:$16 sps:$4 sm:$0xff]   ;;  %v7458_v23 = vld [vmem:[%s10158_s4 + $0x24] ss:$16 sps:$4 sm:$0xff]   ;;  %v7456_v24 = vld [vmem:[%s10158_s4 + $0x20] ss:$16 sps:$4 sm:$0xff]  }
  0x9d   : > { %830 = vmatprep.subr.bf16.mxu0 %v7432_v5  ;;  %v659_v9 = vld [vmem:[%s8503_s1] sm:$0xff]  ;;  %v660_v12 = vld [vmem:[%s8503_s1 + $0x8] sm:$0xff]  ;;  %v661_v20 = vld [vmem:[%s8503_s1 + $0x10] sm:$0xff]  ;;  %s8217_s23 = smov 32   ;;  %s642_s26 = sand.u32 1, %s8198_s28   ;;  %vm3582_vm1 = vcmask 261120  }
  0x9e   : > { %v675_v15 = vpack.c.bf16 %v660_v12, %v659_v9  ;;  %942 = vmatpush1.bf16.msra.mxu1 %v7443_v14  ;;  %v662_v22 = vld [vmem:[%s8503_s1 + $0x18] sm:$0xff]  ;;  %v7464_v28 = vld [vmem:[%s10158_s4 + $0x44] ss:$16 sps:$4 sm:$0xff]   ;;  %v7462_v29 = vld [vmem:[%s10158_s4 + $0x40] ss:$16 sps:$4 sm:$0xff]   ;;  %s6329_s17 = sshll.u32 %s642_s26, 9 }
  0x9f   : > { %943 = vmatprep.subr.bf16.mxu1 %v7444_v16  ;;  %v7449_v25 = vld [vmem:[#allocation2 + $0x68] ss:$16 sps:$4 sm:$0xff]   ;;  %v676_v26 = vpack.c.bf16 %v662_v22, %v661_v20  ;;  %v7455_v27 = vld [vmem:[%s10158_s4 + $0xc] ss:$16 sps:$4 sm:$0xff]   ;;  %v663_v30 = vld [vmem:[%s8503_s1 + $0x20] sm:$0xff]  ;;  %s9194_s30 = scalar_lea.vmem %s10217_s27, %s6331_s19  ;;  %s9271_s6 = scalar_lea.vmem [#allocation10], %s6329_s17 }
  0xa0   : > { %831 = vmatpush1.bf16.msra.mxu0 %v7434_v6  ;;  %v7453_v31 = vld [vmem:[%s10158_s4 + $0x8] ss:$16 sps:$4 sm:$0xff]   ;;  %v7461_v32 = vld [vmem:[%s10158_s4 + $0x2c] ss:$16 sps:$4 sm:$0xff]   ;;  %v7470_v33 = vld [vmem:[%s10158_s4 + $0x64] ss:$16 sps:$4 sm:$0xff]  }
  0xa1   : > { %832 = vmatprep.subr.bf16.mxu0 %v7435_v7  ;;  %v664_v34 = vld [vmem:[%s8503_s1 + $0x28] sm:$0xff]  ;;  %v7468_v36 = vld [vmem:[%s10158_s4 + $0x60] ss:$16 sps:$4 sm:$0xff]   ;;  %v7476_v37 = vld [vmem:[%s10158_s4 + $0x84] ss:$16 sps:$4 sm:$0xff]   ;;  %s8218_s25 = smov 96  }
  0xa2   : > { %944 = vmatpush1.bf16.msra.mxu1 %v7446_v17  ;;  %v7459_v35 = vld [vmem:[%s10158_s4 + $0x28] ss:$16 sps:$4 sm:$0xff]   ;;  %v677_v38 = vpack.c.bf16 %v664_v34, %v663_v30  ;;  %v7467_v39 = vld [vmem:[%s10158_s4 + $0x4c] ss:$16 sps:$4 sm:$0xff]   ;;  %v7474_v40 = vld [vmem:[%s10158_s4 + $0x80] ss:$16 sps:$4 sm:$0xff]  }
  0xa3   : > { %945 = vmatprep.subr.bf16.mxu1 %v7447_v21  ;;  %v665_v41 = vld [vmem:[%s8503_s1 + $0x30] sm:$0xff]  ;;  %v7465_v42 = vld [vmem:[%s10158_s4 + $0x48] ss:$16 sps:$4 sm:$0xff]   ;;  %v7473_v43 = vld [vmem:[%s10158_s4 + $0x6c] ss:$16 sps:$4 sm:$0xff]   ;;  %s10230_s20 = sld [smem:[#allocation27_spill]] }
  0xa4   : > { %833 = vmatpush1.bf16.msra.mxu0 %v7437_v8  ;;  %v7482_v44 = vld [vmem:[%s10158_s4 + $0xa4] ss:$16 sps:$4 sm:$0xff]   ;;  %v666_v45 = vld [vmem:[%s8503_s1 + $0x38] sm:$0xff]  ;;  %v7480_v47 = vld [vmem:[%s10158_s4 + $0xa0] ss:$16 sps:$4 sm:$0xff]   ;;  %s10231_s19 = sld [smem:[#allocation26_spill]] }
  0xa5   : > { %1938 = vmatprep.subr.bf16.mxu0 %v7452_v19  ;;  %v7471_v46 = vld [vmem:[%s10158_s4 + $0x68] ss:$16 sps:$4 sm:$0xff]   ;;  %v7488_v48 = vld [vmem:[%s10158_s4 + $0xc4] ss:$16 sps:$4 sm:$0xff]   ;;  %v678_v49 = vpack.c.bf16 %v666_v45, %v665_v41  ;;  %v7479_v50 = vld [vmem:[%s10158_s4 + $0x8c] ss:$16 sps:$4 sm:$0xff]  }
  0xa6   : > { %946 = vmatpush1.bf16.msra.mxu1 %v7449_v25  ;;  %v7486_v51 = vld [vmem:[%s10158_s4 + $0xc0] ss:$16 sps:$4 sm:$0xff]   ;;  %v7477_v53 = vld [vmem:[%s10158_s4 + $0x88] ss:$16 sps:$4 sm:$0xff]   ;;  %v7485_v54 = vld [vmem:[%s10158_s4 + $0xac] ss:$16 sps:$4 sm:$0xff]  }
  0xa7   : > { %6350 = vmatmul.mubr.msk.bf16.vlgmr.msra.gmra.mrb[0].mxu0 %vm801_vm0, %v675_v15  ;;  %2164 = vmatprep.subr.bf16.mxu1 %v7455_v27  ;;  %v667_v52 = vld [vmem:[%s8503_s1 + $0x40] sm:$0xff]  ;;  %v668_v56 = vld [vmem:[%s8503_s1 + $0x48] sm:$0xff]  ;;  %v669_v63 = vld [vmem:[%s8503_s1 + $0x50] sm:$0xff]  ;;  %s10233_s21 = sld [smem:[#allocation20_spill]]  ;;  %s6747_s22 = sshll.u32 %s8337_s0, 13 }
  0xa8   : > { %868 = vmatprep.mubr.bf16.mxu0 %v8216_v0  ;;  %1939 = vmatpush1.bf16.msra.mxu0 %v7450_v18  ;;  %v7494_v55 = vld [vmem:[%s10158_s4 + $0xe4] ss:$16 sps:$4 sm:$0xff]   ;;  %v7483_v57 = vld [vmem:[%s10158_s4 + $0xa8] ss:$16 sps:$4 sm:$0xff]   ;;  %v7492_v58 = vld [vmem:[%s10158_s4 + $0xe0] ss:$16 sps:$4 sm:$0xff]   ;;  %v679_v60 = vpack.c.bf16 %v668_v56, %v667_v52 }
  0xa9   : > { %1940 = vmatprep.subr.bf16.mxu0 %v7458_v23  ;;  %6358 = vmatmul.mubr.msk.bf16.vlgmr.msra.gmra.mrb[0].mxu1 %vm801_vm0, %v675_v15  ;;  %v7500_v59 = vld [vmem:[%s10158_s4 + $0x104] ss:$16 sps:$4 sm:$0xff]   ;;  %v7491_v61 = vld [vmem:[%s10158_s4 + $0xcc] ss:$16 sps:$4 sm:$0xff]   ;;  %v7498_v62 = vld [vmem:[%s10158_s4 + $0x100] ss:$16 sps:$4 sm:$0xff]  }
  0xaa   : > { %981 = vmatprep.mubr.bf16.mxu1 %v8216_v0  ;;  %2165 = vmatpush1.bf16.msra.mxu1 %v7453_v31  ;;  %v7489_v1 = vld [vmem:[%s10158_s4 + $0xc8] ss:$16 sps:$4 sm:$0xff]   ;;  %v7497_v2 = vld [vmem:[%s10158_s4 + $0xec] ss:$16 sps:$4 sm:$0xff]   ;;  %v7506_v3 = vld [vmem:[%s10158_s4 + $0x124] ss:$16 sps:$4 sm:$0xff]  }
  0xab   : > { %2166 = vmatprep.subr.bf16.mxu1 %v7461_v32  ;;  %v670_v4 = vld [vmem:[%s8503_s1 + $0x58] sm:$0xff]  ;;  %v7504_v6 = vld [vmem:[%s10158_s4 + $0x120] ss:$16 sps:$4 sm:$0xff]   ;;  %v7512_v8 = vld [vmem:[%s10158_s4 + $0x144] ss:$16 sps:$4 sm:$0xff]   ;;  %s6202_s2 = sshll.u32 %s9271_s6, 4  ;;  %s10106_s2 = int_to_ptr.vmem [resolvable:$true] %s6202_s2 }
  0xac   : > { %1941 = vmatpush1.bf16.msra.mxu0 %v7456_v24  ;;  %v7495_v5 = vld [vmem:[%s10158_s4 + $0xe8] ss:$16 sps:$4 sm:$0xff]   ;;  %v7503_v7 = vld [vmem:[%s10158_s4 + $0x10c] ss:$16 sps:$4 sm:$0xff]   ;;  %v680_v9 = vpack.c.bf16 %v670_v4, %v669_v63  ;;  %v7510_v10 = vld [vmem:[%s10158_s4 + $0x140] ss:$16 sps:$4 sm:$0xff]  }
  0xad   : > { %1942 = vmatprep.subr.bf16.mxu0 %v7464_v28  ;;  %v7501_v11 = vld [vmem:[%s10158_s4 + $0x108] ss:$16 sps:$4 sm:$0xff]   ;;  %v7509_v12 = vld [vmem:[%s10158_s4 + $0x12c] ss:$16 sps:$4 sm:$0xff]   ;;  %v7518_v13 = vld [vmem:[%s10158_s4 + $0x164] ss:$16 sps:$4 sm:$0xff]  }
  0xae   : > { %2167 = vmatpush1.bf16.msra.mxu1 %v7459_v35  ;;  %v671_v14 = vld [vmem:[%s8503_s1 + $0x60] sm:$0xff]  ;;  %v672_v15 = vld [vmem:[%s8503_s1 + $0x68] sm:$0xff]  ;;  %v673_v25 = vld [vmem:[%s8503_s1 + $0x70] sm:$0xff]  ;;  %s10234_s16 = sld [smem:[#allocation29_spill]]  ;;  %s10112_s0 = scalar_lea.sflag [#allocation4], %s642_s26 }
  0xaf   : > { %6351 = vmatmul.mubr.msk.bf16.gmra.mrb[4].mxu0 %vm801_vm0, %v676_v26  ;;  %2168 = vmatprep.subr.bf16.mxu1 %v7467_v39  ;;  %v7516_v16 = vld [vmem:[%s10158_s4 + $0x160] ss:$16 sps:$4 sm:$0xff]   ;;  %v7507_v17 = vld [vmem:[%s10158_s4 + $0x128] ss:$16 sps:$4 sm:$0xff]   ;;  %v7524_v18 = vld [vmem:[%s10158_s4 + $0x184] ss:$16 sps:$4 sm:$0xff]   ;;  %v681_v20 = vpack.c.bf16 %v672_v15, %v671_v14 }
  0xb0   : > { %878 = vmatprep.mubr.bf16.mxu0 %v8216_v0  ;;  %1943 = vmatpush1.bf16.msra.mxu0 %v7462_v29  ;;  %v7515_v19 = vld [vmem:[%s10158_s4 + $0x14c] ss:$16 sps:$4 sm:$0xff]   ;;  %v7522_v21 = vld [vmem:[%s10158_s4 + $0x180] ss:$16 sps:$4 sm:$0xff]   ;;  %v7513_v22 = vld [vmem:[%s10158_s4 + $0x148] ss:$16 sps:$4 sm:$0xff]  }
  0xb1   : > { %1944 = vmatprep.subr.bf16.mxu0 %v7470_v33  ;;  %6359 = vmatmul.mubr.msk.bf16.gmra.mrb[4].mxu1 %vm801_vm0, %v676_v26  ;;  %v7521_v23 = vld [vmem:[%s10158_s4 + $0x16c] ss:$16 sps:$4 sm:$0xff]   ;;  %v7530_v24 = vld [vmem:[%s10158_s4 + $0x1a4] ss:$16 sps:$4 sm:$0xff]   ;;  %v7528_v27 = vld [vmem:[%s10158_s4 + $0x1a0] ss:$16 sps:$4 sm:$0xff]  }
  0xb2   : > { %991 = vmatprep.mubr.bf16.mxu1 %v8216_v0  ;;  %2169 = vmatpush1.bf16.msra.mxu1 %v7465_v42  ;;  %v674_v26 = vld [vmem:[%s8503_s1 + $0x78] sm:$0xff]  ;;  %v7536_v34 = vld [vmem:[%s10158_s4 + $0x1c4] ss:$16 sps:$4 sm:$0xff]   ;;  %s10232_s1 = sld [smem:[#allocation28_spill]]  ;;  %p10235_p3 = scmp.ne.s32.totalorder %s10233_s21, 0 }
  0xb3   : > { %2170 = vmatprep.subr.bf16.mxu1 %v7473_v43  ;;  %v7519_v28 = vld [vmem:[%s10158_s4 + $0x168] ss:$16 sps:$4 sm:$0xff]   ;;  %v7527_v29 = vld [vmem:[%s10158_s4 + $0x18c] ss:$16 sps:$4 sm:$0xff]   ;;  %v682_v30 = vpack.c.bf16 %v674_v26, %v673_v25  ;;  %v7548_v42 = vld [vmem:[%s10158_s4 + $0x204] ss:$16 sps:$4 sm:$0xff]  }
  0xb4   : > { %1945 = vmatpush1.bf16.msra.mxu0 %v7468_v36  ;;  %v7525_v31 = vld [vmem:[%s10158_s4 + $0x188] ss:$16 sps:$4 sm:$0xff]   ;;  %v7533_v32 = vld [vmem:[%s10158_s4 + $0x1ac] ss:$16 sps:$4 sm:$0xff]   ;;  %v7534_v36 = vld [vmem:[%s10158_s4 + $0x1c0] ss:$16 sps:$4 sm:$0xff]   ;;  %s10102_s27 = scalar_lea.hbm %s10234_s16, %s6747_s22 }
  0xb5   : > { %1946 = vmatprep.subr.bf16.mxu0 %v7476_v37  ;;  %v7531_v33 = vld [vmem:[%s10158_s4 + $0x1a8] ss:$16 sps:$4 sm:$0xff]   ;;  %v7539_v35 = vld [vmem:[%s10158_s4 + $0x1cc] ss:$16 sps:$4 sm:$0xff]   ;;  %s8219_s24 = smov [#allocation10]  }
  0xb6   : > { %2171 = vmatpush1.bf16.msra.mxu1 %v7471_v46  ;;  %v7537_v37 = vld [vmem:[%s10158_s4 + $0x1c8] ss:$16 sps:$4 sm:$0xff]   ;;  %v7545_v39 = vld [vmem:[%s10158_s4 + $0x1ec] ss:$16 sps:$4 sm:$0xff]  }
  0xb7   : > { %6352 = vmatmul.mubr.msk.bf16.gmra.mrb[8].mxu0 %vm801_vm0, %v677_v38  ;;  %2172 = vmatprep.subr.bf16.mxu1 %v7479_v50  ;;  %v7543_v41 = vld [vmem:[%s10158_s4 + $0x1e8] ss:$16 sps:$4 sm:$0xff]   ;;  %v7551_v43 = vld [vmem:[%s10158_s4 + $0x20c] ss:$16 sps:$4 sm:$0xff]  }
  0xb8   : > { %888 = vmatprep.mubr.bf16.mxu0 %v8216_v0  ;;  %1947 = vmatpush1.bf16.msra.mxu0 %v7474_v40  ;;  %v7540_v40 = vld [vmem:[%s10158_s4 + $0x1e0] ss:$16 sps:$4 sm:$0xff]  }
  0xb9   : > { %1948 = vmatprep.subr.bf16.mxu0 %v7482_v44  ;;  %6360 = vmatmul.mubr.msk.bf16.gmra.mrb[8].mxu1 %vm801_vm0, %v677_v38  ;;  %v7542_v38 = vld [vmem:[%s10158_s4 + $0x1e4] ss:$16 sps:$4 sm:$0xff]   ;;  %v701_v44 = vlaneseq }
  0xba   : > { %1001 = vmatprep.mubr.bf16.mxu1 %v8216_v0  ;;  %2173 = vmatpush1.bf16.msra.mxu1 %v7477_v53 }
  0xbb   : > { %2174 = vmatprep.subr.bf16.mxu1 %v7485_v54  ;;  %v702_v45 = vshrl.u32 %v701_v44, 7 }
  0xbc   : > { %1949 = vmatpush1.bf16.msra.mxu0 %v7480_v47  ;;  %v699_v47 = vld [vmem:[%s10157_s3] sm:$0xf] }
  0xbd   : > { %1950 = vmatprep.subr.bf16.mxu0 %v7488_v48  ;;  %v8749_v46 = vsub.s32 0, %v702_v45  ;;  %v8754_v48 = vsub.s32 1, %v702_v45 }
  0xbe   : > { %2175 = vmatpush1.bf16.msra.mxu1 %v7483_v57 }
  0xbf   : > { %6353 = vmatmul.mubr.msk.bf16.gmra.mrb[12].mxu0 %vm801_vm0, %v678_v49  ;;  %2176 = vmatprep.subr.bf16.mxu1 %v7491_v61  ;;  %v8760_v50 = vrot.slane %v699_v47, %v8754_v48 }
  0xc0   : > { %898 = vmatprep.mubr.bf16.mxu0 %v8216_v0  ;;  %1951 = vmatpush1.bf16.msra.mxu0 %v7486_v51 }
  0xc1   : > { %1952 = vmatprep.subr.bf16.mxu0 %v7494_v55  ;;  %6361 = vmatmul.mubr.msk.bf16.gmra.mrb[12].mxu1 %vm801_vm0, %v678_v49  ;;  %v8757_v49 = vrot.slane %v699_v47, %v8749_v46 }
  0xc2   : > { %1011 = vmatprep.mubr.bf16.mxu1 %v8216_v0  ;;  %2177 = vmatpush1.bf16.msra.mxu1 %v7489_v1 }
  0xc3   : > { %2178 = vmatprep.subr.bf16.mxu1 %v7497_v2 }
  0xc4   : > { %1953 = vmatpush1.bf16.msra.mxu0 %v7492_v58  ;;  %v8765_v58 = vsub.s32 2, %v702_v45 }
  0xc5   : > { %1954 = vmatprep.subr.bf16.mxu0 %v7500_v59 }
  0xc6   : > { %2179 = vmatpush1.bf16.msra.mxu1 %v7495_v5 }
  0xc7   : > { %6354 = vmatmul.mubr.msk.bf16.gmra.mrb[16].mxu0 %vm801_vm0, %v679_v60  ;;  %2180 = vmatprep.subr.bf16.mxu1 %v7503_v7  ;;  %v7549_v7 = vld [vmem:[%s10158_s4 + $0x208] ss:$16 sps:$4 sm:$0xff]  }
  0xc8   : > { %908 = vmatprep.mubr.bf16.mxu0 %v8216_v0  ;;  %1955 = vmatpush1.bf16.msra.mxu0 %v7498_v62 }
  0xc9   : > { %1956 = vmatprep.subr.bf16.mxu0 %v7506_v3  ;;  %6362 = vmatmul.mubr.msk.bf16.gmra.mrb[16].mxu1 %vm801_vm0, %v679_v60  ;;  %v8768_v60 = vsub.s32 3, %v702_v45  ;;  %v8771_v3 = vrot.slane %v699_v47, %v8765_v58  ;;  %v7566_v45 = vld [vmem:[%s10158_s4 + $0x264] ss:$16 sps:$4 sm:$0xff]  }
  0xca   : > { %1021 = vmatprep.mubr.bf16.mxu1 %v8216_v0  ;;  %2181 = vmatpush1.bf16.msra.mxu1 %v7501_v11  ;;  %v7554_v11 = vld [vmem:[%s10158_s4 + $0x224] ss:$16 sps:$4 sm:$0xff]  }
  0xcb   : > { %2182 = vmatprep.subr.bf16.mxu1 %v7509_v12  ;;  %v7557_v12 = vld [vmem:[%s10158_s4 + $0x22c] ss:$16 sps:$4 sm:$0xff]  }
  0xcc   : > { %1957 = vmatpush1.bf16.msra.mxu0 %v7504_v6  ;;  %v7546_v6 = vld [vmem:[%s10158_s4 + $0x200] ss:$16 sps:$4 sm:$0xff]  }
  0xcd   : > { %1958 = vmatprep.subr.bf16.mxu0 %v7512_v8  ;;  %v8780_v8 = vrot.slane %v699_v47, %v8768_v60  ;;  %v7569_v47 = vld [vmem:[%s10158_s4 + $0x26c] ss:$16 sps:$4 sm:$0xff]  }
  0xce   : > { %2183 = vmatpush1.bf16.msra.mxu1 %v7507_v17 }
  0xcf   : > { %6355 = vmatmul.mubr.msk.bf16.gmra.mrb[20].mxu0 %vm801_vm0, %v680_v9  ;;  %2184 = vmatprep.subr.bf16.mxu1 %v7515_v19 }
  0xd0   : > { %918 = vmatprep.mubr.bf16.mxu0 %v8216_v0  ;;  %1959 = vmatpush1.bf16.msra.mxu0 %v7510_v10 }
  0xd1   : > { %1960 = vmatprep.subr.bf16.mxu0 %v7518_v13  ;;  %6363 = vmatmul.mubr.msk.bf16.gmra.mrb[20].mxu1 %vm801_vm0, %v680_v9 }
  0xd2   : > { %1031 = vmatprep.mubr.bf16.mxu1 %v8216_v0  ;;  %2185 = vmatpush1.bf16.msra.mxu1 %v7513_v22  ;;  %v7555_v22 = vld [vmem:[%s10158_s4 + $0x228] ss:$16 sps:$4 sm:$0xff]  }
  0xd3   : > { %2186 = vmatprep.subr.bf16.mxu1 %v7521_v23  ;;  %v7560_v23 = vld [vmem:[%s10158_s4 + $0x244] ss:$16 sps:$4 sm:$0xff]  }
  0xd4   : > { %1961 = vmatpush1.bf16.msra.mxu0 %v7516_v16 }
  0xd5   : > { %1962 = vmatprep.subr.bf16.mxu0 %v7524_v18  ;;  %v7552_v18 = vld [vmem:[%s10158_s4 + $0x220] ss:$16 sps:$4 sm:$0xff]  }
  0xd6   : > { %2187 = vmatpush1.bf16.msra.mxu1 %v7519_v28  ;;  %v7563_v28 = vld [vmem:[%s10158_s4 + $0x24c] ss:$16 sps:$4 sm:$0xff]  }
  0xd7   : > { %6356 = vmatmul.mubr.msk.bf16.gmra.mrb[24].mxu0 %vm801_vm0, %v681_v20  ;;  %2188 = vmatprep.subr.bf16.mxu1 %v7527_v29 }
  0xd8   : > { %928 = vmatprep.mubr.bf16.mxu0 %v8216_v0  ;;  %1963 = vmatpush1.bf16.msra.mxu0 %v7522_v21 }
  0xd9   : > { %1964 = vmatprep.subr.bf16.mxu0 %v7530_v24  ;;  %6364 = vmatmul.mubr.msk.bf16.gmra.mrb[24].mxu1 %vm801_vm0, %v681_v20 }
  0xda   : > { %1041 = vmatprep.mubr.bf16.mxu1 %v8216_v0  ;;  %2189 = vmatpush1.bf16.msra.mxu1 %v7525_v31 }
  0xdb   : > { %2190 = vmatprep.subr.bf16.mxu1 %v7533_v32 }
  0xdc   : > { %1965 = vmatpush1.bf16.msra.mxu0 %v7528_v27 }
  0xdd   : > { %1966 = vmatprep.subr.bf16.mxu0 %v7536_v34 }
  0xde   : > { %2191 = vmatpush1.bf16.msra.mxu1 %v7531_v33 }
  0xdf   : > { %6357 = vmatmul.mubr.msk.bf16.gmra.mrb[28].mxu0 %vm801_vm0, %v682_v30  ;;  %2192 = vmatprep.subr.bf16.mxu1 %v7539_v35 }
  0xe0   : > { %1967 = vmatpush1.bf16.msra.mxu0 %v7534_v36 }
  0xe1   : > { %6365 = vmatmul.mubr.msk.bf16.gmra.mrb[28].mxu1 %vm801_vm0, %v682_v30  ;;  %1968 = vmatprep.subr.bf16.mxu0 %v7542_v38 }
  0xe2   : > { %2193 = vmatpush1.bf16.msra.mxu1 %v7537_v37 }
  0xe3   : > { %2194 = vmatprep.subr.bf16.mxu1 %v7545_v39 }
  0xe4   : > { %1969 = vmatpush1.bf16.msra.mxu0 %v7540_v40  ;;  %v7558_v40 = vld [vmem:[%s10158_s4 + $0x240] ss:$16 sps:$4 sm:$0xff]  }
  0xe5   : > { %2051 = vmatprep.subr.bf16.mxu0 %v7548_v42 }
  0xe6   : > { %2195 = vmatpush1.bf16.msra.mxu1 %v7543_v41  ;;  %v7561_v41 = vld [vmem:[%s10158_s4 + $0x248] ss:$16 sps:$4 sm:$0xff]  }
  0xe7   : > { %2277 = vmatprep.subr.bf16.mxu1 %v7551_v43 }
 0x17a   : > { %v860_v51 = vpop.f32.mrb[0].mxu0 }
 0x17b   : > { %v861_v52 = vadd.f32 %v860_v51, %v8757_v49  ;;  %v862_v53 = vpop.f32.mrb[1].mxu0 }
 0x17c   : > { %v863_v54 = vadd.f32 %v862_v53, %v8760_v50  ;;  %v864_v55 = vpop.f32.mrb[2].mxu0  ;;  %v973_v15 = vpop.f32.mrb[0].mxu1 }
 0x17d   : > { %v865_v56 = vadd.f32 %v864_v55, %v8757_v49  ;;  %v866_v57 = vpop.f32.mrb[3].mxu0  ;;  %v1052_v61 = vmax.f32 %v861_v52, 0.0  ;;  %v974_v19 = vadd.f32 %v973_v15, %v8771_v3  ;;  %v975_v20 = vpop.f32.mrb[1].mxu1 }
 0x17e   : > { %v867_v59 = vadd.f32 %v866_v57, %v8760_v50  ;;  %v1053_v63 = vmax.f32 %v863_v54, 0.0  ;;  %v976_v24 = vadd.f32 %v975_v20, %v8780_v8  ;;  %v977_v25 = vpop.f32.mrb[2].mxu1 }
 0x17f   : > { %v1056_v62 = vmax.f32 %v865_v56, 0.0  ;;  %v1054_v29 = vmax.f32 %v974_v19, 0.0  ;;  %v978_v30 = vadd.f32 %v977_v25, %v8771_v3  ;;  %v979_v31 = vpop.f32.mrb[3].mxu1 }
 0x180   : > { %v1057_v1 = vmax.f32 %v867_v59, 0.0  ;;  %v1055_v34 = vmax.f32 %v976_v24, 0.0  ;;  %v980_v35 = vadd.f32 %v979_v31, %v8780_v8  ;;  %v7564_v59 = vld [vmem:[%s10158_s4 + $0x260] ss:$16 sps:$4 sm:$0xff]  }
 0x181   : > { %v1116_v2 = vpack.c.bf16 %v1056_v62, %v1052_v61  ;;  %v1058_v37 = vmax.f32 %v978_v30, 0.0 }
 0x182   : > { %v1117_v4 = vpack.c.bf16 %v1057_v1, %v1053_v63  ;;  %v870_v5 = vpop.f32.mrb[4].mxu0  ;;  %v1059_v42 = vmax.f32 %v980_v35, 0.0  ;;  %v7567_v1 = vld [vmem:[%s10158_s4 + $0x268] ss:$16 sps:$4 sm:$0xff]   ;;  %v7576_v35 = vld [vmem:[%s10158_s4 + $0x2a0] ss:$16 sps:$4 sm:$0xff]  }
 0x183   : > { %v871_v9 = vadd.f32 %v870_v5, %v8757_v49  ;;  %v872_v10 = vpop.f32.mrb[5].mxu0  ;;  %v8821_v51 = vpack.c.bf16 %v1058_v37, %v1054_v29 }
 0x184   : > { %v873_v13 = vadd.f32 %v872_v10, %v8760_v50  ;;  %v874_v14 = vpop.f32.mrb[6].mxu0  ;;  %1970 = vmatprep.mubr.bf16.mxu0 %v1117_v4  ;;  %2196 = vmatprep.mubr.bf16.mxu1 %v1117_v4  ;;  %v8824_v54 = vpack.c.bf16 %v1059_v42, %v1055_v34  ;;  %v983_v55 = vpop.f32.mrb[4].mxu1 }
 0x185   : > { %v875_v16 = vadd.f32 %v874_v14, %v8757_v49  ;;  %v876_v17 = vpop.f32.mrb[7].mxu0  ;;  %1971 = vmatmul.mubr.bf16.vlgmr.msra.gmra.mrb[32].mxu0 %v1116_v2  ;;  %2197 = vmatmul.mubr.bf16.vlgmr.msra.gmra.mrb[32].mxu1 %v1116_v2  ;;  %v1060_v26 = vmax.f32 %v871_v9, 0.0  ;;  %v984_v61 = vadd.f32 %v983_v55, %v8771_v3  ;;  %v985_v62 = vpop.f32.mrb[5].mxu1  ;;  %v7572_v2 = vld [vmem:[%s10158_s4 + $0x284] ss:$16 sps:$4 sm:$0xff]  }
 0x186   : > { %v877_v21 = vadd.f32 %v876_v17, %v8760_v50  ;;  %2052 = vmatpush1.bf16.msra.mxu0 %v7546_v6  ;;  %2278 = vmatpush1.bf16.msra.mxu1 %v7549_v7  ;;  %v1061_v32 = vmax.f32 %v873_v13, 0.0  ;;  %v986_v4 = vadd.f32 %v985_v62, %v8780_v8  ;;  %v987_v5 = vpop.f32.mrb[6].mxu1  ;;  %v7575_v9 = vld [vmem:[%s10158_s4 + $0x28c] ss:$16 sps:$4 sm:$0xff]  }
 0x187   : > { %v1064_v27 = vmax.f32 %v875_v16, 0.0  ;;  %2053 = vmatprep.subr.bf16.mxu0 %v7554_v11  ;;  %2279 = vmatprep.subr.bf16.mxu1 %v7557_v12  ;;  %v1062_v10 = vmax.f32 %v984_v61, 0.0  ;;  %v988_v11 = vadd.f32 %v987_v5, %v8771_v3  ;;  %v989_v12 = vpop.f32.mrb[7].mxu1 }
 0x188   : > { %v1065_v33 = vmax.f32 %v877_v21, 0.0  ;;  %v1063_v15 = vmax.f32 %v986_v4, 0.0  ;;  %v990_v16 = vadd.f32 %v989_v12, %v8780_v8  ;;  %v7570_v21 = vld [vmem:[%s10158_s4 + $0x280] ss:$16 sps:$4 sm:$0xff]   ;;  %v7585_v4 = vld [vmem:[%s10158_s4 + $0x2c8] ss:$16 sps:$4 sm:$0xff]  }
 0x189   : > { %v1120_v36 = vpack.c.bf16 %v1064_v27, %v1060_v26  ;;  %v7578_v26 = vld [vmem:[%s10158_s4 + $0x2a4] ss:$16 sps:$4 sm:$0xff]   ;;  %v7581_v27 = vld [vmem:[%s10158_s4 + $0x2ac] ss:$16 sps:$4 sm:$0xff]  }
 0x18a   : > { %v1121_v38 = vpack.c.bf16 %v1065_v33, %v1061_v32  ;;  %2054 = vmatpush1.bf16.msra.mxu0 %v7552_v18  ;;  %v880_v39 = vpop.f32.mrb[8].mxu0  ;;  %2280 = vmatpush1.bf16.msra.mxu1 %v7555_v22  ;;  %v1066_v18 = vmax.f32 %v988_v11, 0.0  ;;  %v7573_v22 = vld [vmem:[%s10158_s4 + $0x288] ss:$16 sps:$4 sm:$0xff]  }
 0x18b   : > { %v881_v43 = vadd.f32 %v880_v39, %v8757_v49  ;;  %v882_v44 = vpop.f32.mrb[9].mxu0  ;;  %2055 = vmatprep.subr.bf16.mxu0 %v7560_v23  ;;  %2281 = vmatprep.subr.bf16.mxu1 %v7563_v28  ;;  %v1067_v23 = vmax.f32 %v990_v16, 0.0  ;;  %v7579_v39 = vld [vmem:[%s10158_s4 + $0x2a8] ss:$16 sps:$4 sm:$0xff]  }
 0x18c   : > { %v883_v52 = vadd.f32 %v882_v44, %v8760_v50  ;;  %v884_v53 = vpop.f32.mrb[10].mxu0  ;;  %1980 = vmatprep.mubr.bf16.mxu0 %v1121_v38  ;;  %2206 = vmatprep.mubr.bf16.mxu1 %v1121_v38  ;;  %v8857_v28 = vpack.c.bf16 %v1066_v18, %v1062_v10  ;;  %v993_v32 = vpop.f32.mrb[8].mxu1  ;;  %v7593_v10 = vld [vmem:[%s10158_s4 + $0x2ec] ss:$16 sps:$4 sm:$0xff]   ;;  %v7588_v18 = vld [vmem:[%s10158_s4 + $0x2e0] ss:$16 sps:$4 sm:$0xff]  }
 0x18d   : > { %v885_v56 = vadd.f32 %v884_v53, %v8757_v49  ;;  %v886_v57 = vpop.f32.mrb[11].mxu0  ;;  %1981 = vmatmul.mubr.bf16.gmra.mrb[36].mxu0 %v1120_v36  ;;  %2207 = vmatmul.mubr.bf16.gmra.mrb[36].mxu1 %v1120_v36  ;;  %v1068_v6 = vmax.f32 %v881_v43, 0.0  ;;  %v8860_v31 = vpack.c.bf16 %v1067_v23, %v1063_v15  ;;  %v994_v36 = vadd.f32 %v993_v32, %v8771_v3  ;;  %v995_v37 = vpop.f32.mrb[9].mxu1  ;;  %v7596_v23 = vld [vmem:[%s10158_s4 + $0x304] ss:$16 sps:$4 sm:$0xff]  }
 0x18e   : > { %v887_v63 = vadd.f32 %v886_v57, %v8760_v50  ;;  %2056 = vmatpush1.bf16.msra.mxu0 %v7558_v40  ;;  %2282 = vmatpush1.bf16.msra.mxu1 %v7561_v41  ;;  %v1069_v13 = vmax.f32 %v883_v52, 0.0  ;;  %v7584_v40 = vld [vmem:[%s10158_s4 + $0x2c4] ss:$16 sps:$4 sm:$0xff]   ;;  %v996_v41 = vadd.f32 %v995_v37, %v8780_v8  ;;  %v997_v42 = vpop.f32.mrb[10].mxu1 }
 0x18f   : > { %v1072_v7 = vmax.f32 %v885_v56, 0.0  ;;  %2057 = vmatprep.subr.bf16.mxu0 %v7566_v45  ;;  %2283 = vmatprep.subr.bf16.mxu1 %v7569_v47  ;;  %v7587_v45 = vld [vmem:[%s10158_s4 + $0x2cc] ss:$16 sps:$4 sm:$0xff]   ;;  %v1070_v47 = vmax.f32 %v994_v36, 0.0  ;;  %v998_v52 = vadd.f32 %v997_v42, %v8771_v3  ;;  %v999_v53 = vpop.f32.mrb[11].mxu1 }
 0x190   : > { %v1073_v14 = vmax.f32 %v887_v63, 0.0  ;;  %v1071_v57 = vmax.f32 %v996_v41, 0.0  ;;  %v7594_v42 = vld [vmem:[%s10158_s4 + $0x300] ss:$16 sps:$4 sm:$0xff]  }
 0x191   : > { %v1124_v17 = vpack.c.bf16 %v1072_v7, %v1068_v6  ;;  %v1074_v62 = vmax.f32 %v998_v52, 0.0  ;;  %v7602_v52 = vld [vmem:[%s10158_s4 + $0x324] ss:$16 sps:$4 sm:$0xff]  }
 0x192   : > { %v1125_v19 = vpack.c.bf16 %v1073_v14, %v1069_v13  ;;  %2058 = vmatpush1.bf16.msra.mxu0 %v7564_v59  ;;  %v890_v20 = vpop.f32.mrb[12].mxu0  ;;  %2284 = vmatpush1.bf16.msra.mxu1 %v7567_v1  ;;  %v1000_v59 = vadd.f32 %v999_v53, %v8780_v8  ;;  %v7605_v53 = vld [vmem:[%s10158_s4 + $0x32c] ss:$16 sps:$4 sm:$0xff]  }
 0x193   : > { %v891_v24 = vadd.f32 %v890_v20, %v8757_v49  ;;  %v892_v25 = vpop.f32.mrb[13].mxu0  ;;  %2059 = vmatprep.subr.bf16.mxu0 %v7572_v2  ;;  %2285 = vmatprep.subr.bf16.mxu1 %v7575_v9  ;;  %v7582_v2 = vld [vmem:[%s10158_s4 + $0x2c0] ss:$16 sps:$4 sm:$0xff]   ;;  %v7590_v9 = vld [vmem:[%s10158_s4 + $0x2e4] ss:$16 sps:$4 sm:$0xff]   ;;  %v8893_v11 = vpack.c.bf16 %v1074_v62, %v1070_v47 }
 0x194   : > { %v893_v29 = vadd.f32 %v892_v25, %v8760_v50  ;;  %v894_v30 = vpop.f32.mrb[14].mxu0  ;;  %1990 = vmatprep.mubr.bf16.mxu0 %v1125_v19  ;;  %2216 = vmatprep.mubr.bf16.mxu1 %v1125_v19  ;;  %v1075_v5 = vmax.f32 %v1000_v59, 0.0  ;;  %v1003_v15 = vpop.f32.mrb[12].mxu1 }
 0x195   : > { %v895_v33 = vadd.f32 %v894_v30, %v8757_v49  ;;  %v896_v34 = vpop.f32.mrb[15].mxu0  ;;  %1991 = vmatmul.mubr.bf16.gmra.mrb[40].mxu0 %v1124_v17  ;;  %2217 = vmatmul.mubr.bf16.gmra.mrb[40].mxu1 %v1124_v17  ;;  %v1076_v43 = vmax.f32 %v891_v24, 0.0  ;;  %v1004_v19 = vadd.f32 %v1003_v15, %v8771_v3  ;;  %v1005_v20 = vpop.f32.mrb[13].mxu1  ;;  %v7611_v15 = vld [vmem:[%s10158_s4 + $0x34c] ss:$16 sps:$4 sm:$0xff]  }
 0x196   : > { %v897_v38 = vadd.f32 %v896_v34, %v8760_v50  ;;  %2060 = vmatpush1.bf16.msra.mxu0 %v7570_v21  ;;  %2286 = vmatpush1.bf16.msra.mxu1 %v7573_v22  ;;  %v1077_v55 = vmax.f32 %v893_v29, 0.0  ;;  %v8896_v14 = vpack.c.bf16 %v1075_v5, %v1071_v57  ;;  %v7591_v22 = vld [vmem:[%s10158_s4 + $0x2e8] ss:$16 sps:$4 sm:$0xff]   ;;  %v1006_v24 = vadd.f32 %v1005_v20, %v8780_v8  ;;  %v1007_v25 = vpop.f32.mrb[14].mxu1  ;;  %v7599_v29 = vld [vmem:[%s10158_s4 + $0x30c] ss:$16 sps:$4 sm:$0xff]  }
 0x197   : > { %v1080_v44 = vmax.f32 %v895_v33, 0.0  ;;  %2061 = vmatprep.subr.bf16.mxu0 %v7578_v26  ;;  %2287 = vmatprep.subr.bf16.mxu1 %v7581_v27  ;;  %v1078_v30 = vmax.f32 %v1004_v19, 0.0  ;;  %v1008_v32 = vadd.f32 %v1007_v25, %v8771_v3  ;;  %v1009_v33 = vpop.f32.mrb[15].mxu1 }
 0x198   : > { %v1081_v56 = vmax.f32 %v897_v38, 0.0  ;;  %v1079_v36 = vmax.f32 %v1006_v24, 0.0  ;;  %v1010_v37 = vadd.f32 %v1009_v33, %v8780_v8 }
 0x199   : > { %v1128_v61 = vpack.c.bf16 %v1080_v44, %v1076_v43  ;;  %v7597_v43 = vld [vmem:[%s10158_s4 + $0x308] ss:$16 sps:$4 sm:$0xff]  }
 0x19a   : > { %v1129_v63 = vpack.c.bf16 %v1081_v56, %v1077_v55  ;;  %2062 = vmatpush1.bf16.msra.mxu0 %v7576_v35  ;;  %v900_v1 = vpop.f32.mrb[16].mxu0  ;;  %2288 = vmatpush1.bf16.msra.mxu1 %v7579_v39  ;;  %v1082_v39 = vmax.f32 %v1008_v32, 0.0  ;;  %v1083_v44 = vmax.f32 %v1010_v37, 0.0 }
 0x19b   : > { %v901_v6 = vadd.f32 %v900_v1, %v8757_v49  ;;  %v902_v7 = vpop.f32.mrb[17].mxu0  ;;  %2063 = vmatprep.subr.bf16.mxu0 %v7584_v40  ;;  %2289 = vmatprep.subr.bf16.mxu1 %v7587_v45  ;;  %v7600_v1 = vld [vmem:[%s10158_s4 + $0x320] ss:$16 sps:$4 sm:$0xff]  }
 0x19c   : > { %v903_v12 = vadd.f32 %v902_v7, %v8760_v50  ;;  %v904_v13 = vpop.f32.mrb[18].mxu0  ;;  %2000 = vmatprep.mubr.bf16.mxu0 %v1129_v63  ;;  %2226 = vmatprep.mubr.bf16.mxu1 %v1129_v63  ;;  %v8929_v55 = vpack.c.bf16 %v1082_v39, %v1078_v30  ;;  %v8932_v59 = vpack.c.bf16 %v1083_v44, %v1079_v36  ;;  %v7608_v7 = vld [vmem:[%s10158_s4 + $0x344] ss:$16 sps:$4 sm:$0xff]  }
 0x19d   : > { %v905_v16 = vadd.f32 %v904_v13, %v8757_v49  ;;  %v906_v17 = vpop.f32.mrb[19].mxu0  ;;  %2001 = vmatmul.mubr.bf16.gmra.mrb[44].mxu0 %v1128_v61  ;;  %2227 = vmatmul.mubr.bf16.gmra.mrb[44].mxu1 %v1128_v61  ;;  %v1084_v26 = vmax.f32 %v901_v6, 0.0  ;;  %v1013_v61 = vpop.f32.mrb[16].mxu1  ;;  %v7603_v6 = vld [vmem:[%s10158_s4 + $0x328] ss:$16 sps:$4 sm:$0xff]  }
 0x19e   : > { %v907_v21 = vadd.f32 %v906_v17, %v8760_v50  ;;  %2064 = vmatpush1.bf16.msra.mxu0 %v7582_v2  ;;  %2290 = vmatpush1.bf16.msra.mxu1 %v7585_v4  ;;  %v1085_v34 = vmax.f32 %v903_v12, 0.0  ;;  %v1014_v2 = vadd.f32 %v1013_v61, %v8771_v3  ;;  %v1015_v4 = vpop.f32.mrb[17].mxu1 }
 0x19f   : > { %v1088_v27 = vmax.f32 %v905_v16, 0.0  ;;  %2065 = vmatprep.subr.bf16.mxu0 %v7590_v9  ;;  %2291 = vmatprep.subr.bf16.mxu1 %v7593_v10  ;;  %v1016_v9 = vadd.f32 %v1015_v4, %v8780_v8  ;;  %v1017_v10 = vpop.f32.mrb[18].mxu1 }
 0x1a0   : > { %v1089_v35 = vmax.f32 %v907_v21, 0.0  ;;  %v1086_v16 = vmax.f32 %v1014_v2, 0.0  ;;  %v1018_v17 = vadd.f32 %v1017_v10, %v8771_v3 }
 0x1a1   : > { %v1132_v38 = vpack.c.bf16 %v1088_v27, %v1084_v26  ;;  %v1087_v21 = vmax.f32 %v1016_v9, 0.0  ;;  %v7606_v27 = vld [vmem:[%s10158_s4 + $0x340] ss:$16 sps:$4 sm:$0xff]  }
 0x1a2   : > { %v1133_v40 = vpack.c.bf16 %v1089_v35, %v1085_v34  ;;  %2066 = vmatpush1.bf16.msra.mxu0 %v7588_v18  ;;  %v910_v41 = vpop.f32.mrb[20].mxu0  ;;  %2292 = vmatpush1.bf16.msra.mxu1 %v7591_v22  ;;  %v1019_v18 = vpop.f32.mrb[19].mxu1  ;;  %v1090_v24 = vmax.f32 %v1018_v17, 0.0  ;;  %v7614_v34 = vld [vmem:[%s10158_s4 + $0x364] ss:$16 sps:$4 sm:$0xff]  }
 0x1a3   : > { %v911_v45 = vadd.f32 %v910_v41, %v8757_v49  ;;  %v912_v47 = vpop.f32.mrb[21].mxu0  ;;  %2067 = vmatprep.subr.bf16.mxu0 %v7596_v23  ;;  %2293 = vmatprep.subr.bf16.mxu1 %v7599_v29  ;;  %v1020_v22 = vadd.f32 %v1019_v18, %v8780_v8  ;;  %v7609_v29 = vld [vmem:[%s10158_s4 + $0x348] ss:$16 sps:$4 sm:$0xff]   ;;  %v7617_v35 = vld [vmem:[%s10158_s4 + $0x36c] ss:$16 sps:$4 sm:$0xff]  }
 0x1a4   : > { %v913_v56 = vadd.f32 %v912_v47, %v8760_v50  ;;  %v914_v57 = vpop.f32.mrb[22].mxu0  ;;  %2010 = vmatprep.mubr.bf16.mxu0 %v1133_v40  ;;  %2236 = vmatprep.mubr.bf16.mxu1 %v1133_v40  ;;  %v8965_v36 = vpack.c.bf16 %v1090_v24, %v1086_v16  ;;  %v1023_v40 = vpop.f32.mrb[20].mxu1  ;;  %v7618_v16 = vld [vmem:[%s10158_s4 + $0x380] ss:$16 sps:$4 sm:$0xff]   ;;  %v7621_v17 = vld [vmem:[%s10158_s4 + $0x388] ss:$16 sps:$4 sm:$0xff]  }
 0x1a5   : > { %v915_v62 = vadd.f32 %v914_v57, %v8757_v49  ;;  %v916_v63 = vpop.f32.mrb[23].mxu0  ;;  %2011 = vmatmul.mubr.bf16.gmra.mrb[48].mxu0 %v1132_v38  ;;  %2237 = vmatmul.mubr.bf16.gmra.mrb[48].mxu1 %v1132_v38  ;;  %v1092_v12 = vmax.f32 %v911_v45, 0.0  ;;  %v1091_v30 = vmax.f32 %v1020_v22, 0.0  ;;  %v1024_v44 = vadd.f32 %v1023_v40, %v8771_v3  ;;  %v1025_v45 = vpop.f32.mrb[21].mxu1  ;;  %v7629_v22 = vld [vmem:[%s10158_s4 + $0x3ac] ss:$16 sps:$4 sm:$0xff]  }
 0x1a6   : > { %v917_v5 = vadd.f32 %v916_v63, %v8760_v50  ;;  %2068 = vmatpush1.bf16.msra.mxu0 %v7594_v42  ;;  %2294 = vmatpush1.bf16.msra.mxu1 %v7597_v43  ;;  %v1093_v19 = vmax.f32 %v913_v56, 0.0  ;;  %v7612_v43 = vld [vmem:[%s10158_s4 + $0x360] ss:$16 sps:$4 sm:$0xff]   ;;  %v1026_v56 = vadd.f32 %v1025_v45, %v8780_v8  ;;  %v1027_v57 = vpop.f32.mrb[22].mxu1  ;;  %v7623_v63 = vld [vmem:[%s10158_s4 + $0x38c] ss:$16 sps:$4 sm:$0xff]  }
 0x1a7   : > { %v1096_v13 = vmax.f32 %v915_v62, 0.0  ;;  %2069 = vmatprep.subr.bf16.mxu0 %v7602_v52  ;;  %2295 = vmatprep.subr.bf16.mxu1 %v7605_v53  ;;  %v8968_v39 = vpack.c.bf16 %v1091_v30, %v1087_v21  ;;  %v7615_v52 = vld [vmem:[%s10158_s4 + $0x368] ss:$16 sps:$4 sm:$0xff]   ;;  %v7620_v53 = vld [vmem:[%s10158_s4 + $0x384] ss:$16 sps:$4 sm:$0xff]   ;;  %v1028_v2 = vadd.f32 %v1027_v57, %v8771_v3  ;;  %v1029_v4 = vpop.f32.mrb[23].mxu1 }
 0x1a8   : > { %v1097_v20 = vmax.f32 %v917_v5, 0.0  ;;  %v1030_v9 = vadd.f32 %v1029_v4, %v8780_v8  ;;  %v7626_v21 = vld [vmem:[%s10158_s4 + $0x3a4] ss:$16 sps:$4 sm:$0xff]  }
 0x1a9   : > { %v1136_v23 = vpack.c.bf16 %v1096_v13, %v1092_v12  ;;  %v1098_v12 = vmax.f32 %v1028_v2, 0.0  ;;  %v7638_v4 = vld [vmem:[%s10158_s4 + $0x3e4] ss:$16 sps:$4 sm:$0xff]  }
 0x1aa   : > { %v1137_v25 = vpack.c.bf16 %v1097_v20, %v1093_v19  ;;  %2070 = vmatpush1.bf16.msra.mxu0 %v7600_v1  ;;  %v920_v26 = vpop.f32.mrb[24].mxu0  ;;  %2296 = vmatpush1.bf16.msra.mxu1 %v7603_v6  ;;  %v1094_v1 = vmax.f32 %v1024_v44, 0.0  ;;  %v1099_v18 = vmax.f32 %v1030_v9, 0.0 }
 0x1ab   : > { %v921_v32 = vadd.f32 %v920_v26, %v8757_v49  ;;  %v922_v33 = vpop.f32.mrb[25].mxu0  ;;  %2071 = vmatprep.subr.bf16.mxu0 %v7608_v7  ;;  %2297 = vmatprep.subr.bf16.mxu1 %v7611_v15  ;;  %v1095_v7 = vmax.f32 %v1026_v56, 0.0 }
 0x1ac   : > { %v923_v37 = vadd.f32 %v922_v33, %v8760_v50  ;;  %v924_v38 = vpop.f32.mrb[26].mxu0  ;;  %2020 = vmatprep.mubr.bf16.mxu0 %v1137_v25  ;;  %2246 = vmatprep.mubr.bf16.mxu1 %v1137_v25 }
 0x1ad   : > { %v925_v41 = vadd.f32 %v924_v38, %v8757_v49  ;;  %v926_v42 = vpop.f32.mrb[27].mxu0  ;;  %2021 = vmatmul.mubr.bf16.gmra.mrb[52].mxu0 %v1136_v23  ;;  %2247 = vmatmul.mubr.bf16.gmra.mrb[52].mxu1 %v1136_v23  ;;  %v1100_v61 = vmax.f32 %v921_v32, 0.0  ;;  %v9001_v23 = vpack.c.bf16 %v1098_v12, %v1094_v1  ;;  %v9004_v26 = vpack.c.bf16 %v1099_v18, %v1095_v7  ;;  %v7624_v32 = vld [vmem:[%s10158_s4 + $0x3a0] ss:$16 sps:$4 sm:$0xff]   ;;  %v7633_v1 = vld [vmem:[%s10158_s4 + $0x3c8] ss:$16 sps:$4 sm:$0xff]  }
 0x1ae   : > { %v927_v47 = vadd.f32 %v926_v42, %v8760_v50  ;;  %2072 = vmatpush1.bf16.msra.mxu0 %v7606_v27  ;;  %2298 = vmatpush1.bf16.msra.mxu1 %v7609_v29  ;;  %v1101_v5 = vmax.f32 %v923_v37, 0.0  ;;  %v1033_v27 = vpop.f32.mrb[24].mxu1  ;;  %v7627_v37 = vld [vmem:[%s10158_s4 + $0x3a8] ss:$16 sps:$4 sm:$0xff]  }
 0x1af   : > { %v1104_v62 = vmax.f32 %v925_v41, 0.0  ;;  %2073 = vmatprep.subr.bf16.mxu0 %v7614_v34  ;;  %2299 = vmatprep.subr.bf16.mxu1 %v7617_v35  ;;  %v1034_v33 = vadd.f32 %v1033_v27, %v8771_v3  ;;  %v1035_v34 = vpop.f32.mrb[25].mxu1 }
 0x1b0   : > { %v1105_v6 = vmax.f32 %v927_v47, 0.0  ;;  %v1036_v38 = vadd.f32 %v1035_v34, %v8780_v8  ;;  %v1037_v40 = vpop.f32.mrb[26].mxu1  ;;  %v7646_v34 = vld [vmem:[#allocation5 + $0x48] sm:$0xff]  }
 0x1b1   : > { %v1140_v10 = vpack.c.bf16 %v1104_v62, %v1100_v61  ;;  %v1038_v44 = vadd.f32 %v1037_v40, %v8771_v3  ;;  %v1039_v45 = vpop.f32.mrb[27].mxu1  ;;  %v7653_v40 = vld [vmem:[#allocation5 + $0x90] sm:$0xff]  }
 0x1b2   : > { %v1141_v13 = vpack.c.bf16 %v1105_v6, %v1101_v5  ;;  %2074 = vmatpush1.bf16.msra.mxu0 %v7612_v43  ;;  %v930_v15 = vpop.f32.mrb[28].mxu0  ;;  %2300 = vmatpush1.bf16.msra.mxu1 %v7615_v52  ;;  %v1102_v43 = vmax.f32 %v1034_v33, 0.0  ;;  %v1040_v56 = vadd.f32 %v1039_v45, %v8780_v8  ;;  %v7641_v6 = vld [vmem:[%s10158_s4 + $0x3ec] ss:$16 sps:$4 sm:$0xff]   ;;  %v7645_v33 = vld [vmem:[#allocation5 + $0x80] sm:$0xff]  }
 0x1b3   : > { %v931_v19 = vadd.f32 %v930_v15, %v8757_v49  ;;  %v932_v20 = vpop.f32.mrb[29].mxu0  ;;  %2075 = vmatprep.subr.bf16.mxu0 %v7620_v53  ;;  %2301 = vmatprep.subr.bf16.mxu1 %v7623_v63  ;;  %v1103_v53 = vmax.f32 %v1036_v38, 0.0  ;;  %v1106_v61 = vmax.f32 %v1038_v44, 0.0  ;;  %v7630_v63 = vld [vmem:[%s10158_s4 + $0x3c0] ss:$16 sps:$4 sm:$0xff]  }
 0x1b4   : > { %v933_v24 = vadd.f32 %v932_v20, %v8760_v50  ;;  %v934_v25 = vpop.f32.mrb[30].mxu0  ;;  %2030 = vmatprep.mubr.bf16.mxu0 %v1141_v13  ;;  %2256 = vmatprep.mubr.bf16.mxu1 %v1141_v13  ;;  %v1107_v2 = vmax.f32 %v1040_v56, 0.0  ;;  %v1043_v9 = vpop.f32.mrb[28].mxu1  ;;  %v7636_v13 = vld [vmem:[%s10158_s4 + $0x3e0] ss:$16 sps:$4 sm:$0xff]  }
 0x1b5   : > { %v935_v29 = vadd.f32 %v934_v25, %v8757_v49  ;;  %v936_v30 = vpop.f32.mrb[31].mxu0  ;;  %2031 = vmatmul.mubr.bf16.gmra.mrb[56].mxu0 %v1140_v10  ;;  %2257 = vmatmul.mubr.bf16.gmra.mrb[56].mxu1 %v1140_v10  ;;  %v7632_v49 = vld [vmem:[%s10158_s4 + $0x3c4] ss:$16 sps:$4 sm:$0xff]   ;;  %v1108_v41 = vmax.f32 %v931_v19, 0.0  ;;  %v9033_v5 = vpack.c.bf16 %v1106_v61, %v1102_v43  ;;  %v1044_v10 = vadd.f32 %v1043_v9, %v8771_v3  ;;  %v1045_v12 = vpop.f32.mrb[29].mxu1 }
 0x1b6   : > { %v937_v35 = vadd.f32 %v936_v30, %v8760_v50  ;;  %2076 = vmatpush1.bf16.msra.mxu0 %v7618_v16  ;;  %2302 = vmatpush1.bf16.msra.mxu1 %v7621_v17  ;;  %v7635_v50 = vld [vmem:[%s10158_s4 + $0x3cc] ss:$16 sps:$4 sm:$0xff]   ;;  %v1109_v47 = vmax.f32 %v933_v24, 0.0  ;;  %v9038_v7 = vpack.c.bf16 %v1107_v2, %v1103_v53  ;;  %v7639_v15 = vld [vmem:[%s10158_s4 + $0x3e8] ss:$16 sps:$4 sm:$0xff]   ;;  %v1046_v16 = vadd.f32 %v1045_v12, %v8780_v8  ;;  %v1047_v17 = vpop.f32.mrb[30].mxu1 }
 0x1b7   : > { %v1112_v42 = vmax.f32 %v935_v29, 0.0  ;;  %2077 = vmatprep.subr.bf16.mxu0 %v7626_v21  ;;  %2303 = vmatprep.subr.bf16.mxu1 %v7629_v22  ;;  %v1110_v18 = vmax.f32 %v1044_v10, 0.0  ;;  %v1048_v19 = vadd.f32 %v1047_v17, %v8771_v3  ;;  %v1049_v20 = vpop.f32.mrb[31].mxu1  ;;  %v7642_v21 = vld [vmem:[#allocation5 + $0x40] sm:$0xff]   ;;  %v7651_v38 = vld [vmem:[#allocation5 + $0x10] sm:$0xff]  }
 0x1b8   : > { %v1113_v52 = vmax.f32 %v937_v35, 0.0  ;;  %v7644_v22 = vld [vmem:[#allocation5 + $0xc0] sm:$0xff]   ;;  %v1111_v24 = vmax.f32 %v1046_v16, 0.0  ;;  %v1050_v25 = vadd.f32 %v1049_v20, %v8780_v8  ;;  %v7648_v35 = vld [vmem:[#allocation5 + $0xc8] sm:$0xff]   ;;  %v7666_v53 = vld [vmem:[#allocation5 + $0x70] sm:$0xff]  }
 0x1b9   : > { %v1144_v57 = vpack.c.bf16 %v1112_v42, %v1108_v41  ;;  %v1114_v27 = vmax.f32 %v1048_v19, 0.0  ;;  %v7647_v8 = vld [vmem:[#allocation5 + $0x8] sm:$0xff]   ;;  %v7654_v41 = vld [vmem:[#allocation5 + $0x58] sm:$0xff]   ;;  %v7660_v43 = vld [vmem:[#allocation5 + $0xe0] sm:$0xff]  }
 0x1ba   : > { %v1145_v62 = vpack.c.bf16 %v1113_v52, %v1109_v47  ;;  %2078 = vmatpush1.bf16.msra.mxu0 %v7624_v32  ;;  %2304 = vmatpush1.bf16.msra.mxu1 %v7627_v37  ;;  %v1115_v29 = vmax.f32 %v1050_v25, 0.0  ;;  %v7643_v32 = vld [vmem:[#allocation5] sm:$0xff]   ;;  %v7650_v37 = vld [vmem:[#allocation5 + $0x50] sm:$0xff]   ;;  %v7657_v42 = vld [vmem:[#allocation5 + $0x98] sm:$0xff]  }
 0x1bb   : > { %2079 = vmatprep.subr.bf16.mxu0 %v7632_v49  ;;  %2305 = vmatprep.subr.bf16.mxu1 %v7635_v50  ;;  %v9052_v30 = vpack.c.bf16 %v1114_v27, %v1110_v18  ;;  %v7652_v49 = vld [vmem:[#allocation5 + $0xd0] sm:$0xff]   ;;  %v7658_v50 = vld [vmem:[#allocation5 + $0x60] sm:$0xff]   ;;  %v7662_v47 = vld [vmem:[#allocation5 + $0x68] sm:$0xff]  }
 0x1bc   : > { %2040 = vmatprep.mubr.bf16.mxu0 %v1145_v62  ;;  %2266 = vmatprep.mubr.bf16.mxu1 %v1145_v62  ;;  %v9054_v3 = vpack.c.bf16 %v1115_v29, %v1111_v24  ;;  %v7659_v44 = vld [vmem:[#allocation5 + $0x20] sm:$0xff]   ;;  %v7665_v52 = vld [vmem:[#allocation5 + $0xa8] sm:$0xff]   ;;  %v7668_v56 = vld [vmem:[#allocation5 + $0xf0] sm:$0xff]  }
 0x1bd   : > { %2041 = vmatmul.mubr.bf16.gmra.mrb[60].mxu0 %v1144_v57  ;;  %2267 = vmatmul.mubr.bf16.gmra.mrb[60].mxu1 %v1144_v57  ;;  %v7661_v45 = vld [vmem:[#allocation5 + $0xa0] sm:$0xff]   ;;  %v7667_v57 = vld [vmem:[#allocation5 + $0x30] sm:$0xff]  }
 0x1be   : > { %2080 = vmatpush1.bf16.msra.mxu0 %v7630_v63  ;;  %2306 = vmatpush1.bf16.msra.mxu1 %v7633_v1  ;;  %v7669_v61 = vld [vmem:[#allocation5 + $0xb0] sm:$0xff]  }
 0x1bf   : > { %2081 = vmatprep.subr.bf16.mxu0 %v7638_v4  ;;  %2083 = vmatprep.mubr.bf16.mxu0 %v8824_v54 }
 0x1c0   : > { %2307 = vmatprep.subr.bf16.mxu1 %v7641_v6  ;;  %2309 = vmatprep.mubr.bf16.mxu1 %v8824_v54  ;;  %v7649_v54 = vld [vmem:[#allocation5 + $0x88] sm:$0xff]  }
 0x1c2   : > { %2082 = vmatpush1.bf16.msra.mxu0 %v7636_v13  ;;  %2308 = vmatpush1.bf16.msra.mxu1 %v7639_v15 }
 0x1c3   : > { %6748 = vmatprep.subr.bf16.mxu0 %v7642_v21  ;;  %6812 = vmatprep.subr.bf16.mxu1 %v7644_v22 }
 0x1c5   : > { %2084 = vmatmul.mubr.bf16.vlgmr.msra.gmra.mrb[32].mxu0 %v8821_v51  ;;  %2310 = vmatmul.mubr.bf16.vlgmr.msra.gmra.mrb[32].mxu1 %v8821_v51  ;;  %v7656_v51 = vld [vmem:[#allocation5 + $0xd8] sm:$0xff]  }
 0x1c6   : > { %2093 = vmatprep.mubr.bf16.mxu0 %v8860_v31  ;;  %2319 = vmatprep.mubr.bf16.mxu1 %v8860_v31  ;;  %v7655_v31 = vld [vmem:[#allocation5 + $0x18] sm:$0xff]  }
 0x1c7   : > { %6749 = vmatpush3.bf16.msra.mxu0 %v7643_v32  ;;  %6813 = vmatpush3.bf16.msra.mxu1 %v7645_v33 }
 0x1c8   : > { %6750 = vmatprep.subr.bf16.mxu0 %v7646_v34  ;;  %6814 = vmatprep.subr.bf16.mxu1 %v7648_v35 }
 0x1cb   : > { %6751 = vmatpush3.bf16.msra.mxu0 %v7647_v8  ;;  %6815 = vmatpush3.bf16.msra.mxu1 %v7649_v54 }
 0x1cc   : > { %6752 = vmatprep.subr.bf16.mxu0 %v7650_v37  ;;  %6816 = vmatprep.subr.bf16.mxu1 %v7652_v49 }
 0x1cd   : > { %2094 = vmatmul.mubr.bf16.gmra.mrb[36].mxu0 %v8857_v28  ;;  %2320 = vmatmul.mubr.bf16.gmra.mrb[36].mxu1 %v8857_v28  ;;  %v7664_v28 = vld [vmem:[#allocation5 + $0xe8] sm:$0xff]  }
 0x1ce   : > { %2103 = vmatprep.mubr.bf16.mxu0 %v8896_v14  ;;  %2329 = vmatprep.mubr.bf16.mxu1 %v8896_v14  ;;  %v7663_v14 = vld [vmem:[#allocation5 + $0x28] sm:$0xff]  }
 0x1cf   : > { %6753 = vmatpush3.bf16.msra.mxu0 %v7651_v38  ;;  %6817 = vmatpush3.bf16.msra.mxu1 %v7653_v40 }
 0x1d0   : > { %6754 = vmatprep.subr.bf16.mxu0 %v7654_v41  ;;  %6818 = vmatprep.subr.bf16.mxu1 %v7656_v51  ;;  %v7675_v51 = vld [vmem:[%s10162_s8 + $0x8] sm:$0xff]  }
 0x1d3   : > { %6755 = vmatpush3.bf16.msra.mxu0 %v7655_v31  ;;  %6819 = vmatpush3.bf16.msra.mxu1 %v7657_v42 }
 0x1d4   : > { %6756 = vmatprep.subr.bf16.mxu0 %v7658_v50  ;;  %6820 = vmatprep.subr.bf16.mxu1 %v7660_v43 }
 0x1d5   : > { %2104 = vmatmul.mubr.bf16.gmra.mrb[40].mxu0 %v8893_v11  ;;  %2330 = vmatmul.mubr.bf16.gmra.mrb[40].mxu1 %v8893_v11  ;;  %v7670_v11 = vld [vmem:[#allocation5 + $0x78] sm:$0xff]  }
 0x1d6   : > { %2113 = vmatprep.mubr.bf16.mxu0 %v8932_v59  ;;  %2339 = vmatprep.mubr.bf16.mxu1 %v8932_v59  ;;  %v7671_v59 = vld [vmem:[#allocation5 + $0x38] sm:$0xff]  }
 0x1d7   : > { %6757 = vmatpush3.bf16.msra.mxu0 %v7659_v44  ;;  %6821 = vmatpush3.bf16.msra.mxu1 %v7661_v45 }
 0x1d8   : > { %6758 = vmatprep.subr.bf16.mxu0 %v7662_v47  ;;  %6822 = vmatprep.subr.bf16.mxu1 %v7664_v28 }
 0x1db   : > { %6759 = vmatpush3.bf16.msra.mxu0 %v7663_v14  ;;  %6823 = vmatpush3.bf16.msra.mxu1 %v7665_v52 }
 0x1dc   : > { %6760 = vmatprep.subr.bf16.mxu0 %v7666_v53  ;;  %6824 = vmatprep.subr.bf16.mxu1 %v7668_v56 }
 0x1dd   : > { %2114 = vmatmul.mubr.bf16.gmra.mrb[44].mxu0 %v8929_v55  ;;  %2340 = vmatmul.mubr.bf16.gmra.mrb[44].mxu1 %v8929_v55  ;;  %v7672_v55 = vld [vmem:[#allocation5 + $0xf8] sm:$0xff]  }
 0x1de   : > { %2123 = vmatprep.mubr.bf16.mxu0 %v8968_v39  ;;  %2349 = vmatprep.mubr.bf16.mxu1 %v8968_v39  ;;  %v7674_v39 = vld [vmem:[%s10162_s8] sm:$0xff]  }
 0x1df   : > { %6761 = vmatpush3.bf16.msra.mxu0 %v7667_v57  ;;  %6825 = vmatpush3.bf16.msra.mxu1 %v7669_v61 }
 0x1e0   : > { %6762 = vmatprep.subr.bf16.mxu0 %v7670_v11  ;;  %6826 = vmatprep.subr.bf16.mxu1 %v7672_v55  ;;  %v7676_v11 = vld [vmem:[%s10162_s8 + $0x10] sm:$0xff]  }
 0x1e3   : > { %6763 = vmatpush3.bf16.msra.mxu0 %v7671_v59 }
 0x1e4   : > { %7030 = vmatprep.subr.bf16.mxu0 %v7674_v39 }
 0x1e5   : > { %2124 = vmatmul.mubr.bf16.gmra.mrb[48].mxu0 %v8965_v36  ;;  %2350 = vmatmul.mubr.bf16.gmra.mrb[48].mxu1 %v8965_v36  ;;  %v7673_v36 = vld [vmem:[#allocation5 + $0xb8] sm:$0xff]  }
 0x1e6   : > { %2133 = vmatprep.mubr.bf16.mxu0 %v9004_v26  ;;  %2359 = vmatprep.mubr.bf16.mxu1 %v9004_v26 }
 0x1e7   : > { %6827 = vmatpush3.bf16.msra.mxu1 %v7673_v36 }
 0x1ed   : > { %2134 = vmatmul.mubr.bf16.gmra.mrb[52].mxu0 %v9001_v23  ;;  %2360 = vmatmul.mubr.bf16.gmra.mrb[52].mxu1 %v9001_v23  ;;  %v1276_v23 = vld [vmem:[%s10159_s5] sm:$0xf] }
 0x1ee   : > { %2143 = vmatprep.mubr.bf16.mxu0 %v9038_v7  ;;  %2369 = vmatprep.mubr.bf16.mxu1 %v9038_v7  ;;  %v9093_v26 = vrot.slane %v1276_v23, %v8749_v46  ;;  %v9096_v62 = vrot.slane %v1276_v23, %v8765_v58  ;;  %v9099_v63 = vrot.slane %v1276_v23, %v8754_v48 }
 0x1ef   : > { %v9102_v1 = vrot.slane %v1276_v23, %v8768_v60 }
 0x1f5   : > { %2144 = vmatmul.mubr.bf16.gmra.mrb[56].mxu0 %v9033_v5  ;;  %2370 = vmatmul.mubr.bf16.gmra.mrb[56].mxu1 %v9033_v5 }
 0x1f6   : > { %2153 = vmatprep.mubr.bf16.mxu0 %v9054_v3  ;;  %2379 = vmatprep.mubr.bf16.mxu1 %v9054_v3 }
 0x1fd   : > { %2154 = vmatmul.mubr.bf16.gmra.mrb[60].mxu0 %v9052_v30  ;;  %2380 = vmatmul.mubr.bf16.gmra.mrb[60].mxu1 %v9052_v30 }
 0x298   : > { %v2085_v2 = vpop.f32.mrb[32].mxu0  ;;  %v2311_v4 = vpop.f32.mrb[32].mxu1 }
 0x299   : > { %v7082_v5 = vadd.f32 %v2085_v2, %v9093_v26  ;;  %v7114_v6 = vadd.f32 %v2311_v4, %v9096_v62  ;;  %v2087_v7 = vpop.f32.mrb[33].mxu0  ;;  %v2313_v9 = vpop.f32.mrb[33].mxu1 }
 0x29a   : > { %v7083_v10 = vadd.f32 %v2087_v7, %v9099_v63  ;;  %v7115_v12 = vadd.f32 %v2313_v9, %v9102_v1  ;;  %v2089_v13 = vpop.f32.mrb[34].mxu0  ;;  %v2315_v15 = vpop.f32.mrb[34].mxu1 }
 0x29b   : > { %v7084_v16 = vadd.f32 %v2089_v13, %v9093_v26  ;;  %v7116_v17 = vadd.f32 %v2315_v15, %v9096_v62  ;;  %v2091_v18 = vpop.f32.mrb[35].mxu0  ;;  %v2317_v19 = vpop.f32.mrb[35].mxu1  ;;  %v2390_v22 = vmax.f32 %v7082_v5, 0.0  ;;  %v2392_v24 = vmax.f32 %v7114_v6, 0.0  ;;  %v7677_v15 = vld [vmem:[%s10162_s8 + $0x18] sm:$0xff]  }
 0x29c   : > { %v7085_v20 = vadd.f32 %v2091_v18, %v9099_v63  ;;  %v7117_v21 = vadd.f32 %v2317_v19, %v9102_v1  ;;  %v2391_v29 = vmax.f32 %v7083_v10, 0.0  ;;  %v2393_v30 = vmax.f32 %v7115_v12, 0.0 }
 0x29d   : > { %v2394_v25 = vmax.f32 %v7084_v16, 0.0  ;;  %v2396_v27 = vmax.f32 %v7116_v17, 0.0 }
 0x29e   : > { %v2395_v32 = vmax.f32 %v7085_v20, 0.0  ;;  %v2397_v33 = vmax.f32 %v7117_v21, 0.0 }
 0x29f   : > { %v2454_v3 = vpack.c.bf16 %v2394_v25, %v2390_v22  ;;  %v2456_v34 = vpack.c.bf16 %v2396_v27, %v2392_v24 }
 0x2a0   : > { %v2455_v35 = vpack.c.bf16 %v2395_v32, %v2391_v29  ;;  %v2457_v8 = vpack.c.bf16 %v2397_v33, %v2393_v30  ;;  %v2095_v54 = vpop.f32.mrb[36].mxu0  ;;  %v2321_v37 = vpop.f32.mrb[36].mxu1 }
 0x2a1   : > { %v7086_v49 = vadd.f32 %v2095_v54, %v9093_v26  ;;  %v7118_v38 = vadd.f32 %v2321_v37, %v9096_v62  ;;  %v2097_v40 = vpop.f32.mrb[37].mxu0  ;;  %v2323_v41 = vpop.f32.mrb[37].mxu1 }
 0x2a2   : > { %v7087_v31 = vadd.f32 %v2097_v40, %v9099_v63  ;;  %v7119_v42 = vadd.f32 %v2323_v41, %v9102_v1  ;;  %v2099_v50 = vpop.f32.mrb[38].mxu0  ;;  %v2325_v43 = vpop.f32.mrb[38].mxu1  ;;  %2781 = vmatprep.mubr.bf16.mxu0 %v2455_v35  ;;  %2878 = vmatprep.mubr.bf16.mxu1 %v2457_v8 }
 0x2a3   : > { %v7088_v44 = vadd.f32 %v2099_v50, %v9093_v26  ;;  %v7120_v45 = vadd.f32 %v2325_v43, %v9096_v62  ;;  %v2101_v47 = vpop.f32.mrb[39].mxu0  ;;  %v2327_v28 = vpop.f32.mrb[39].mxu1  ;;  %2782 = vmatmul.mubr.bf16.vlgmr.msra.gmra.mrb[64].mxu0 %v2454_v3  ;;  %2879 = vmatmul.mubr.bf16.vlgmr.msra.gmra.mrb[64].mxu1 %v2456_v34  ;;  %v2398_v53 = vmax.f32 %v7086_v49, 0.0  ;;  %v2400_v56 = vmax.f32 %v7118_v38, 0.0  ;;  %v7678_v3 = vld [vmem:[%s10162_s8 + $0x20] sm:$0xff]  }
 0x2a4   : > { %v7089_v14 = vadd.f32 %v2101_v47, %v9099_v63  ;;  %v7121_v52 = vadd.f32 %v2327_v28, %v9102_v1  ;;  %7031 = vmatpush3.bf16.msra.mxu0 %v7674_v39  ;;  %v2399_v55 = vmax.f32 %v7087_v31, 0.0  ;;  %v2401_v59 = vmax.f32 %v7119_v42, 0.0 }
 0x2a5   : > { %v2402_v57 = vmax.f32 %v7088_v44, 0.0  ;;  %v2404_v61 = vmax.f32 %v7120_v45, 0.0  ;;  %7032 = vmatprep.subr.bf16.mxu0 %v7675_v51  ;;  %v7679_v44 = vld [vmem:[%s10162_s8 + $0x28] sm:$0xff]  }
 0x2a6   : > { %v2403_v36 = vmax.f32 %v7089_v14, 0.0  ;;  %v2405_v23 = vmax.f32 %v7121_v52, 0.0 }
 0x2a7   : > { %v2458_v2 = vpack.c.bf16 %v2402_v57, %v2398_v53  ;;  %v2460_v4 = vpack.c.bf16 %v2404_v61, %v2400_v56 }
 0x2a8   : > { %v2459_v5 = vpack.c.bf16 %v2403_v36, %v2399_v55  ;;  %v2461_v6 = vpack.c.bf16 %v2405_v23, %v2401_v59  ;;  %v2105_v7 = vpop.f32.mrb[40].mxu0  ;;  %v2331_v9 = vpop.f32.mrb[40].mxu1  ;;  %7033 = vmatpush3.bf16.msra.mxu0 %v7675_v51 }
 0x2a9   : > { %v7090_v39 = vadd.f32 %v2105_v7, %v9093_v26  ;;  %v7122_v10 = vadd.f32 %v2331_v9, %v9096_v62  ;;  %v2107_v12 = vpop.f32.mrb[41].mxu0  ;;  %v2333_v13 = vpop.f32.mrb[41].mxu1  ;;  %7034 = vmatprep.subr.bf16.mxu0 %v7676_v11 }
 0x2aa   : > { %v7091_v16 = vadd.f32 %v2107_v12, %v9099_v63  ;;  %v7123_v17 = vadd.f32 %v2333_v13, %v9102_v1  ;;  %v2109_v18 = vpop.f32.mrb[42].mxu0  ;;  %v2335_v19 = vpop.f32.mrb[42].mxu1  ;;  %2789 = vmatprep.mubr.bf16.mxu0 %v2459_v5  ;;  %2886 = vmatprep.mubr.bf16.mxu1 %v2461_v6 }
 0x2ab   : > { %v7092_v20 = vadd.f32 %v2109_v18, %v9093_v26  ;;  %v7124_v21 = vadd.f32 %v2335_v19, %v9096_v62  ;;  %v2111_v22 = vpop.f32.mrb[43].mxu0  ;;  %v2337_v24 = vpop.f32.mrb[43].mxu1  ;;  %2790 = vmatmul.mubr.bf16.gmra.mrb[68].mxu0 %v2458_v2  ;;  %2887 = vmatmul.mubr.bf16.gmra.mrb[68].mxu1 %v2460_v4  ;;  %v2406_v29 = vmax.f32 %v7090_v39, 0.0  ;;  %v2408_v30 = vmax.f32 %v7122_v10, 0.0 }
 0x2ac   : > { %v7093_v25 = vadd.f32 %v2111_v22, %v9099_v63  ;;  %v7125_v27 = vadd.f32 %v2337_v24, %v9102_v1  ;;  %7035 = vmatpush3.bf16.msra.mxu0 %v7676_v11  ;;  %v2407_v34 = vmax.f32 %v7091_v16, 0.0  ;;  %v2409_v35 = vmax.f32 %v7123_v17, 0.0 }
 0x2ad   : > { %v2410_v32 = vmax.f32 %v7092_v20, 0.0  ;;  %v2412_v33 = vmax.f32 %v7124_v21, 0.0  ;;  %7036 = vmatprep.subr.bf16.mxu0 %v7677_v15 }
 0x2ae   : > { %v2411_v8 = vmax.f32 %v7093_v25, 0.0  ;;  %v2413_v54 = vmax.f32 %v7125_v27, 0.0 }
 0x2af   : > { %v2462_v37 = vpack.c.bf16 %v2410_v32, %v2406_v29  ;;  %v2464_v49 = vpack.c.bf16 %v2412_v33, %v2408_v30 }
 0x2b0   : > { %v2463_v38 = vpack.c.bf16 %v2411_v8, %v2407_v34  ;;  %v2465_v40 = vpack.c.bf16 %v2413_v54, %v2409_v35  ;;  %v2115_v41 = vpop.f32.mrb[44].mxu0  ;;  %v2341_v51 = vpop.f32.mrb[44].mxu1  ;;  %7037 = vmatpush3.bf16.msra.mxu0 %v7677_v15 }
 0x2b1   : > { %v7094_v31 = vadd.f32 %v2115_v41, %v9093_v26  ;;  %v7126_v42 = vadd.f32 %v2341_v51, %v9096_v62  ;;  %v2117_v50 = vpop.f32.mrb[45].mxu0  ;;  %v2343_v43 = vpop.f32.mrb[45].mxu1  ;;  %7038 = vmatprep.subr.bf16.mxu0 %v7678_v3 }
 0x2b2   : > { %v7095_v45 = vadd.f32 %v2117_v50, %v9099_v63  ;;  %v7127_v47 = vadd.f32 %v2343_v43, %v9102_v1  ;;  %v2119_v28 = vpop.f32.mrb[46].mxu0  ;;  %v2345_v14 = vpop.f32.mrb[46].mxu1  ;;  %2797 = vmatprep.mubr.bf16.mxu0 %v2463_v38  ;;  %2894 = vmatprep.mubr.bf16.mxu1 %v2465_v40 }
 0x2b3   : > { %v7096_v52 = vadd.f32 %v2119_v28, %v9093_v26  ;;  %v7128_v53 = vadd.f32 %v2345_v14, %v9096_v62  ;;  %v2121_v56 = vpop.f32.mrb[47].mxu0  ;;  %v2347_v57 = vpop.f32.mrb[47].mxu1  ;;  %2798 = vmatmul.mubr.bf16.gmra.mrb[72].mxu0 %v2462_v37  ;;  %2895 = vmatmul.mubr.bf16.gmra.mrb[72].mxu1 %v2464_v49  ;;  %v2414_v55 = vmax.f32 %v7094_v31, 0.0  ;;  %v2416_v59 = vmax.f32 %v7126_v42, 0.0 }
 0x2b4   : > { %v7097_v61 = vadd.f32 %v2121_v56, %v9099_v63  ;;  %v7129_v11 = vadd.f32 %v2347_v57, %v9102_v1  ;;  %7039 = vmatpush3.bf16.msra.mxu0 %v7678_v3  ;;  %v2415_v2 = vmax.f32 %v7095_v45, 0.0  ;;  %v2417_v4 = vmax.f32 %v7127_v47, 0.0 }
 0x2b5   : > { %v2418_v36 = vmax.f32 %v7096_v52, 0.0  ;;  %v2420_v23 = vmax.f32 %v7128_v53, 0.0  ;;  %7040 = vmatprep.subr.bf16.mxu0 %v7679_v44 }
 0x2b6   : > { %v2419_v5 = vmax.f32 %v7097_v61, 0.0  ;;  %v2421_v6 = vmax.f32 %v7129_v11, 0.0 }
 0x2b7   : > { %v2466_v7 = vpack.c.bf16 %v2418_v36, %v2414_v55  ;;  %v2468_v9 = vpack.c.bf16 %v2420_v23, %v2416_v59 }
 0x2b8   : > { %v2467_v39 = vpack.c.bf16 %v2419_v5, %v2415_v2  ;;  %v2469_v10 = vpack.c.bf16 %v2421_v6, %v2417_v4  ;;  %v2125_v12 = vpop.f32.mrb[48].mxu0  ;;  %v2351_v13 = vpop.f32.mrb[48].mxu1  ;;  %7041 = vmatpush3.bf16.msra.mxu0 %v7679_v44 }
 0x2b9   : > { %v7098_v15 = vadd.f32 %v2125_v12, %v9093_v26  ;;  %v7130_v16 = vadd.f32 %v2351_v13, %v9096_v62  ;;  %v2127_v17 = vpop.f32.mrb[49].mxu0  ;;  %v2353_v18 = vpop.f32.mrb[49].mxu1 }
 0x2ba   : > { %v7099_v19 = vadd.f32 %v2127_v17, %v9099_v63  ;;  %v7131_v20 = vadd.f32 %v2353_v18, %v9102_v1  ;;  %v2129_v21 = vpop.f32.mrb[50].mxu0  ;;  %v2355_v22 = vpop.f32.mrb[50].mxu1  ;;  %2805 = vmatprep.mubr.bf16.mxu0 %v2467_v39  ;;  %2902 = vmatprep.mubr.bf16.mxu1 %v2469_v10 }
 0x2bb   : > { %v7100_v24 = vadd.f32 %v2129_v21, %v9093_v26  ;;  %v7132_v25 = vadd.f32 %v2355_v22, %v9096_v62  ;;  %v2131_v27 = vpop.f32.mrb[51].mxu0  ;;  %v2357_v29 = vpop.f32.mrb[51].mxu1  ;;  %2806 = vmatmul.mubr.bf16.gmra.mrb[76].mxu0 %v2466_v7  ;;  %2903 = vmatmul.mubr.bf16.gmra.mrb[76].mxu1 %v2468_v9  ;;  %v2422_v33 = vmax.f32 %v7098_v15, 0.0  ;;  %v2424_v3 = vmax.f32 %v7130_v16, 0.0 }
 0x2bc   : > { %v7101_v30 = vadd.f32 %v2131_v27, %v9099_v63  ;;  %v7133_v32 = vadd.f32 %v2357_v29, %v9102_v1  ;;  %v2423_v8 = vmax.f32 %v7099_v19, 0.0  ;;  %v2425_v54 = vmax.f32 %v7131_v20, 0.0 }
 0x2bd   : > { %v2426_v34 = vmax.f32 %v7100_v24, 0.0  ;;  %v2428_v35 = vmax.f32 %v7132_v25, 0.0 }
 0x2be   : > { %v2427_v37 = vmax.f32 %v7101_v30, 0.0  ;;  %v2429_v49 = vmax.f32 %v7133_v32, 0.0 }
 0x2bf   : > { %v2470_v38 = vpack.c.bf16 %v2426_v34, %v2422_v33  ;;  %v2472_v40 = vpack.c.bf16 %v2428_v35, %v2424_v3 }
 0x2c0   : > { %v2471_v41 = vpack.c.bf16 %v2427_v37, %v2423_v8  ;;  %v2473_v51 = vpack.c.bf16 %v2429_v49, %v2425_v54  ;;  %v2135_v31 = vpop.f32.mrb[52].mxu0  ;;  %v2361_v42 = vpop.f32.mrb[52].mxu1 }
 0x2c1   : > { %v7102_v50 = vadd.f32 %v2135_v31, %v9093_v26  ;;  %v7134_v43 = vadd.f32 %v2361_v42, %v9096_v62  ;;  %v2137_v44 = vpop.f32.mrb[53].mxu0  ;;  %v2363_v45 = vpop.f32.mrb[53].mxu1 }
 0x2c2   : > { %v7103_v47 = vadd.f32 %v2137_v44, %v9099_v63  ;;  %v7135_v28 = vadd.f32 %v2363_v45, %v9102_v1  ;;  %v2139_v14 = vpop.f32.mrb[54].mxu0  ;;  %v2365_v52 = vpop.f32.mrb[54].mxu1  ;;  %2813 = vmatprep.mubr.bf16.mxu0 %v2471_v41  ;;  %2910 = vmatprep.mubr.bf16.mxu1 %v2473_v51 }
 0x2c3   : > { %v7104_v53 = vadd.f32 %v2139_v14, %v9093_v26  ;;  %v7136_v56 = vadd.f32 %v2365_v52, %v9096_v62  ;;  %v2141_v57 = vpop.f32.mrb[55].mxu0  ;;  %v2367_v61 = vpop.f32.mrb[55].mxu1  ;;  %2814 = vmatmul.mubr.bf16.gmra.mrb[80].mxu0 %v2470_v38  ;;  %2911 = vmatmul.mubr.bf16.gmra.mrb[80].mxu1 %v2472_v40  ;;  %v2430_v59 = vmax.f32 %v7102_v50, 0.0  ;;  %v2432_v36 = vmax.f32 %v7134_v43, 0.0 }
 0x2c4   : > { %v7105_v11 = vadd.f32 %v2141_v57, %v9099_v63  ;;  %v7137_v55 = vadd.f32 %v2367_v61, %v9102_v1  ;;  %v2431_v4 = vmax.f32 %v7103_v47, 0.0  ;;  %v2433_v5 = vmax.f32 %v7135_v28, 0.0 }
 0x2c5   : > { %v2434_v23 = vmax.f32 %v7104_v53, 0.0  ;;  %v2436_v2 = vmax.f32 %v7136_v56, 0.0 }
 0x2c6   : > { %v2435_v6 = vmax.f32 %v7105_v11, 0.0  ;;  %v2437_v7 = vmax.f32 %v7137_v55, 0.0 }
 0x2c7   : > { %v2474_v9 = vpack.c.bf16 %v2434_v23, %v2430_v59  ;;  %v2476_v39 = vpack.c.bf16 %v2436_v2, %v2432_v36 }
 0x2c8   : > { %v2475_v10 = vpack.c.bf16 %v2435_v6, %v2431_v4  ;;  %v2477_v12 = vpack.c.bf16 %v2437_v7, %v2433_v5  ;;  %v2145_v13 = vpop.f32.mrb[56].mxu0  ;;  %v2371_v15 = vpop.f32.mrb[56].mxu1 }
 0x2c9   : > { %v7106_v16 = vadd.f32 %v2145_v13, %v9093_v26  ;;  %v7138_v17 = vadd.f32 %v2371_v15, %v9096_v62  ;;  %v2147_v18 = vpop.f32.mrb[57].mxu0  ;;  %v2373_v19 = vpop.f32.mrb[57].mxu1  ;;  %v3375_v13 = vld [vmem:[%s9194_s30] sm:$0xff]  ;;  %v3378_v15 = vld [vmem:[%s9194_s30 + $0x18] sm:$0xff] }
 0x2ca   : > { %v7107_v20 = vadd.f32 %v2147_v18, %v9099_v63  ;;  %v7139_v21 = vadd.f32 %v2373_v19, %v9102_v1  ;;  %v2149_v22 = vpop.f32.mrb[58].mxu0  ;;  %v2375_v24 = vpop.f32.mrb[58].mxu1  ;;  %2821 = vmatprep.mubr.bf16.mxu0 %v2475_v10  ;;  %2918 = vmatprep.mubr.bf16.mxu1 %v2477_v12  ;;  %v3377_v12 = vld [vmem:[%s9194_s30 + $0x10] sm:$0xff]  ;;  %v3380_v18 = vld [vmem:[%s9194_s30 + $0x28] sm:$0xff] }
 0x2cb   : > { %v7108_v25 = vadd.f32 %v2149_v22, %v9093_v26  ;;  %v7140_v27 = vadd.f32 %v2375_v24, %v9096_v62  ;;  %v2151_v29 = vpop.f32.mrb[59].mxu0  ;;  %v2377_v30 = vpop.f32.mrb[59].mxu1  ;;  %2822 = vmatmul.mubr.bf16.gmra.mrb[84].mxu0 %v2474_v9  ;;  %2919 = vmatmul.mubr.bf16.gmra.mrb[84].mxu1 %v2476_v39  ;;  %v2438_v3 = vmax.f32 %v7106_v16, 0.0  ;;  %v2440_v34 = vmax.f32 %v7138_v17, 0.0  ;;  %v3376_v16 = vld [vmem:[%s9194_s30 + $0x8] sm:$0xff]  ;;  %v3379_v17 = vld [vmem:[%s9194_s30 + $0x20] sm:$0xff] }
 0x2cc   : > { %v7109_v32 = vadd.f32 %v2151_v29, %v9099_v63  ;;  %v7141_v33 = vadd.f32 %v2377_v30, %v9102_v1  ;;  %v2439_v54 = vmax.f32 %v7107_v20, 0.0  ;;  %v2441_v37 = vmax.f32 %v7139_v21, 0.0  ;;  %3411 = vrot.lane.b32.xlu1 %v3377_v12, %s8217_s23  ;;  %3407 = vrot.lane.b32.xlu0 %v3375_v13, %s8217_s23  ;;  %v3381_v19 = vld [vmem:[%s9194_s30 + $0x30] sm:$0xff]  ;;  %v3382_v20 = vld [vmem:[%s9194_s30 + $0x38] sm:$0xff] }
 0x2cd   : > { %v2442_v35 = vmax.f32 %v7108_v25, 0.0  ;;  %v2444_v8 = vmax.f32 %v7140_v27, 0.0  ;;  %v3383_v21 = vld [vmem:[%s9194_s30 + $0x40] sm:$0xff]  ;;  %v3384_v22 = vld [vmem:[%s9194_s30 + $0x48] sm:$0xff]  ;;  %v3385_v24 = vld [vmem:[%s9194_s30 + $0x50] sm:$0xff] }
 0x2ce   : > { %v2443_v49 = vmax.f32 %v7109_v32, 0.0  ;;  %v2445_v38 = vmax.f32 %v7141_v33, 0.0  ;;  %v3386_v25 = vld [vmem:[%s9194_s30 + $0x58] sm:$0xff]  ;;  %v3387_v27 = vld [vmem:[%s9194_s30 + $0x60] sm:$0xff]  ;;  %v3388_v29 = vld [vmem:[%s9194_s30 + $0x68] sm:$0xff] }
 0x2cf   : > { %v2478_v40 = vpack.c.bf16 %v2442_v35, %v2438_v3  ;;  %v2480_v41 = vpack.c.bf16 %v2444_v8, %v2440_v34  ;;  %v3389_v30 = vld [vmem:[%s9194_s30 + $0x70] sm:$0xff]  ;;  %v3390_v32 = vld [vmem:[%s9194_s30 + $0x78] sm:$0xff]  ;;  %v9231_v34 = vld [vmem:[%s10161_s7] ss:$0 sm:$0xff]  ;;  %s8132_s30 = scalar_lea.vmem %s10106_s2, 8192 }
 0x2d0   : > { %v2479_v51 = vpack.c.bf16 %v2443_v49, %v2439_v54  ;;  %v2481_v31 = vpack.c.bf16 %v2445_v38, %v2441_v37  ;;  %v2155_v42 = vpop.f32.mrb[60].mxu0  ;;  %v2381_v50 = vpop.f32.mrb[60].mxu1  ;;  %3413 = vrot.lane.b32.xlu1 %v3378_v15, %s8217_s23  ;;  %3409 = vrot.lane.b32.xlu0 %v3376_v16, %s8217_s23  ;;  %p8133_p2 = scmp.ne.s32.totalorder %s10106_s2, %s8132_s30 }
 0x2d1   : > { %v7110_v43 = vadd.f32 %v2155_v42, %v9093_v26  ;;  %v7142_v44 = vadd.f32 %v2381_v50, %v9096_v62  ;;  %v2157_v45 = vpop.f32.mrb[61].mxu0  ;;  %v2383_v47 = vpop.f32.mrb[61].mxu1 }
 0x2d2   : > { %v7111_v28 = vadd.f32 %v2157_v45, %v9099_v63  ;;  %v7143_v14 = vadd.f32 %v2383_v47, %v9102_v1  ;;  %v2159_v52 = vpop.f32.mrb[62].mxu0  ;;  %v2385_v53 = vpop.f32.mrb[62].mxu1  ;;  %2829 = vmatprep.mubr.bf16.mxu0 %v2479_v51  ;;  %2926 = vmatprep.mubr.bf16.mxu1 %v2481_v31  ;;  %p8134_p4 = pnand %p8133_p2, %p10235_p3 }
 0x2d3   : > { %v7112_v56 = vadd.f32 %v2159_v52, %v9093_v26  ;;  %v7144_v57 = vadd.f32 %v2385_v53, %v9096_v62  ;;  %v2161_v61 = vpop.f32.mrb[63].mxu0  ;;  %v2387_v11 = vpop.f32.mrb[63].mxu1  ;;  %2830 = vmatmul.mubr.bf16.gmra.mrb[88].mxu0 %v2478_v40  ;;  %2927 = vmatmul.mubr.bf16.gmra.mrb[88].mxu1 %v2480_v41  ;;  %v2446_v36 = vmax.f32 %v7110_v43, 0.0  ;;  %v2448_v23 = vmax.f32 %v7142_v44, 0.0 }
 0x2d4   : > { %v7113_v55 = vadd.f32 %v2161_v61, %v9099_v63  ;;  %v7145_v59 = vadd.f32 %v2387_v11, %v9102_v1  ;;  %v2447_v5 = vmax.f32 %v7111_v28, 0.0  ;;  %v2449_v6 = vmax.f32 %v7143_v14, 0.0  ;;  %v7680_v63 = vld [vmem:[%s10162_s8 + $0x30] sm:$0xff]   ;;  %v7681_v1 = vld [vmem:[%s10162_s8 + $0x38] sm:$0xff]   ;;  %3415 = vrot.lane.b32.xlu0 %v3379_v17, %s8217_s23  ;;  %3417 = vrot.lane.b32.xlu1 %v3380_v18, %s8217_s23  ;;  %p8135_p7 = pneg %p8134_p4 }
 0x2d5   : > { %v2450_v2 = vmax.f32 %v7112_v56, 0.0  ;;  %v2452_v4 = vmax.f32 %v7144_v57, 0.0  ;;  %7042 = vmatprep.subr.bf16.mxu0 %v7680_v63 }
 0x2d6   : > { %v2451_v7 = vmax.f32 %v7113_v55, 0.0  ;;  %v2453_v9 = vmax.f32 %v7145_v59, 0.0  ;;  %7043 = vmatpush3.bf16.msra.mxu0 %v7680_v63 }
 0x2d7   : > { %v2482_v26 = vpack.c.bf16 %v2450_v2, %v2446_v36  ;;  %v2484_v39 = vpack.c.bf16 %v2452_v4, %v2448_v23  ;;  %7044 = vmatprep.subr.bf16.mxu0 %v7681_v1 }
 0x2d8   : > { %v2483_v62 = vpack.c.bf16 %v2451_v7, %v2447_v5  ;;  %v2485_v10 = vpack.c.bf16 %v2453_v9, %v2449_v6  ;;  %3419 = vrot.lane.b32.xlu0 %v3381_v19, %s8217_s23  ;;  %3421 = vrot.lane.b32.xlu1 %v3382_v20, %s8217_s23 }
 0x2da   : > { %2837 = vmatprep.mubr.bf16.mxu0 %v2483_v62  ;;  %2934 = vmatprep.mubr.bf16.mxu1 %v2485_v10 }
 0x2db   : > { %2838 = vmatmul.mubr.bf16.gmra.mrb[92].mxu0 %v2482_v26  ;;  %2935 = vmatmul.mubr.bf16.gmra.mrb[92].mxu1 %v2484_v39 }
 0x2dc   : > { %7045 = vmatpush3.bf16.msra.mxu0 %v7681_v1  ;;  %3423 = vrot.lane.b32.xlu0 %v3383_v21, %s8217_s23 }
 0x2dd   : > { %3425 = vrot.lane.b32.xlu1 %v3384_v22, %s8217_s23 }
 0x2e0   : > { %3427 = vrot.lane.b32.xlu0 %v3385_v24, %s8217_s23 }
 0x2e1   : > { %3429 = vrot.lane.b32.xlu1 %v3386_v25, %s8217_s23 }
 0x2e4   : > { %3431 = vrot.lane.b32.xlu0 %v3387_v27, %s8217_s23 }
 0x2e5   : > { %3433 = vrot.lane.b32.xlu1 %v3388_v29, %s8217_s23 }
 0x2e8   : > { %3435 = vrot.lane.b32.xlu0 %v3389_v30, %s8217_s23 }
 0x2e9   : > { %3437 = vrot.lane.b32.xlu1 %v3390_v32, %s8217_s23 }
 0x376   : > { %v6764_v33 = vpop.f32.mrb[64].mxu0  ;;  %v6828_v3 = vpop.f32.mrb[64].mxu1 }
 0x377   : > { %v6765_v35 = vpop.f32.mrb[65].mxu0  ;;  %v6829_v8 = vpop.f32.mrb[65].mxu1 }
 0x378   : > { %v6766_v54 = vadd.f32 %v6765_v35, %v6764_v33  ;;  %v6830_v37 = vadd.f32 %v6829_v8, %v6828_v3  ;;  %v6767_v49 = vpop.f32.mrb[66].mxu0  ;;  %v6831_v38 = vpop.f32.mrb[66].mxu1 }
 0x379   : > { %v6768_v40 = vpop.f32.mrb[67].mxu0  ;;  %v6832_v41 = vpop.f32.mrb[67].mxu1 }
 0x37a   : > { %v2784_v51 = vadd.f32 %v6766_v54, %v9231_v34  ;;  %v6769_v31 = vadd.f32 %v6768_v40, %v6767_v49  ;;  %v6833_v42 = vadd.f32 %v6832_v41, %v6831_v38 }
 0x37c   : > { %v2881_v50 = vadd.f32 %v6830_v37, %v2784_v51  ;;  %v2787_v43 = vadd.f32 %v6769_v31, %v9231_v34 }
 0x37e   : > { %v2884_v44 = vadd.f32 %v6833_v42, %v2787_v43  ;;  %v6770_v45 = vpop.f32.mrb[68].mxu0  ;;  %v6834_v47 = vpop.f32.mrb[68].mxu1  ;;  %v2943_v52 = vmax.f32 %v2881_v50, 0.0 }
 0x37f   : > { %v6771_v28 = vpop.f32.mrb[69].mxu0  ;;  %v6835_v14 = vpop.f32.mrb[69].mxu1 }
 0x380   : > { %v2944_v53 = vmax.f32 %v2884_v44, 0.0  ;;  %v6772_v56 = vadd.f32 %v6771_v28, %v6770_v45  ;;  %v6836_v57 = vadd.f32 %v6835_v14, %v6834_v47  ;;  %v6773_v61 = vpop.f32.mrb[70].mxu0  ;;  %v6837_v11 = vpop.f32.mrb[70].mxu1 }
 0x381   : > { %v6774_v55 = vpop.f32.mrb[71].mxu0  ;;  %v6838_v59 = vpop.f32.mrb[71].mxu1 }
 0x382   : > { %v2792_v36 = vadd.f32 %v6772_v56, %v9231_v34  ;;  %v6775_v23 = vadd.f32 %v6774_v55, %v6773_v61  ;;  %v6839_v2 = vadd.f32 %v6838_v59, %v6837_v11  ;;  %v2959_v4 = vpack.c.bf16 %v2944_v53, %v2943_v52 }
 0x384   : > { %v2889_v5 = vadd.f32 %v6836_v57, %v2792_v36  ;;  %v2795_v6 = vadd.f32 %v6775_v23, %v9231_v34  ;;  %7046 = vmatprep.mubr.bf16.mxu0 %v2959_v4 }
 0x386   : > { %v2892_v7 = vadd.f32 %v6839_v2, %v2795_v6  ;;  %v6776_v9 = vpop.f32.mrb[72].mxu0  ;;  %v6840_v26 = vpop.f32.mrb[72].mxu1  ;;  %v2945_v10 = vmax.f32 %v2889_v5, 0.0 }
 0x387   : > { %v6777_v39 = vpop.f32.mrb[73].mxu0  ;;  %v6841_v62 = vpop.f32.mrb[73].mxu1 }
 0x388   : > { %v2946_v63 = vmax.f32 %v2892_v7, 0.0  ;;  %v6778_v1 = vadd.f32 %v6777_v39, %v6776_v9  ;;  %v6842_v12 = vadd.f32 %v6841_v62, %v6840_v26  ;;  %v6779_v13 = vpop.f32.mrb[74].mxu0  ;;  %v6843_v15 = vpop.f32.mrb[74].mxu1 }
 0x389   : > { %v6780_v16 = vpop.f32.mrb[75].mxu0  ;;  %v6844_v17 = vpop.f32.mrb[75].mxu1 }
 0x38a   : > { %v2960_v18 = vpack.c.bf16 %v2946_v63, %v2945_v10  ;;  %v2800_v19 = vadd.f32 %v6778_v1, %v9231_v34  ;;  %v6781_v20 = vadd.f32 %v6780_v16, %v6779_v13  ;;  %v6845_v21 = vadd.f32 %v6844_v17, %v6843_v15 }
 0x38c   : > { %v2897_v22 = vadd.f32 %v6842_v12, %v2800_v19  ;;  %v2803_v24 = vadd.f32 %v6781_v20, %v9231_v34  ;;  %7047 = vmatmul.mubr.bf16.vlgmr.msra.gmra.mrb[96].mxu0 %v2960_v18 }
 0x38e   : > { %v2900_v25 = vadd.f32 %v6845_v21, %v2803_v24  ;;  %v6782_v27 = vpop.f32.mrb[76].mxu0  ;;  %v6846_v29 = vpop.f32.mrb[76].mxu1  ;;  %v2947_v33 = vmax.f32 %v2897_v22, 0.0 }
 0x38f   : > { %v6783_v30 = vpop.f32.mrb[77].mxu0  ;;  %v6847_v32 = vpop.f32.mrb[77].mxu1 }
 0x390   : > { %v2948_v3 = vmax.f32 %v2900_v25, 0.0  ;;  %v6784_v35 = vadd.f32 %v6783_v30, %v6782_v27  ;;  %v6848_v8 = vadd.f32 %v6847_v32, %v6846_v29  ;;  %v6785_v54 = vpop.f32.mrb[78].mxu0  ;;  %v6849_v37 = vpop.f32.mrb[78].mxu1 }
 0x391   : > { %v6786_v49 = vpop.f32.mrb[79].mxu0  ;;  %v6850_v38 = vpop.f32.mrb[79].mxu1 }
 0x392   : > { %v2808_v40 = vadd.f32 %v6784_v35, %v9231_v34  ;;  %v6787_v41 = vadd.f32 %v6786_v49, %v6785_v54  ;;  %v6851_v51 = vadd.f32 %v6850_v38, %v6849_v37  ;;  %v2961_v31 = vpack.c.bf16 %v2948_v3, %v2947_v33 }
 0x394   : > { %v2905_v42 = vadd.f32 %v6848_v8, %v2808_v40  ;;  %v2811_v50 = vadd.f32 %v6787_v41, %v9231_v34  ;;  %7050 = vmatprep.mubr.bf16.mxu0 %v2961_v31 }
 0x396   : > { %v2908_v43 = vadd.f32 %v6851_v51, %v2811_v50  ;;  %v6788_v44 = vpop.f32.mrb[80].mxu0  ;;  %v6852_v45 = vpop.f32.mrb[80].mxu1  ;;  %v2949_v14 = vmax.f32 %v2905_v42, 0.0 }
 0x397   : > { %v6789_v47 = vpop.f32.mrb[81].mxu0  ;;  %v6853_v28 = vpop.f32.mrb[81].mxu1 }
 0x398   : > { %v2950_v52 = vmax.f32 %v2908_v43, 0.0  ;;  %v6790_v53 = vadd.f32 %v6789_v47, %v6788_v44  ;;  %v6854_v56 = vadd.f32 %v6853_v28, %v6852_v45  ;;  %v6791_v57 = vpop.f32.mrb[82].mxu0  ;;  %v6855_v61 = vpop.f32.mrb[82].mxu1 }
 0x399   : > { %v6792_v11 = vpop.f32.mrb[83].mxu0  ;;  %v6856_v55 = vpop.f32.mrb[83].mxu1 }
 0x39a   : > { %v2816_v59 = vadd.f32 %v6790_v53, %v9231_v34  ;;  %v6793_v36 = vadd.f32 %v6792_v11, %v6791_v57  ;;  %v6857_v23 = vadd.f32 %v6856_v55, %v6855_v61  ;;  %v2962_v2 = vpack.c.bf16 %v2950_v52, %v2949_v14 }
 0x39c   : > { %v2913_v4 = vadd.f32 %v6854_v56, %v2816_v59  ;;  %v2819_v5 = vadd.f32 %v6793_v36, %v9231_v34  ;;  %7051 = vmatmul.mubr.bf16.gmra.mrb[100].mxu0 %v2962_v2 }
 0x39e   : > { %v2916_v6 = vadd.f32 %v6857_v23, %v2819_v5  ;;  %v6794_v7 = vpop.f32.mrb[84].mxu0  ;;  %v6858_v9 = vpop.f32.mrb[84].mxu1  ;;  %v2951_v62 = vmax.f32 %v2913_v4, 0.0 }
 0x39f   : > { %v6795_v26 = vpop.f32.mrb[85].mxu0  ;;  %v6859_v39 = vpop.f32.mrb[85].mxu1 }
 0x3a0   : > { %v2952_v10 = vmax.f32 %v2916_v6, 0.0  ;;  %v6796_v63 = vadd.f32 %v6795_v26, %v6794_v7  ;;  %v6860_v1 = vadd.f32 %v6859_v39, %v6858_v9  ;;  %v6797_v12 = vpop.f32.mrb[86].mxu0  ;;  %v6861_v13 = vpop.f32.mrb[86].mxu1  ;;  %v7682_v26 = vld [vmem:[%s10164_s10] sm:$0xff]  }
 0x3a1   : > { %v6798_v15 = vpop.f32.mrb[87].mxu0  ;;  %v6862_v16 = vpop.f32.mrb[87].mxu1  ;;  %7062 = vmatprep.subr.bf16.mxu1 %v7682_v26 }
 0x3a2   : > { %v2824_v17 = vadd.f32 %v6796_v63, %v9231_v34  ;;  %v6799_v18 = vadd.f32 %v6798_v15, %v6797_v12  ;;  %v6863_v19 = vadd.f32 %v6862_v16, %v6861_v13  ;;  %v2963_v20 = vpack.c.bf16 %v2952_v10, %v2951_v62  ;;  %7063 = vmatpush3.bf16.msra.mxu1 %v7682_v26  ;;  %v7683_v62 = vld [vmem:[%s10164_s10 + $0x8] sm:$0xff]  }
 0x3a3   : > { %7064 = vmatprep.subr.bf16.mxu1 %v7683_v62 }
 0x3a4   : > { %v2921_v21 = vadd.f32 %v6860_v1, %v2824_v17  ;;  %v2827_v22 = vadd.f32 %v6799_v18, %v9231_v34  ;;  %7054 = vmatprep.mubr.bf16.mxu0 %v2963_v20 }
 0x3a6   : > { %v2924_v24 = vadd.f32 %v6863_v19, %v2827_v22  ;;  %v6800_v25 = vpop.f32.mrb[88].mxu0  ;;  %v6864_v27 = vpop.f32.mrb[88].mxu1  ;;  %v2953_v32 = vmax.f32 %v2921_v21, 0.0  ;;  %7065 = vmatpush3.bf16.msra.mxu1 %v7683_v62 }
 0x3a7   : > { %v6801_v29 = vpop.f32.mrb[89].mxu0  ;;  %v6865_v30 = vpop.f32.mrb[89].mxu1 }
 0x3a8   : > { %v2954_v33 = vmax.f32 %v2924_v24, 0.0  ;;  %v6802_v3 = vadd.f32 %v6801_v29, %v6800_v25  ;;  %v6866_v35 = vadd.f32 %v6865_v30, %v6864_v27  ;;  %v6803_v8 = vpop.f32.mrb[90].mxu0  ;;  %v6867_v54 = vpop.f32.mrb[90].mxu1 }
 0x3a9   : > { %v6804_v37 = vpop.f32.mrb[91].mxu0  ;;  %v6868_v49 = vpop.f32.mrb[91].mxu1 }
 0x3aa   : > { %v2832_v38 = vadd.f32 %v6802_v3, %v9231_v34  ;;  %v6805_v40 = vadd.f32 %v6804_v37, %v6803_v8  ;;  %v6869_v41 = vadd.f32 %v6868_v49, %v6867_v54  ;;  %v2964_v51 = vpack.c.bf16 %v2954_v33, %v2953_v32 }
 0x3ac   : > { %v2929_v31 = vadd.f32 %v6866_v35, %v2832_v38  ;;  %v2835_v42 = vadd.f32 %v6805_v40, %v9231_v34  ;;  %7055 = vmatmul.mubr.bf16.gmra.mrb[104].mxu0 %v2964_v51 }
 0x3ae   : > { %v2932_v50 = vadd.f32 %v6869_v41, %v2835_v42  ;;  %v6806_v43 = vpop.f32.mrb[92].mxu0  ;;  %v6870_v44 = vpop.f32.mrb[92].mxu1  ;;  %v2955_v28 = vmax.f32 %v2929_v31, 0.0 }
 0x3af   : > { %v6807_v45 = vpop.f32.mrb[93].mxu0  ;;  %v6871_v47 = vpop.f32.mrb[93].mxu1 }
 0x3b0   : > { %v2956_v14 = vmax.f32 %v2932_v50, 0.0  ;;  %v6808_v52 = vadd.f32 %v6807_v45, %v6806_v43  ;;  %v6872_v53 = vadd.f32 %v6871_v47, %v6870_v44  ;;  %v6809_v56 = vpop.f32.mrb[94].mxu0  ;;  %v6873_v57 = vpop.f32.mrb[94].mxu1 }
 0x3b1   : > { %v6810_v61 = vpop.f32.mrb[95].mxu0  ;;  %v6874_v11 = vpop.f32.mrb[95].mxu1 }
 0x3b2   : > { %v2840_v55 = vadd.f32 %v6808_v52, %v9231_v34  ;;  %v6811_v59 = vadd.f32 %v6810_v61, %v6809_v56  ;;  %v6875_v36 = vadd.f32 %v6874_v11, %v6873_v57  ;;  %v2965_v23 = vpack.c.bf16 %v2956_v14, %v2955_v28 }
 0x3b4   : > { %v2937_v2 = vadd.f32 %v6872_v53, %v2840_v55  ;;  %v2843_v4 = vadd.f32 %v6811_v59, %v9231_v34  ;;  %7058 = vmatprep.mubr.bf16.mxu0 %v2965_v23  ;;  %v9259_v34 = vld [vmem:[%s10163_s9] ss:$0 sm:$0xff] }
 0x3b6   : > { %v2940_v5 = vadd.f32 %v6875_v36, %v2843_v4  ;;  %v2957_v6 = vmax.f32 %v2937_v2, 0.0 }
 0x3b8   : > { %v2958_v7 = vmax.f32 %v2940_v5, 0.0 }
 0x3ba   : > { %v2966_v9 = vpack.c.bf16 %v2958_v7, %v2957_v6 }
 0x3bc   : > { %7059 = vmatmul.mubr.bf16.gmra.mrb[108].mxu0 %v2966_v9 }
 0x3bd   : > { %3974 = vmatprep.mubr.bf16.mxu0 %v8216_v0 }
 0x45f   : > { %v7048_v39 = vpop.f32.mrb[96].mxu0 }
 0x460   : > { %v9265_v10 = vadd.f32 %v7048_v39, %v9259_v34  ;;  %v3072_v63 = vpop.f32.mrb[97].mxu0 }
 0x461   : > { %v9268_v1 = vadd.f32 %v9259_v34, %v3072_v63  ;;  %v7049_v12 = vpop.f32.mrb[98].mxu0 }
 0x462   : > { %v3153_v13 = vmin.f32 %v9265_v10, 20.0  ;;  %6077 = vst.msk [vmem:[%s9271_s6 + $0x48] sm:$0xff] %vm3582_vm1, %v9265_v10  ;;  %v9277_v15 = vadd.f32 %v7049_v12, %v9259_v34  ;;  %v3075_v16 = vpop.f32.mrb[99].mxu0  ;;  %vm3137_vm2 = vcmp.gt.f32.partialorder %v9265_v10, 20.0 }
 0x463   : > { %v3151_v17 = vmin.f32 %v9268_v1, 20.0  ;;  %6075 = vst.msk [vmem:[%s9271_s6 + $0x8] sm:$0xff] %vm3582_vm1, %v9268_v1  ;;  %v9284_v18 = vadd.f32 %v9259_v34, %v3075_v16  ;;  %vm3135_vm3 = vcmp.gt.f32.partialorder %v9268_v1, 20.0 }
 0x464   : > { %v3171_v19 = vmul.f32 1.442695, %v3153_v13  ;;  %v3154_v20 = vmin.f32 %v9277_v15, 20.0  ;;  %6078 = vst.msk [vmem:[%s9271_s6 + $0x68] sm:$0xff] %vm3582_vm1, %v9277_v15  ;;  %vm3138_vm5 = vcmp.gt.f32.partialorder %v9277_v15, 20.0 }
 0x465   : > { %v3167_v21 = vmul.f32 1.442695, %v3151_v17  ;;  %v3152_v22 = vmin.f32 %v9284_v18, 20.0  ;;  %6076 = vst.msk [vmem:[%s9271_s6 + $0x28] sm:$0xff] %vm3582_vm1, %v9284_v18  ;;  %vm3136_vm9 = vcmp.gt.f32.partialorder %v9284_v18, 20.0 }
 0x466   : > { %7956 = vpow2.f32 %v3171_v19  ;;  %v3173_v24 = vmul.f32 1.442695, %v3154_v20 }
 0x467   : > { %7958 = vpow2.f32 %v3167_v21  ;;  %v3169_v25 = vmul.f32 1.442695, %v3152_v22 }
 0x468   : > { %7960 = vpow2.f32 %v3173_v24 }
 0x469   : > { %7962 = vpow2.f32 %v3169_v25 }
 0x46f   : > { %v7052_v27 = vpop.f32.mrb[100].mxu0 }
 0x470   : > { %v7957_v29 = vpop.eup %7956  ;;  %v9295_v30 = vadd.f32 %v7052_v27, %v9259_v34  ;;  %v3088_v32 = vpop.f32.mrb[101].mxu0 }
 0x471   : > { %v7959_v33 = vpop.eup %7958  ;;  %v9298_v3 = vadd.f32 %v9259_v34, %v3088_v32  ;;  %v7053_v35 = vpop.f32.mrb[102].mxu0  ;;  %v3217_v8 = vadd.f32 1.0, %v7957_v29  ;;  %v3220_v44 = vmul.f32 -0.5, %v7957_v29  ;;  %v3223_v56 = vand.u32 2147483647, %v7957_v29 }
 0x472   : > { %v3157_v54 = vmin.f32 %v9295_v30, 20.0  ;;  %6081 = vst.msk [vmem:[%s9271_s6 + $0xc8] sm:$0xff] %vm3582_vm1, %v9295_v30  ;;  %v9305_v37 = vadd.f32 %v7053_v35, %v9259_v34  ;;  %v3091_v49 = vpop.f32.mrb[103].mxu0  ;;  %v3199_v38 = vadd.f32 1.0, %v7959_v33  ;;  %v7961_v40 = vpop.eup %7960  ;;  %v3202_v28 = vmul.f32 -0.5, %v7959_v33 }
 0x473   : > { %v3155_v41 = vmin.f32 %v9298_v3, 20.0  ;;  %6079 = vst.msk [vmem:[%s9271_s6 + $0x88] sm:$0xff] %vm3582_vm1, %v9298_v3  ;;  %v9312_v51 = vadd.f32 %v9259_v34, %v3091_v49  ;;  %7964 = vlog2.f32 %v3217_v8  ;;  %v9317_v42 = vpop.eup %7962  ;;  %v3226_v45 = vadd.f32 1.0, %v7961_v40  ;;  %v3408_v8 = vpop.permute.xlu0 %3407 }
 0x474   : > { %v3179_v31 = vmul.f32 1.442695, %v3157_v54  ;;  %6082 = vst.msk [vmem:[%s9271_s6 + $0xe8] sm:$0xff] %vm3582_vm1, %v9305_v37  ;;  %7966 = vlog2.f32 %v3199_v38  ;;  %v3158_v47 = vmin.f32 %v9305_v37, 20.0  ;;  %v3208_v14 = vadd.f32 1.0, %v9317_v42 }
 0x475   : > { %v3175_v50 = vmul.f32 1.442695, %v3155_v41  ;;  %v3156_v43 = vmin.f32 %v9312_v51, 20.0  ;;  %6080 = vst.msk [vmem:[%s9271_s6 + $0xa8] sm:$0xff] %vm3582_vm1, %v9312_v51  ;;  %v3221_v53 = vadd.f32 1.0, %v3220_v44  ;;  %v3229_v57 = vmul.f32 -0.5, %v7961_v40 }
 0x476   : > { %7968 = vpow2.f32 %v3179_v31  ;;  %v3181_v61 = vmul.f32 1.442695, %v3158_v47  ;;  %v3203_v11 = vadd.f32 1.0, %v3202_v28  ;;  %v3205_v55 = vand.u32 2147483647, %v7959_v33 }
 0x477   : > { %7970 = vpow2.f32 %v3175_v50  ;;  %v3177_v52 = vmul.f32 1.442695, %v3156_v43  ;;  %v3211_v59 = vmul.f32 -0.5, %v9317_v42  ;;  %v3232_v23 = vand.u32 2147483647, %v7961_v40 }
 0x478   : > { %7972 = vlog2.f32 %v3226_v45  ;;  %v3222_v5 = vmul.f32 %v7957_v29, %v3221_v53  ;;  %vm3224_vm4 = vcmp.lt.f32.partialorder %v3223_v56, 0.0004427343  ;;  %v3230_v6 = vadd.f32 1.0, %v3229_v57 }
 0x479   : > { %7974 = vlog2.f32 %v3208_v14  ;;  %v3204_v26 = vmul.f32 %v7959_v33, %v3203_v11  ;;  %v3214_v39 = vand.u32 2147483647, %v9317_v42  ;;  %vm3206_vm6 = vcmp.lt.f32.partialorder %v3205_v55, 0.0004427343 }
 0x47a   : > { %7976 = vpow2.f32 %v3177_v52  ;;  %v3212_v13 = vadd.f32 1.0, %v3211_v59  ;;  %vm9339_vm7 = vcmp.lt.f32.partialorder %v3232_v23, 0.0004427343  ;;  %v3231_v32 = vmul.f32 %v7961_v40, %v3230_v6 }
 0x47b   : > { %7978 = vpow2.f32 %v3181_v61  ;;  %vm9364_vm8 = vcmp.lt.f32.partialorder %v3214_v39, 0.0004427343  ;;  %v3412_v61 = vpop.permute.xlu1 %3411  ;;  %vm3139_vm10 = vcmp.gt.f32.partialorder %v9298_v3, 20.0  ;;  %vm3141_vm13 = vcmp.gt.f32.partialorder %v9295_v30, 20.0 }
 0x47c   : > { %v3213_v43 = vmul.f32 %v9317_v42, %v3212_v13  ;;  %vm3140_vm14 = vcmp.gt.f32.partialorder %v9312_v51, 20.0 }
 0x47d   : > { %v7965_v36 = vpop.eup %7964 }
 0x47e   : > { %v7967_v2 = vpop.eup %7966  ;;  %v3219_v4 = vmul.f32 0.6931472, %v7965_v36 }
 0x47f   : > { %v7056_v7 = vpop.f32.mrb[104].mxu0  ;;  %v3201_v9 = vmul.f32 0.6931472, %v7967_v2 }
 0x480   : > { %v9331_v62 = vadd.f32 %v7056_v7, %v9259_v34  ;;  %v3104_v63 = vpop.f32.mrb[105].mxu0  ;;  %v3225_v12 = vsel %vm3224_vm4, %v3222_v5, %v3219_v4  ;;  %v9343_v22 = vpop.eup %7968 }
 0x481   : > { %v9334_v16 = vadd.f32 %v9259_v34, %v3104_v63  ;;  %v3345_v17 = vsel %vm3137_vm2, %v9265_v10, %v3225_v12  ;;  %v7057_v19 = vpop.f32.mrb[106].mxu0  ;;  %v3207_v20 = vsel %vm3206_vm6, %v3204_v26, %v3201_v9  ;;  %v7971_v33 = vpop.eup %7970  ;;  %v3253_v56 = vadd.f32 1.0, %v9343_v22 }
 0x482   : > { %v3161_v24 = vmin.f32 %v9331_v62, 20.0  ;;  %6085 = vst.msk [vmem:[%s9271_s6 + $0x148] sm:$0xff] %vm3582_vm1, %v9331_v62  ;;  %v9350_v25 = vadd.f32 %v7057_v19, %v9259_v34  ;;  %v3343_v27 = vsel %vm3135_vm3, %v9268_v1, %v3207_v20  ;;  %v3107_v29 = vpop.f32.mrb[107].mxu0  ;;  %v7973_v41 = vpop.eup %7972  ;;  %v9368_v40 = vadd.f32 1e-06, %v3345_v17 }
 0x483   : > { %v3159_v35 = vmin.f32 %v9334_v16, 20.0  ;;  %6083 = vst.msk [vmem:[%s9271_s6 + $0x108] sm:$0xff] %vm3582_vm1, %v9334_v16  ;;  %v9359_v54 = vadd.f32 1e-06, %v3343_v27  ;;  %v9362_v49 = vadd.f32 %v9259_v34, %v3107_v29  ;;  %v7975_v44 = vpop.eup %7974  ;;  %v3228_v14 = vmul.f32 0.6931472, %v7973_v41  ;;  %v3410_v5 = vpop.permute.xlu0 %3409 }
 0x484   : > { %v3187_v31 = vmul.f32 1.442695, %v3161_v24  ;;  %v3162_v50 = vmin.f32 %v9350_v25, 20.0  ;;  %6086 = vst.msk [vmem:[%s9271_s6 + $0x168] sm:$0xff] %vm3582_vm1, %v9350_v25  ;;  %v3210_v52 = vmul.f32 0.6931472, %v7975_v44  ;;  %v7977_v57 = vpop.eup %7976  ;;  %v3457_v2 = vmul.f32 %v3412_v61, %v9368_v40  ;;  %v3414_v20 = vpop.permute.xlu1 %3413 }
 0x485   : > { %v3183_v45 = vmul.f32 1.442695, %v3159_v35  ;;  %v3455_v47 = vmul.f32 %v3408_v8, %v9359_v54  ;;  %v3160_v28 = vmin.f32 %v9362_v49, 20.0  ;;  %6084 = vst.msk [vmem:[%s9271_s6 + $0x128] sm:$0xff] %vm3582_vm1, %v9362_v49  ;;  %v3235_v53 = vadd.f32 1.0, %v7971_v33  ;;  %v9390_v23 = vpop.eup %7978 }
 0x486   : > { %7980 = vpow2.f32 %v3187_v31  ;;  %v3234_v42 = vsel %vm9339_vm7, %v3231_v32, %v3228_v14  ;;  %v3238_v55 = vmul.f32 -0.5, %v7971_v33  ;;  %v3216_v36 = vsel %vm9364_vm8, %v3213_v43, %v3210_v52 }
 0x487   : > { %7982 = vpow2.f32 %v3183_v45  ;;  %v3185_v11 = vmul.f32 1.442695, %v3160_v28  ;;  %3487 = vrot.lane.b32.xlu0 %v3455_v47, %s8218_s25  ;;  %v3346_v59 = vsel %vm3138_vm5, %v9277_v15, %v3234_v42  ;;  %v3189_v4 = vmul.f32 1.442695, %v3162_v50 }
 0x488   : > { %v3344_v6 = vsel %vm3136_vm9, %v9284_v18, %v3216_v36  ;;  %v3244_v9 = vadd.f32 1.0, %v7977_v57  ;;  %v3247_v26 = vmul.f32 -0.5, %v7977_v57  ;;  %v9396_v39 = vadd.f32 1e-06, %v3346_v59 }
 0x489   : > { %7984 = vpow2.f32 %v3185_v11  ;;  %v9394_v7 = vadd.f32 1e-06, %v3344_v6  ;;  %v3239_v63 = vadd.f32 1.0, %v3238_v55  ;;  %v3241_v12 = vand.u32 2147483647, %v7971_v33 }
 0x48a   : > { %7986 = vlog2.f32 %v3235_v53  ;;  %v3250_v17 = vand.u32 2147483647, %v7977_v57  ;;  %v3256_v19 = vmul.f32 -0.5, %v9343_v22  ;;  %v3248_v21 = vadd.f32 1.0, %v3247_v26 }
 0x48b   : > { %3491 = vrot.lane.b32.xlu0 %v3457_v2, %s8218_s25  ;;  %7988 = vlog2.f32 %v3253_v56  ;;  %v3456_v13 = vmul.f32 %v3410_v5, %v9394_v7  ;;  %v3262_v24 = vadd.f32 1.0, %v9390_v23  ;;  %v3265_v27 = vmul.f32 -0.5, %v9390_v23 }
 0x48c   : > { %7990 = vlog2.f32 %v3244_v9  ;;  %v3259_v29 = vand.u32 2147483647, %v9343_v22  ;;  %v3240_v32 = vmul.f32 %v7971_v33, %v3239_v63  ;;  %vm9406_vm11 = vcmp.lt.f32.partialorder %v3241_v12, 0.0004427343 }
 0x48d   : > { %7992 = vpow2.f32 %v3189_v4  ;;  %3489 = vrot.lane.b32.xlu1 %v3456_v13, %s8218_s25  ;;  %v3458_v41 = vmul.f32 %v3414_v20, %v9396_v39  ;;  %vm9416_vm12 = vcmp.lt.f32.partialorder %v3250_v17, 0.0004427343  ;;  %v3257_v33 = vadd.f32 1.0, %v3256_v19  ;;  %v3416_v17 = vpop.permute.xlu0 %3415 }
 0x48e   : > { %7994 = vlog2.f32 %v3262_v24  ;;  %v3249_v47 = vmul.f32 %v7977_v57, %v3248_v21  ;;  %v3266_v14 = vadd.f32 1.0, %v3265_v27  ;;  %vm9436_vm15 = vcmp.lt.f32.partialorder %v3259_v29, 0.0004427343 }
 0x48f   : > { %v7060_v8 = vpop.f32.mrb[108].mxu0  ;;  %v3268_v36 = vand.u32 2147483647, %v9390_v23  ;;  %v3258_v6 = vmul.f32 %v9343_v22, %v3257_v33  ;;  %vm3142_vm2 = vcmp.gt.f32.partialorder %v9305_v37, 20.0  ;;  %vm3143_vm5 = vcmp.gt.f32.partialorder %v9334_v16, 20.0 }
 0x490   : > { %v9410_v38 = vpop.eup %7980  ;;  %v9414_v31 = vadd.f32 %v7060_v8, %v9259_v34  ;;  %v3120_v50 = vpop.f32.mrb[109].mxu0  ;;  %v3267_v12 = vmul.f32 %v9390_v23, %v3266_v14  ;;  %vm3145_vm7 = vcmp.gt.f32.partialorder %v9331_v62, 20.0  ;;  %vm3144_vm8 = vcmp.gt.f32.partialorder %v9362_v49, 20.0 }
 0x491   : > { %v9421_v44 = vpop.eup %7982  ;;  %v9424_v45 = vadd.f32 %v9259_v34, %v3120_v50  ;;  %v7061_v28 = vpop.f32.mrb[110].mxu0  ;;  %v3289_v52 = vadd.f32 1.0, %v9410_v38  ;;  %3493 = vrot.lane.b32.xlu1 %v3458_v41, %s8218_s25  ;;  %v3292_v21 = vmul.f32 -0.5, %v9410_v38  ;;  %vm3269_vm3 = vcmp.lt.f32.partialorder %v3268_v36, 0.0004427343 }
 0x492   : > { %v3165_v53 = vmin.f32 %v9414_v31, 20.0  ;;  %6089 = vst.msk [vmem:[%s9271_s6 + $0x1c8] sm:$0xff] %vm3582_vm1, %v9414_v31  ;;  %v9434_v56 = vadd.f32 %v7061_v28, %v9259_v34  ;;  %v3123_v61 = vpop.f32.mrb[111].mxu0  ;;  %v3271_v57 = vadd.f32 1.0, %v9421_v44  ;;  %v3274_v20 = vmul.f32 -0.5, %v9421_v44  ;;  %v3418_v41 = vpop.permute.xlu1 %3417 }
 0x493   : > { %v9441_v42 = vpop.eup %7984  ;;  %v3163_v55 = vmin.f32 %v9424_v45, 20.0  ;;  %6087 = vst.msk [vmem:[%s9271_s6 + $0x188] sm:$0xff] %vm3582_vm1, %v9424_v45  ;;  %v9448_v59 = vadd.f32 %v9259_v34, %v3123_v61  ;;  %7996 = vlog2.f32 %v3289_v52  ;;  %v3420_v43 = vpop.permute.xlu0 %3419 }
 0x494   : > { %v7987_v2 = vpop.eup %7986  ;;  %v3195_v4 = vmul.f32 1.442695, %v3165_v53  ;;  %v3166_v5 = vmin.f32 %v9434_v56, 20.0  ;;  %6090 = vst.msk [vmem:[%s9271_s6 + $0x1e8] sm:$0xff] %vm3582_vm1, %v9434_v56  ;;  %7998 = vlog2.f32 %v3271_v57  ;;  %v3280_v22 = vadd.f32 1.0, %v9441_v42 }
 0x495   : > { %v7989_v9 = vpop.eup %7988  ;;  %v3237_v26 = vmul.f32 0.6931472, %v7987_v2  ;;  %v3191_v63 = vmul.f32 1.442695, %v3163_v55  ;;  %v3164_v34 = vmin.f32 %v9448_v59, 20.0  ;;  %6088 = vst.msk [vmem:[%s9271_s6 + $0x1a8] sm:$0xff] %vm3582_vm1, %v9448_v59 }
 0x496   : > { %v7991_v13 = vpop.eup %7990  ;;  %v3255_v19 = vmul.f32 0.6931472, %v7989_v9  ;;  %v3197_v50 = vmul.f32 1.442695, %v3166_v5  ;;  %v3275_v61 = vadd.f32 1.0, %v3274_v20 }
 0x497   : > { %v3243_v24 = vsel %vm9406_vm11, %v3240_v32, %v3237_v26  ;;  %8000 = vpow2.f32 %v3191_v63  ;;  %v3246_v27 = vmul.f32 0.6931472, %v7991_v13  ;;  %v3193_v29 = vmul.f32 1.442695, %v3164_v34  ;;  %v9467_v8 = vpop.eup %7992  ;;  %v3422_v34 = vpop.permute.xlu1 %3421 }
 0x498   : > { %v3347_v23 = vsel %vm3139_vm10, %v9298_v3, %v3243_v24  ;;  %8002 = vpow2.f32 %v3195_v4  ;;  %v3261_v33 = vsel %vm9436_vm15, %v3258_v6, %v3255_v19  ;;  %v7995_v28 = vpop.eup %7994  ;;  %v3277_v2 = vand.u32 2147483647, %v9421_v44 }
 0x499   : > { %v9474_v14 = vadd.f32 1e-06, %v3347_v23  ;;  %v3252_v32 = vsel %vm9416_vm12, %v3249_v47, %v3246_v27  ;;  %8004 = vpow2.f32 %v3193_v29  ;;  %v3349_v35 = vsel %vm3141_vm13, %v9295_v30, %v3261_v33  ;;  %v3424_v27 = vpop.permute.xlu0 %3423 }
 0x49a   : > { %v3348_v52 = vsel %vm3140_vm14, %v9312_v51, %v3252_v32  ;;  %v3264_v53 = vmul.f32 0.6931472, %v7995_v28  ;;  %8006 = vlog2.f32 %v3280_v22  ;;  %v9487_v55 = vadd.f32 1e-06, %v3349_v35 }
 0x49b   : > { %v3459_v11 = vmul.f32 %v3416_v17, %v9474_v14  ;;  %v9485_v57 = vadd.f32 1e-06, %v3348_v52  ;;  %v3293_v4 = vadd.f32 1.0, %v3292_v21  ;;  %v3295_v5 = vand.u32 2147483647, %v9410_v38 }
 0x49c   : > { %v3270_v47 = vsel %vm3269_vm3, %v3267_v12, %v3264_v53  ;;  %8008 = vpow2.f32 %v3197_v50  ;;  %v3283_v63 = vmul.f32 -0.5, %v9441_v42  ;;  %v3276_v13 = vmul.f32 %v9421_v44, %v3275_v61 }
 0x49d   : > { %v7997_v6 = vpop.eup %7996  ;;  %v3460_v9 = vmul.f32 %v3418_v41, %v9485_v57  ;;  %v3350_v26 = vsel %vm3142_vm2, %v9305_v37, %v3270_v47  ;;  %3495 = vrot.lane.b32.xlu0 %v3459_v11, %s8218_s25  ;;  %v3294_v19 = vmul.f32 %v9410_v38, %v3293_v4  ;;  %v3461_v20 = vmul.f32 %v3420_v43, %v9487_v55 }
 0x49e   : > { %v7999_v36 = vpop.eup %7998  ;;  %v9497_v12 = vadd.f32 1e-06, %v3350_v26  ;;  %v3291_v17 = vmul.f32 0.6931472, %v7997_v6  ;;  %vm9503_vm4 = vcmp.lt.f32.partialorder %v3295_v5, 0.0004427343  ;;  %v3428_v6 = vpop.permute.xlu0 %3427 }
 0x49f   : > { %3497 = vrot.lane.b32.xlu1 %v3460_v9, %s8218_s25  ;;  %v3273_v22 = vmul.f32 0.6931472, %v7999_v36  ;;  %v3298_v24 = vadd.f32 1.0, %v9467_v8  ;;  %vm3278_vm6 = vcmp.lt.f32.partialorder %v3277_v2, 0.0004427343  ;;  %v3284_v41 = vadd.f32 1.0, %v3283_v63 }
 0x4a0   : > { %v3297_v38 = vsel %vm9503_vm4, %v3294_v19, %v3291_v17  ;;  %v3462_v29 = vmul.f32 %v3422_v34, %v9497_v12  ;;  %v3286_v28 = vand.u32 2147483647, %v9441_v42  ;;  %v3301_v61 = vmul.f32 -0.5, %v9467_v8  ;;  %v3426_v17 = vpop.permute.xlu1 %3425 }
 0x4a1   : > { %v9512_v44 = vpop.eup %8000  ;;  %3499 = vrot.lane.b32.xlu0 %v3461_v20, %s8218_s25  ;;  %v3279_v23 = vsel %vm3278_vm6, %v3276_v13, %v3273_v22  ;;  %8010 = vlog2.f32 %v3298_v24  ;;  %v3353_v32 = vsel %vm3145_vm7, %v9331_v62, %v3297_v38  ;;  %v3285_v4 = vmul.f32 %v9441_v42, %v3284_v41 }
 0x4a2   : > { %v9516_v50 = vpop.eup %8002  ;;  %v3351_v33 = vsel %vm3143_vm5, %v9334_v16, %v3279_v23  ;;  %v3307_v35 = vadd.f32 1.0, %v9512_v44  ;;  %v9531_v5 = vadd.f32 1e-06, %v3353_v32  ;;  %vm3287_vm9 = vcmp.lt.f32.partialorder %v3286_v28, 0.0004427343 }
 0x4a3   : > { %v9522_v52 = vpop.eup %8004  ;;  %3501 = vrot.lane.b32.xlu1 %v3462_v29, %s8218_s25  ;;  %v9525_v53 = vadd.f32 1e-06, %v3351_v33  ;;  %v3302_v63 = vadd.f32 1.0, %v3301_v61  ;;  %v3310_v36 = vmul.f32 -0.5, %v9512_v44  ;;  %v3325_v34 = vadd.f32 1.0, %v9516_v50 }
 0x4a4   : > { %v8007_v11 = vpop.eup %8006  ;;  %8012 = vlog2.f32 %v3307_v35  ;;  %v3316_v43 = vadd.f32 1.0, %v9522_v52  ;;  %v3304_v42 = vand.u32 2147483647, %v9467_v8  ;;  %v3465_v20 = vmul.f32 %v3428_v6, %v9531_v5 }
 0x4a5   : > { %v3463_v47 = vmul.f32 %v3424_v27, %v9525_v53  ;;  %v3282_v2 = vmul.f32 0.6931472, %v8007_v11  ;;  %v3319_v22 = vmul.f32 -0.5, %v9522_v52  ;;  %v3303_v38 = vmul.f32 %v9467_v8, %v3302_v63  ;;  %v3430_v8 = vpop.permute.xlu1 %3429  ;;  %v3432_v63 = vpop.permute.xlu0 %3431 }
 0x4a6   : > { %8014 = vlog2.f32 %v3316_v43  ;;  %v9534_v9 = vpop.eup %8008  ;;  %v3311_v29 = vadd.f32 1.0, %v3310_v36  ;;  %v3313_v41 = vand.u32 2147483647, %v9512_v44  ;;  %v3328_v33 = vmul.f32 -0.5, %v9516_v50 }
 0x4a7   : > { %v3288_v26 = vsel %vm3287_vm9, %v3285_v4, %v3282_v2  ;;  %3503 = vrot.lane.b32.xlu0 %v3463_v47, %s8218_s25  ;;  %8016 = vlog2.f32 %v3325_v34  ;;  %v3334_v21 = vadd.f32 1.0, %v9534_v9  ;;  %vm3305_vm10 = vcmp.lt.f32.partialorder %v3304_v42, 0.0004427343 }
 0x4a8   : > { %v3352_v13 = vsel %vm3144_vm8, %v9362_v49, %v3288_v26  ;;  %v3320_v28 = vadd.f32 1.0, %v3319_v22  ;;  %vm3146_vm11 = vcmp.gt.f32.partialorder %v9350_v25, 20.0  ;;  %v3322_v61 = vand.u32 2147483647, %v9522_v52 }
 0x4a9   : > { %v9541_v19 = vadd.f32 1e-06, %v3352_v13  ;;  %8018 = vlog2.f32 %v3334_v21  ;;  %v3312_v47 = vmul.f32 %v9512_v44, %v3311_v29  ;;  %v3337_v2 = vmul.f32 -0.5, %v9534_v9 }
 0x4aa   : > { %vm3147_vm12 = vcmp.gt.f32.partialorder %v9424_v45, 20.0  ;;  %vm3314_vm13 = vcmp.lt.f32.partialorder %v3313_v41, 0.0004427343  ;;  %v3329_v26 = vadd.f32 1.0, %v3328_v33  ;;  %v3321_v13 = vmul.f32 %v9522_v52, %v3320_v28 }
 0x4ab   : > { %v8011_v24 = vpop.eup %8010  ;;  %v3464_v27 = vmul.f32 %v3426_v17, %v9541_v19  ;;  %3507 = vrot.lane.b32.xlu0 %v3465_v20, %s8218_s25  ;;  %v3331_v42 = vand.u32 2147483647, %v9516_v50  ;;  %vm3323_vm14 = vcmp.lt.f32.partialorder %v3322_v61, 0.0004427343  ;;  %vm3148_vm15 = vcmp.gt.f32.partialorder %v9448_v59, 20.0  ;;  %v3436_v61 = vpop.permute.xlu0 %3435 }
 0x4ac   : > { %v3300_v23 = vmul.f32 0.6931472, %v8011_v24  ;;  %v3338_v24 = vadd.f32 1.0, %v3337_v2  ;;  %v3330_v52 = vmul.f32 %v9516_v50, %v3329_v26  ;;  %vm3149_vm3 = vcmp.gt.f32.partialorder %v9414_v31, 20.0 }
 0x4ad   : > { %3505 = vrot.lane.b32.xlu1 %v3464_v27, %s8218_s25  ;;  %v3434_v27 = vpop.permute.xlu1 %3433  ;;  %vm3332_vm2 = vcmp.lt.f32.partialorder %v3331_v42, 0.0004427343  ;;  %vm3150_vm5 = vcmp.gt.f32.partialorder %v9434_v56, 20.0 }
 0x4ae   : > { %v8013_v32 = vpop.eup %8012  ;;  %v3306_v35 = vsel %vm3305_vm10, %v3303_v38, %v3300_v23  ;;  %v3340_v23 = vand.u32 2147483647, %v9534_v9 }
 0x4af   : > { %v3354_v11 = vsel %vm3146_vm11, %v9350_v25, %v3306_v35  ;;  %v3309_v43 = vmul.f32 0.6931472, %v8013_v32 }
 0x4b0   : > { %v8015_v4 = vpop.eup %8014  ;;  %v9557_v6 = vadd.f32 1e-06, %v3354_v11  ;;  %vm3341_vm4 = vcmp.lt.f32.partialorder %v3340_v23, 0.0004427343 }
 0x4b1   : > { %v3315_v36 = vsel %vm3314_vm13, %v3312_v47, %v3309_v43  ;;  %v3318_v34 = vmul.f32 0.6931472, %v8015_v4  ;;  %v8017_v20 = vpop.eup %8016  ;;  %v3339_v43 = vmul.f32 %v9534_v9, %v3338_v24  ;;  %v3438_v4 = vpop.permute.xlu1 %3437  ;;  %v7708_v9 = vld [vmem:[#allocation7 + $0x80] ss:$16 sps:$4 sm:$0xff]  }
 0x4b2   : > { %v3466_v17 = vmul.f32 %v3430_v8, %v9557_v6  ;;  %v3355_v44 = vsel %vm3147_vm12, %v9424_v45, %v3315_v36  ;;  %v3327_v29 = vmul.f32 0.6931472, %v8017_v20 }
 0x4b3   : > { %v3371_v22 = vadd.f32 1e-06, %v3355_v44  ;;  %v3324_v21 = vsel %vm3323_vm14, %v3321_v13, %v3318_v34  ;;  %v8019_v28 = vpop.eup %8018 }
 0x4b4   : > { %3509 = vrot.lane.b32.xlu1 %v3466_v17, %s8218_s25  ;;  %v3356_v38 = vsel %vm3148_vm15, %v9448_v59, %v3324_v21  ;;  %v3333_v32 = vsel %vm3332_vm2, %v3330_v52, %v3327_v29  ;;  %v3336_v11 = vmul.f32 0.6931472, %v8019_v28  ;;  %v7699_v29 = vld [vmem:[#allocation7 + $0x48] ss:$16 sps:$4 sm:$0xff]  }
 0x4b5   : > { %v3467_v41 = vmul.f32 %v3432_v63, %v3371_v22  ;;  %v3372_v33 = vadd.f32 1e-06, %v3356_v38  ;;  %v3357_v8 = vsel %vm3149_vm3, %v9414_v31, %v3333_v32  ;;  %v7695_v38 = vld [vmem:[#allocation7 + $0x2c] ss:$16 sps:$4 sm:$0xff]   ;;  %v7705_v28 = vld [vmem:[#allocation7 + $0x68] ss:$16 sps:$4 sm:$0xff]  }
 0x4b6   : > { %v3373_v47 = vadd.f32 1e-06, %v3357_v8  ;;  %v3342_v50 = vsel %vm3341_vm4, %v3339_v43, %v3336_v11 }
 0x4b7   : > { %v3468_v35 = vmul.f32 %v3434_v27, %v3372_v33  ;;  %3511 = vrot.lane.b32.xlu0 %v3467_v41, %s8218_s25  ;;  %v3358_v26 = vsel %vm3150_vm5, %v9434_v56, %v3342_v50  ;;  %v7687_v27 = vld [vmem:[#allocation7 + $0x8] ss:$16 sps:$4 sm:$0xff]  }
 0x4b8   : > { %v3469_v2 = vmul.f32 %v3436_v61, %v3373_v47  ;;  %v3374_v63 = vadd.f32 1e-06, %v3358_v26 }
 0x4b9   : > { %3513 = vrot.lane.b32.xlu1 %v3468_v35, %s8218_s25  ;;  %v7713_v35 = vld [vmem:[#allocation7 + $0x8c] ss:$16 sps:$4 sm:$0xff]  }
 0x4ba   : > { %v3470_v36 = vmul.f32 %v3438_v4, %v3374_v63 }
 0x4bb   : > { %3515 = vrot.lane.b32.xlu0 %v3469_v2, %s8218_s25  ;;  %v7717_v2 = vld [vmem:[#allocation7 + $0xa8] ss:$16 sps:$4 sm:$0xff]  }
 0x4bd   : > { %3517 = vrot.lane.b32.xlu1 %v3470_v36, %s8218_s25 }
 0x4bf   : > { %6107 = vrot.lane.b32.xlu0 %v9359_v54, %s8218_s25  ;;  %v7684_v54 = vld [vmem:[#allocation7] ss:$16 sps:$4 sm:$0xff]  }
 0x4c1   : > { %6109 = vrot.lane.b32.xlu1 %v9394_v7, %s8218_s25  ;;  %v7689_v7 = vld [vmem:[#allocation7 + $0xc] ss:$16 sps:$4 sm:$0xff]  }
 0x4c2   : > { %4055 = vmatprep.subr.bf16.mxu1 %v7689_v7 }
 0x4c3   : > { %6111 = vrot.lane.b32.xlu0 %v9368_v40, %s8218_s25  ;;  %v7686_v40 = vld [vmem:[#allocation7 + $0x4] ss:$16 sps:$4 sm:$0xff]  }
 0x4c4   : > { %3942 = vmatprep.subr.bf16.mxu0 %v7686_v40 }
 0x4c5   : > { %6113 = vrot.lane.b32.xlu1 %v9396_v39, %s8218_s25  ;;  %v7692_v39 = vld [vmem:[#allocation7 + $0x24] ss:$16 sps:$4 sm:$0xff]   ;;  %3943 = vmatpush1.bf16.msra.mxu0 %v7684_v54 }
 0x4c6   : > { %3944 = vmatprep.subr.bf16.mxu0 %v7692_v39 }
 0x4c7   : > { %6115 = vrot.lane.b32.xlu0 %v9474_v14, %s8218_s25  ;;  %v7690_v14 = vld [vmem:[#allocation7 + $0x20] ss:$16 sps:$4 sm:$0xff]  }
 0x4c9   : > { %6117 = vrot.lane.b32.xlu1 %v9485_v57, %s8218_s25  ;;  %v7698_v57 = vld [vmem:[#allocation7 + $0x44] ss:$16 sps:$4 sm:$0xff]   ;;  %3945 = vmatpush1.bf16.msra.mxu0 %v7690_v14 }
 0x4ca   : > { %3946 = vmatprep.subr.bf16.mxu0 %v7698_v57 }
 0x4cb   : > { %6119 = vrot.lane.b32.xlu0 %v9487_v55, %s8218_s25  ;;  %v7696_v55 = vld [vmem:[#allocation7 + $0x40] ss:$16 sps:$4 sm:$0xff]  }
 0x4cd   : > { %6121 = vrot.lane.b32.xlu1 %v9497_v12, %s8218_s25  ;;  %v7704_v12 = vld [vmem:[#allocation7 + $0x64] ss:$16 sps:$4 sm:$0xff]   ;;  %3947 = vmatpush1.bf16.msra.mxu0 %v7696_v55 }
 0x4ce   : > { %3948 = vmatprep.subr.bf16.mxu0 %v7704_v12 }
 0x4cf   : > { %6123 = vrot.lane.b32.xlu0 %v9525_v53, %s8218_s25  ;;  %v7702_v53 = vld [vmem:[#allocation7 + $0x60] ss:$16 sps:$4 sm:$0xff]  }
 0x4d1   : > { %6125 = vrot.lane.b32.xlu1 %v9541_v19, %s8218_s25  ;;  %3949 = vmatpush1.bf16.msra.mxu0 %v7702_v53  ;;  %v7716_v19 = vld [vmem:[#allocation7 + $0xa4] ss:$16 sps:$4 sm:$0xff]  }
 0x4d3   : > { %6127 = vrot.lane.b32.xlu0 %v9531_v5, %s8218_s25  ;;  %v7710_v5 = vld [vmem:[#allocation7 + $0x84] ss:$16 sps:$4 sm:$0xff]  }
 0x4d4   : > { %3950 = vmatprep.subr.bf16.mxu0 %v7710_v5 }
 0x4d5   : > { %6129 = vrot.lane.b32.xlu1 %v9557_v6, %s8218_s25  ;;  %3951 = vmatpush1.bf16.msra.mxu0 %v7708_v9  ;;  %v7714_v6 = vld [vmem:[#allocation7 + $0xa0] ss:$16 sps:$4 sm:$0xff]  }
 0x4d6   : > { %3952 = vmatprep.subr.bf16.mxu0 %v7716_v19 }
 0x4d7   : > { %6131 = vrot.lane.b32.xlu0 %v3371_v22, %s8218_s25 }
 0x4d9   : > { %6133 = vrot.lane.b32.xlu1 %v3372_v33, %s8218_s25  ;;  %3953 = vmatpush1.bf16.msra.mxu0 %v7714_v6 }
 0x4db   : > { %6135 = vrot.lane.b32.xlu0 %v3373_v47, %s8218_s25  ;;  %v7719_v47 = vld [vmem:[#allocation7 + $0xac] ss:$16 sps:$4 sm:$0xff]  }
 0x4dd   : > { %6137 = vrot.lane.b32.xlu1 %v3374_v63, %s8218_s25 }
 0x4f9   : > { %v3488_v34 = vpop.permute.xlu0 %3487 }
 0x4fa   : > { %v3535_v13 = vadd.f32 %v3488_v34, %v9268_v1 }
 0x4fc   : > { %6171 = vst.msk [vmem:[%s9271_s6 + $0x18] sm:$0xff] %vm3582_vm1, %v3535_v13 }
 0x4fd   : > { %v3492_v42 = vpop.permute.xlu0 %3491 }
 0x4fe   : > { %v3537_v17 = vadd.f32 %v3492_v42, %v9265_v10  ;;  %v7693_v10 = vld [vmem:[#allocation7 + $0x28] ss:$16 sps:$4 sm:$0xff]  }
 0x4ff   : > { %v3490_v44 = vpop.permute.xlu1 %3489 }
 0x500   : > { %6173 = vst.msk [vmem:[%s9271_s6 + $0x58] sm:$0xff] %vm3582_vm1, %v3537_v17  ;;  %v3536_v20 = vadd.f32 %v3490_v44, %v9284_v18  ;;  %v7701_v18 = vld [vmem:[#allocation7 + $0x4c] ss:$16 sps:$4 sm:$0xff]  }
 0x502   : > { %v3551_v22 = vpack.c.bf16 %v3536_v20, %v3535_v13  ;;  %6172 = vst.msk [vmem:[%s9271_s6 + $0x38] sm:$0xff] %vm3582_vm1, %v3536_v20 }
 0x503   : > { %v3494_v21 = vpop.permute.xlu1 %3493 }
 0x504   : > { %v3538_v24 = vadd.f32 %v3494_v21, %v9277_v15  ;;  %7066 = vmatprep.mubr.msk.bf16.mxu1 %vm3582_vm1, %v3551_v22  ;;  %v7707_v15 = vld [vmem:[#allocation7 + $0x6c] ss:$16 sps:$4 sm:$0xff]  }
 0x506   : > { %v3552_v1 = vpack.c.bf16 %v3538_v24, %v3537_v17  ;;  %6174 = vst.msk [vmem:[%s9271_s6 + $0x78] sm:$0xff] %vm3582_vm1, %v3538_v24  ;;  %v7720_v24 = vld [vmem:[#allocation7 + $0xc0] ss:$16 sps:$4 sm:$0xff]  }
 0x508   : > { %7067 = vmatmul.mubr.msk.bf16.vlgmr.msra.gmra.mrb[96].mxu1 %vm3582_vm1, %v3552_v1  ;;  %v7723_v1 = vld [vmem:[#allocation7 + $0xc8] ss:$16 sps:$4 sm:$0xff]  }
 0x509   : > { %4056 = vmatpush1.bf16.msra.mxu1 %v7687_v27  ;;  %v7722_v27 = vld [vmem:[#allocation7 + $0xc4] ss:$16 sps:$4 sm:$0xff]  }
 0x50a   : > { %4057 = vmatprep.subr.bf16.mxu1 %v7695_v38  ;;  %3954 = vmatprep.subr.bf16.mxu0 %v7722_v27  ;;  %v7725_v38 = vld [vmem:[#allocation7 + $0xcc] ss:$16 sps:$4 sm:$0xff]   ;;  %v7765_v27 = vld [vmem:[#allocation8 + $0xa8] ss:$16 sps:$4 sm:$0xff]  }
 0x50b   : > { %3955 = vmatpush1.bf16.msra.mxu0 %v7720_v24  ;;  %v7762_v24 = vld [vmem:[#allocation8 + $0xa0] ss:$16 sps:$4 sm:$0xff]  }
 0x50d   : > { %4058 = vmatpush1.bf16.msra.mxu1 %v7693_v10  ;;  %v7726_v10 = vld [vmem:[#allocation7 + $0xe0] ss:$16 sps:$4 sm:$0xff]  }
 0x50e   : > { %4059 = vmatprep.subr.bf16.mxu1 %v7701_v18  ;;  %v7728_v18 = vld [vmem:[#allocation7 + $0xe4] ss:$16 sps:$4 sm:$0xff]  }
 0x50f   : > { %v3496_v52 = vpop.permute.xlu0 %3495  ;;  %3956 = vmatprep.subr.bf16.mxu0 %v7728_v18  ;;  %v7771_v18 = vld [vmem:[#allocation8 + $0xc8] ss:$16 sps:$4 sm:$0xff]  }
 0x510   : > { %v3539_v23 = vadd.f32 %v3496_v52, %v9298_v3  ;;  %v7729_v52 = vld [vmem:[#allocation7 + $0xe8] ss:$16 sps:$4 sm:$0xff]   ;;  %3957 = vmatpush1.bf16.msra.mxu0 %v7726_v10  ;;  %v7768_v10 = vld [vmem:[#allocation8 + $0xc0] ss:$16 sps:$4 sm:$0xff]  }
 0x511   : > { %v3498_v41 = vpop.permute.xlu1 %3497  ;;  %4060 = vmatpush1.bf16.msra.mxu1 %v7699_v29  ;;  %v7731_v29 = vld [vmem:[#allocation7 + $0xec] ss:$16 sps:$4 sm:$0xff]  }
 0x512   : > { %6175 = vst.msk [vmem:[%s9271_s6 + $0x98] sm:$0xff] %vm3582_vm1, %v3539_v23  ;;  %v3540_v33 = vadd.f32 %v3498_v41, %v9312_v51  ;;  %4061 = vmatprep.subr.bf16.mxu1 %v7707_v15  ;;  %v7711_v51 = vld [vmem:[#allocation7 + $0x88] ss:$16 sps:$4 sm:$0xff]   ;;  %v7734_v15 = vld [vmem:[#allocation8 + $0x4] ss:$16 sps:$4 sm:$0xff]  }
 0x513   : > { %v3500_v32 = vpop.permute.xlu0 %3499  ;;  %5054 = vmatprep.subr.bf16.mxu0 %v7734_v15  ;;  %v9698_v41 = vld [vmem:[%s10165_s11] ss:$0 sm:$0xff]  ;;  %v7779_v15 = vld [vmem:[#allocation8 + $0xec] ss:$16 sps:$4 sm:$0xff]  }
 0x514   : > { %v3553_v61 = vpack.c.bf16 %v3540_v33, %v3539_v23  ;;  %6176 = vst.msk [vmem:[%s9271_s6 + $0xb8] sm:$0xff] %vm3582_vm1, %v3540_v33  ;;  %v3541_v8 = vadd.f32 %v3500_v32, %v9295_v30  ;;  %v7737_v23 = vld [vmem:[#allocation8 + $0xc] ss:$16 sps:$4 sm:$0xff]  }
 0x515   : > { %v3502_v11 = vpop.permute.xlu1 %3501  ;;  %4062 = vmatpush1.bf16.msra.mxu1 %v7705_v28 }
 0x516   : > { %6177 = vst.msk [vmem:[%s9271_s6 + $0xd8] sm:$0xff] %vm3582_vm1, %v3541_v8  ;;  %v3542_v3 = vadd.f32 %v3502_v11, %v9305_v37  ;;  %7070 = vmatprep.mubr.msk.bf16.mxu1 %vm3582_vm1, %v3553_v61  ;;  %4063 = vmatprep.subr.bf16.mxu1 %v7713_v35 }
 0x518   : > { %v3554_v43 = vpack.c.bf16 %v3542_v3, %v3541_v8  ;;  %6178 = vst.msk [vmem:[%s9271_s6 + $0xf8] sm:$0xff] %vm3582_vm1, %v3542_v3 }
 0x519   : > { %v3504_v50 = vpop.permute.xlu0 %3503  ;;  %4064 = vmatpush1.bf16.msra.mxu1 %v7711_v51 }
 0x51a   : > { %7071 = vmatmul.mubr.msk.bf16.gmra.mrb[100].mxu1 %vm3582_vm1, %v3554_v43  ;;  %v3543_v30 = vadd.f32 %v3504_v50, %v9334_v16  ;;  %4065 = vmatprep.subr.bf16.mxu1 %v7719_v47 }
 0x51c   : > { %6179 = vst.msk [vmem:[%s9271_s6 + $0x118] sm:$0xff] %vm3582_vm1, %v3543_v30 }
 0x51d   : > { %v3508_v37 = vpop.permute.xlu0 %3507  ;;  %4066 = vmatpush1.bf16.msra.mxu1 %v7717_v2 }
 0x51e   : > { %v3545_v4 = vadd.f32 %v3508_v37, %v9331_v62  ;;  %4067 = vmatprep.subr.bf16.mxu1 %v7725_v38  ;;  %v7732_v37 = vld [vmem:[#allocation8] ss:$16 sps:$4 sm:$0xff]   ;;  %v7773_v38 = vld [vmem:[#allocation8 + $0xcc] ss:$16 sps:$4 sm:$0xff]  }
 0x51f   : > { %v3506_v26 = vpop.permute.xlu1 %3505 }
 0x520   : > { %v3544_v63 = vadd.f32 %v3506_v26, %v9362_v49  ;;  %6181 = vst.msk [vmem:[%s9271_s6 + $0x158] sm:$0xff] %vm3582_vm1, %v3545_v4  ;;  %v7740_v26 = vld [vmem:[#allocation8 + $0x24] ss:$16 sps:$4 sm:$0xff]  }
 0x521   : > { %4068 = vmatpush1.bf16.msra.mxu1 %v7723_v1  ;;  %v7770_v1 = vld [vmem:[#allocation8 + $0xc4] ss:$16 sps:$4 sm:$0xff]  }
 0x522   : > { %v3555_v36 = vpack.c.bf16 %v3544_v63, %v3543_v30  ;;  %6180 = vst.msk [vmem:[%s9271_s6 + $0x138] sm:$0xff] %vm3582_vm1, %v3544_v63  ;;  %4069 = vmatprep.subr.bf16.mxu1 %v7731_v29  ;;  %v7743_v63 = vld [vmem:[#allocation8 + $0x2c] ss:$16 sps:$4 sm:$0xff]  }
 0x524   : > { %7074 = vmatprep.mubr.msk.bf16.mxu1 %vm3582_vm1, %v3555_v36  ;;  %v7738_v36 = vld [vmem:[#allocation8 + $0x20] ss:$16 sps:$4 sm:$0xff]  }
 0x525   : > { %4070 = vmatpush1.bf16.msra.mxu1 %v7729_v52  ;;  %v7776_v52 = vld [vmem:[#allocation8 + $0xe4] ss:$16 sps:$4 sm:$0xff]  }
 0x526   : > { %v3510_v16 = vpop.permute.xlu1 %3509  ;;  %5280 = vmatprep.subr.bf16.mxu1 %v7737_v23 }
 0x527   : > { %v3546_v54 = vadd.f32 %v3510_v16, %v9350_v25  ;;  %v7741_v16 = vld [vmem:[#allocation8 + $0x28] ss:$16 sps:$4 sm:$0xff]  }
 0x529   : > { %v3556_v40 = vpack.c.bf16 %v3546_v54, %v3545_v4  ;;  %6182 = vst.msk [vmem:[%s9271_s6 + $0x178] sm:$0xff] %vm3582_vm1, %v3546_v54  ;;  %v3512_v62 = vpop.permute.xlu0 %3511  ;;  %v7735_v4 = vld [vmem:[#allocation8 + $0x8] ss:$16 sps:$4 sm:$0xff]   ;;  %v7746_v54 = vld [vmem:[#allocation8 + $0x44] ss:$16 sps:$4 sm:$0xff]  }
 0x52a   : > { %v3547_v7 = vadd.f32 %v3512_v62, %v9424_v45  ;;  %v7744_v62 = vld [vmem:[#allocation8 + $0x40] ss:$16 sps:$4 sm:$0xff]  }
 0x52b   : > { %7075 = vmatmul.mubr.msk.bf16.gmra.mrb[104].mxu1 %vm3582_vm1, %v3556_v40  ;;  %v3514_v49 = vpop.permute.xlu1 %3513  ;;  %v7749_v40 = vld [vmem:[#allocation8 + $0x4c] ss:$16 sps:$4 sm:$0xff]  }
 0x52c   : > { %6183 = vst.msk [vmem:[%s9271_s6 + $0x198] sm:$0xff] %vm3582_vm1, %v3547_v7  ;;  %v3548_v39 = vadd.f32 %v3514_v49, %v9448_v59 }
 0x52d   : > { %v3516_v25 = vpop.permute.xlu0 %3515 }
 0x52e   : > { %v3557_v14 = vpack.c.bf16 %v3548_v39, %v3547_v7  ;;  %6184 = vst.msk [vmem:[%s9271_s6 + $0x1b8] sm:$0xff] %vm3582_vm1, %v3548_v39  ;;  %v3549_v57 = vadd.f32 %v3516_v25, %v9414_v31  ;;  %v7747_v7 = vld [vmem:[#allocation8 + $0x48] ss:$16 sps:$4 sm:$0xff]   ;;  %v7752_v39 = vld [vmem:[#allocation8 + $0x64] ss:$16 sps:$4 sm:$0xff]  }
 0x52f   : > { %v3518_v45 = vpop.permute.xlu1 %3517 }
 0x530   : > { %7078 = vmatprep.mubr.msk.bf16.mxu1 %vm3582_vm1, %v3557_v14  ;;  %6185 = vst.msk [vmem:[%s9271_s6 + $0x1d8] sm:$0xff] %vm3582_vm1, %v3549_v57  ;;  %v3550_v55 = vadd.f32 %v3518_v45, %v9434_v56  ;;  %v7755_v14 = vld [vmem:[#allocation8 + $0x6c] ss:$16 sps:$4 sm:$0xff]  }
 0x531   : > { %v6108_v12 = vpop.permute.xlu0 %6107 }
 0x532   : > { %6155 = vst.msk [vmem:[%s9271_s6 + $0x10] sm:$0xff] %vm3582_vm1, %v6108_v12  ;;  %v3558_v59 = vpack.c.bf16 %v3550_v55, %v3549_v57  ;;  %6186 = vst.msk [vmem:[%s9271_s6 + $0x1f8] sm:$0xff] %vm3582_vm1, %v3550_v55 }
 0x533   : > { %v6110_v53 = vpop.permute.xlu1 %6109 }
 0x534   : > { %6156 = vst.msk [vmem:[%s9271_s6 + $0x30] sm:$0xff] %vm3582_vm1, %v6110_v53  ;;  %7079 = vmatmul.mubr.msk.bf16.gmra.mrb[108].mxu1 %vm3582_vm1, %v3558_v59  ;;  %v7750_v53 = vld [vmem:[#allocation8 + $0x60] ss:$16 sps:$4 sm:$0xff]  }
 0x535   : > { %v6112_v31 = vpop.permute.xlu0 %6111  ;;  %4087 = vmatprep.mubr.bf16.mxu1 %v8216_v0 }
 0x536   : > { %6157 = vst.msk [vmem:[%s9271_s6 + $0x50] sm:$0xff] %vm3582_vm1, %v6112_v31  ;;  %v7753_v31 = vld [vmem:[#allocation8 + $0x68] ss:$16 sps:$4 sm:$0xff]  }
 0x537   : > { %v6114_v56 = vpop.permute.xlu1 %6113 }
 0x538   : > { %6158 = vst.msk [vmem:[%s9271_s6 + $0x70] sm:$0xff] %vm3582_vm1, %v6114_v56 }
 0x539   : > { %v6116_v5 = vpop.permute.xlu0 %6115 }
 0x53a   : > { %6159 = vst.msk [vmem:[%s9271_s6 + $0x90] sm:$0xff] %vm3582_vm1, %v6116_v5  ;;  %v7758_v5 = vld [vmem:[#allocation8 + $0x84] ss:$16 sps:$4 sm:$0xff]  }
 0x53b   : > { %v6118_v9 = vpop.permute.xlu1 %6117 }
 0x53c   : > { %6160 = vst.msk [vmem:[%s9271_s6 + $0xb0] sm:$0xff] %vm3582_vm1, %v6118_v9  ;;  %v7761_v9 = vld [vmem:[#allocation8 + $0x8c] ss:$16 sps:$4 sm:$0xff]  }
 0x53d   : > { %v6120_v19 = vpop.permute.xlu0 %6119 }
 0x53e   : > { %6161 = vst.msk [vmem:[%s9271_s6 + $0xd0] sm:$0xff] %vm3582_vm1, %v6120_v19 }
 0x53f   : > { %v6122_v6 = vpop.permute.xlu1 %6121 }
 0x540   : > { %6162 = vst.msk [vmem:[%s9271_s6 + $0xf0] sm:$0xff] %vm3582_vm1, %v6122_v6 }
 0x541   : > { %v6124_v34 = vpop.permute.xlu0 %6123 }
 0x542   : > { %6163 = vst.msk [vmem:[%s9271_s6 + $0x110] sm:$0xff] %vm3582_vm1, %v6124_v34 }
 0x543   : > { %v6126_v13 = vpop.permute.xlu1 %6125 }
 0x544   : > { %6164 = vst.msk [vmem:[%s9271_s6 + $0x130] sm:$0xff] %vm3582_vm1, %v6126_v13 }
 0x545   : > { %v6128_v42 = vpop.permute.xlu0 %6127 }
 0x546   : > { %6165 = vst.msk [vmem:[%s9271_s6 + $0x150] sm:$0xff] %vm3582_vm1, %v6128_v42 }
 0x547   : > { %v6130_v17 = vpop.permute.xlu1 %6129 }
 0x548   : > { %6166 = vst.msk [vmem:[%s9271_s6 + $0x170] sm:$0xff] %vm3582_vm1, %v6130_v17 }
 0x549   : > { %v6132_v44 = vpop.permute.xlu0 %6131 }
 0x54a   : > { %6167 = vst.msk [vmem:[%s9271_s6 + $0x190] sm:$0xff] %vm3582_vm1, %v6132_v44  ;;  %v7756_v44 = vld [vmem:[#allocation8 + $0x80] ss:$16 sps:$4 sm:$0xff]  }
 0x54b   : > { %v6134_v20 = vpop.permute.xlu1 %6133 }
 0x54c   : > { %6168 = vst.msk [vmem:[%s9271_s6 + $0x1b0] sm:$0xff] %vm3582_vm1, %v6134_v20  ;;  %v7759_v20 = vld [vmem:[#allocation8 + $0x88] ss:$16 sps:$4 sm:$0xff]  }
 0x54d   : > { %v6136_v22 = vpop.permute.xlu0 %6135 }
 0x54e   : > { %6169 = vst.msk [vmem:[%s9271_s6 + $0x1d0] sm:$0xff] %vm3582_vm1, %v6136_v22  ;;  %v7764_v22 = vld [vmem:[#allocation8 + $0xa4] ss:$16 sps:$4 sm:$0xff]  }
 0x54f   : > { %v6138_v21 = vpop.permute.xlu1 %6137 }
 0x550   : > { %6170 = vst.msk [vmem:[%s9271_s6 + $0x1f0] sm:$0xff] %vm3582_vm1, %v6138_v21  ;;  %v7767_v21 = vld [vmem:[#allocation8 + $0xac] ss:$16 sps:$4 sm:$0xff]  }
 0x5db   : > { %v7068_v33 = vpop.f32.mrb[96].mxu1 }
 0x5dc   : > { %v3650_v28 = vadd.f32 %v7068_v33, %v9698_v41  ;;  %v3641_v32 = vpop.f32.mrb[97].mxu1 }
 0x5dd   : > { %v3642_v35 = vadd.f32 %v9698_v41, %v3641_v32  ;;  %v7069_v61 = vpop.f32.mrb[98].mxu1 }
 0x5de   : > { %v3653_v8 = vadd.f32 %v7069_v61, %v9698_v41  ;;  %v3644_v11 = vpop.f32.mrb[99].mxu1  ;;  %v3706_v51 = vmax.f32 %v3650_v28, 0.0 }
 0x5df   : > { %v3645_v3 = vadd.f32 %v9698_v41, %v3644_v11  ;;  %v3704_v47 = vmax.f32 %v3642_v35, 0.0  ;;  %v7777_v11 = vld [vmem:[#allocation8 + $0xe8] ss:$16 sps:$4 sm:$0xff]  }
 0x5e0   : > { %v3707_v43 = vmax.f32 %v3653_v8, 0.0  ;;  %v7774_v8 = vld [vmem:[#allocation8 + $0xe0] ss:$16 sps:$4 sm:$0xff]  }
 0x5e1   : > { %v3705_v50 = vmax.f32 %v3645_v3, 0.0 }
 0x5e2   : > { %v3721_v30 = vpack.c.bf16 %v3707_v43, %v3706_v51  ;;  %v7782_v51 = vld [vmem:[#allocation8 + $0x104] ss:$16 sps:$4 sm:$0xff]   ;;  %v7785_v43 = vld [vmem:[#allocation8 + $0x10c] ss:$16 sps:$4 sm:$0xff]  }
 0x5e3   : > { %v3720_v2 = vpack.c.bf16 %v3705_v50, %v3704_v47 }
 0x5e5   : > { %3975 = vmatmul.mubr.bf16.vlgmr.msra.gmra.mrb[112].mxu0 %v3720_v2  ;;  %4088 = vmatmul.mubr.bf16.vlgmr.msra.gmra.mrb[112].mxu1 %v3720_v2 }
 0x5e6   : > { %3984 = vmatprep.mubr.bf16.mxu0 %v8216_v0  ;;  %4097 = vmatprep.mubr.bf16.mxu1 %v8216_v0 }
 0x5e7   : > { %5055 = vmatpush1.bf16.msra.mxu0 %v7732_v37  ;;  %5281 = vmatpush1.bf16.msra.mxu1 %v7735_v4 }
 0x5e8   : > { %5056 = vmatprep.subr.bf16.mxu0 %v7740_v26  ;;  %5282 = vmatprep.subr.bf16.mxu1 %v7743_v63  ;;  %v7780_v26 = vld [vmem:[#allocation8 + $0x100] ss:$16 sps:$4 sm:$0xff]   ;;  %v7783_v63 = vld [vmem:[#allocation8 + $0x108] ss:$16 sps:$4 sm:$0xff]  }
 0x5eb   : > { %5057 = vmatpush1.bf16.msra.mxu0 %v7738_v36  ;;  %5283 = vmatpush1.bf16.msra.mxu1 %v7741_v16  ;;  %v7788_v36 = vld [vmem:[#allocation8 + $0x124] ss:$16 sps:$4 sm:$0xff]   ;;  %v7791_v16 = vld [vmem:[#allocation8 + $0x12c] ss:$16 sps:$4 sm:$0xff]  }
 0x5ec   : > { %5058 = vmatprep.subr.bf16.mxu0 %v7746_v54  ;;  %5284 = vmatprep.subr.bf16.mxu1 %v7749_v40 }
 0x5ed   : > { %v7072_v49 = vpop.f32.mrb[100].mxu1  ;;  %3985 = vmatmul.mubr.bf16.gmra.mrb[116].mxu0 %v3721_v30  ;;  %4098 = vmatmul.mubr.bf16.gmra.mrb[116].mxu1 %v3721_v30 }
 0x5ee   : > { %v3666_v25 = vadd.f32 %v7072_v49, %v9698_v41  ;;  %v3657_v57 = vpop.f32.mrb[101].mxu1  ;;  %3994 = vmatprep.mubr.bf16.mxu0 %v8216_v0  ;;  %4107 = vmatprep.mubr.bf16.mxu1 %v8216_v0  ;;  %v7789_v49 = vld [vmem:[#allocation8 + $0x128] ss:$16 sps:$4 sm:$0xff]  }
 0x5ef   : > { %v3658_v45 = vadd.f32 %v9698_v41, %v3657_v57  ;;  %v7073_v55 = vpop.f32.mrb[102].mxu1  ;;  %5059 = vmatpush1.bf16.msra.mxu0 %v7744_v62  ;;  %5285 = vmatpush1.bf16.msra.mxu1 %v7747_v7  ;;  %v7786_v7 = vld [vmem:[#allocation8 + $0x120] ss:$16 sps:$4 sm:$0xff]   ;;  %v7797_v57 = vld [vmem:[#allocation8 + $0x14c] ss:$16 sps:$4 sm:$0xff]  }
 0x5f0   : > { %v3669_v12 = vadd.f32 %v7073_v55, %v9698_v41  ;;  %v3660_v59 = vpop.f32.mrb[103].mxu1  ;;  %5060 = vmatprep.subr.bf16.mxu0 %v7752_v39  ;;  %5286 = vmatprep.subr.bf16.mxu1 %v7755_v14  ;;  %v3710_v19 = vmax.f32 %v3666_v25, 0.0  ;;  %v7794_v25 = vld [vmem:[#allocation8 + $0x144] ss:$16 sps:$4 sm:$0xff]  }
 0x5f1   : > { %v3661_v56 = vadd.f32 %v9698_v41, %v3660_v59  ;;  %v3708_v34 = vmax.f32 %v3658_v45, 0.0 }
 0x5f2   : > { %v3711_v6 = vmax.f32 %v3669_v12, 0.0 }
 0x5f3   : > { %v3709_v13 = vmax.f32 %v3661_v56, 0.0  ;;  %5061 = vmatpush1.bf16.msra.mxu0 %v7750_v53  ;;  %5287 = vmatpush1.bf16.msra.mxu1 %v7753_v31  ;;  %v7792_v31 = vld [vmem:[#allocation8 + $0x140] ss:$16 sps:$4 sm:$0xff]   ;;  %v7795_v56 = vld [vmem:[#allocation8 + $0x148] ss:$16 sps:$4 sm:$0xff]  }
 0x5f4   : > { %v3723_v42 = vpack.c.bf16 %v3711_v6, %v3710_v19  ;;  %5062 = vmatprep.subr.bf16.mxu0 %v7758_v5  ;;  %5288 = vmatprep.subr.bf16.mxu1 %v7761_v9  ;;  %v7800_v19 = vld [vmem:[#allocation8 + $0x164] ss:$16 sps:$4 sm:$0xff]   ;;  %v7803_v6 = vld [vmem:[#allocation8 + $0x16c] ss:$16 sps:$4 sm:$0xff]  }
 0x5f5   : > { %v3722_v17 = vpack.c.bf16 %v3709_v13, %v3708_v34 }
 0x5f7   : > { %3995 = vmatmul.mubr.bf16.gmra.mrb[120].mxu0 %v3722_v17  ;;  %4108 = vmatmul.mubr.bf16.gmra.mrb[120].mxu1 %v3722_v17  ;;  %v7806_v17 = vld [vmem:[#allocation8 + $0x184] ss:$16 sps:$4 sm:$0xff]  }
 0x5f8   : > { %4004 = vmatprep.mubr.bf16.mxu0 %v8216_v0  ;;  %4117 = vmatprep.mubr.bf16.mxu1 %v8216_v0 }
 0x5f9   : > { %5063 = vmatpush1.bf16.msra.mxu0 %v7756_v44  ;;  %5289 = vmatpush1.bf16.msra.mxu1 %v7759_v20  ;;  %v7809_v44 = vld [vmem:[#allocation8 + $0x18c] ss:$16 sps:$4 sm:$0xff]   ;;  %v7804_v20 = vld [vmem:[#allocation8 + $0x180] ss:$16 sps:$4 sm:$0xff]  }
 0x5fa   : > { %5064 = vmatprep.subr.bf16.mxu0 %v7764_v22  ;;  %5290 = vmatprep.subr.bf16.mxu1 %v7767_v21  ;;  %v7807_v22 = vld [vmem:[#allocation8 + $0x188] ss:$16 sps:$4 sm:$0xff]   ;;  %v7812_v21 = vld [vmem:[#allocation8 + $0x1a4] ss:$16 sps:$4 sm:$0xff]  }
 0x5fd   : > { %5065 = vmatpush1.bf16.msra.mxu0 %v7762_v24  ;;  %5291 = vmatpush1.bf16.msra.mxu1 %v7765_v27  ;;  %v7815_v24 = vld [vmem:[#allocation8 + $0x1ac] ss:$16 sps:$4 sm:$0xff]   ;;  %v7810_v27 = vld [vmem:[#allocation8 + $0x1a0] ss:$16 sps:$4 sm:$0xff]  }
 0x5fe   : > { %v7076_v29 = vpop.f32.mrb[104].mxu1  ;;  %5066 = vmatprep.subr.bf16.mxu0 %v7770_v1  ;;  %5292 = vmatprep.subr.bf16.mxu1 %v7773_v38  ;;  %v7813_v1 = vld [vmem:[#allocation8 + $0x1a8] ss:$16 sps:$4 sm:$0xff]   ;;  %v7816_v38 = vld [vmem:[#allocation8 + $0x1c0] ss:$16 sps:$4 sm:$0xff]  }
 0x5ff   : > { %v3682_v23 = vadd.f32 %v7076_v29, %v9698_v41  ;;  %v3673_v33 = vpop.f32.mrb[105].mxu1  ;;  %4005 = vmatmul.mubr.bf16.gmra.mrb[124].mxu0 %v3723_v42  ;;  %4118 = vmatmul.mubr.bf16.gmra.mrb[124].mxu1 %v3723_v42  ;;  %v7801_v42 = vld [vmem:[#allocation8 + $0x168] ss:$16 sps:$4 sm:$0xff]   ;;  %v7821_v29 = vld [vmem:[#allocation8 + $0x1cc] ss:$16 sps:$4 sm:$0xff]  }
 0x600   : > { %v3674_v28 = vadd.f32 %v9698_v41, %v3673_v33  ;;  %v7077_v32 = vpop.f32.mrb[106].mxu1  ;;  %4014 = vmatprep.mubr.bf16.mxu0 %v8216_v0  ;;  %4127 = vmatprep.mubr.bf16.mxu1 %v8216_v0  ;;  %v7830_v33 = vld [vmem:[#allocation8 + $0x204] ss:$16 sps:$4 sm:$0xff]  }
 0x601   : > { %v3685_v35 = vadd.f32 %v7077_v32, %v9698_v41  ;;  %v3676_v61 = vpop.f32.mrb[107].mxu1  ;;  %5067 = vmatpush1.bf16.msra.mxu0 %v7768_v10  ;;  %5293 = vmatpush1.bf16.msra.mxu1 %v7771_v18  ;;  %v3714_v47 = vmax.f32 %v3682_v23, 0.0  ;;  %v7818_v10 = vld [vmem:[#allocation8 + $0x1c4] ss:$16 sps:$4 sm:$0xff]   ;;  %v7819_v18 = vld [vmem:[#allocation8 + $0x1c8] ss:$16 sps:$4 sm:$0xff]  }
 0x602   : > { %v3677_v3 = vadd.f32 %v9698_v41, %v3676_v61  ;;  %5068 = vmatprep.subr.bf16.mxu0 %v7776_v52  ;;  %5294 = vmatprep.subr.bf16.mxu1 %v7779_v15  ;;  %v3712_v30 = vmax.f32 %v3674_v28, 0.0  ;;  %v7824_v52 = vld [vmem:[#allocation8 + $0x1e4] ss:$16 sps:$4 sm:$0xff]   ;;  %v7827_v15 = vld [vmem:[#allocation8 + $0x1ec] ss:$16 sps:$4 sm:$0xff]  }
 0x603   : > { %v3715_v50 = vmax.f32 %v3685_v35, 0.0  ;;  %v7825_v23 = vld [vmem:[#allocation8 + $0x1e8] ss:$16 sps:$4 sm:$0xff]   ;;  %v7833_v28 = vld [vmem:[#allocation8 + $0x20c] ss:$16 sps:$4 sm:$0xff]  }
 0x604   : > { %v3713_v2 = vmax.f32 %v3677_v3, 0.0  ;;  %v3760_v32 = vld [vmem:[%s10167_s13] sm:$0xf] }
 0x605   : > { %v3725_v37 = vpack.c.bf16 %v3715_v50, %v3714_v47  ;;  %5069 = vmatpush1.bf16.msra.mxu0 %v7774_v8  ;;  %5295 = vmatpush1.bf16.msra.mxu1 %v7777_v11  ;;  %v9734_v35 = vrot.slane %v3760_v32, %v8749_v46  ;;  %v9737_v61 = vrot.slane %v3760_v32, %v8765_v58 }
 0x606   : > { %v3724_v4 = vpack.c.bf16 %v3713_v2, %v3712_v30  ;;  %5070 = vmatprep.subr.bf16.mxu0 %v7782_v51  ;;  %5296 = vmatprep.subr.bf16.mxu1 %v7785_v43  ;;  %v9740_v8 = vrot.slane %v3760_v32, %v8754_v48  ;;  %v9743_v11 = vrot.slane %v3760_v32, %v8768_v60  ;;  %v7845_v32 = vld [vmem:[#allocation8 + $0x24c] ss:$16 sps:$4 sm:$0xff]  }
 0x607   : > { %v7080_v54 = vpop.f32.mrb[108].mxu1 }
 0x608   : > { %4015 = vmatmul.mubr.bf16.gmra.mrb[128].mxu0 %v3724_v4  ;;  %4128 = vmatmul.mubr.bf16.gmra.mrb[128].mxu1 %v3724_v4  ;;  %v3698_v40 = vadd.f32 %v7080_v54, %v9698_v41  ;;  %v3689_v62 = vpop.f32.mrb[109].mxu1 }
 0x609   : > { %4024 = vmatprep.mubr.bf16.mxu0 %v8216_v0  ;;  %4137 = vmatprep.mubr.bf16.mxu1 %v8216_v0  ;;  %v3690_v39 = vadd.f32 %v9698_v41, %v3689_v62  ;;  %v7081_v14 = vpop.f32.mrb[110].mxu1 }
 0x60a   : > { %5071 = vmatpush1.bf16.msra.mxu0 %v7780_v26  ;;  %5297 = vmatpush1.bf16.msra.mxu1 %v7783_v63  ;;  %v3701_v45 = vadd.f32 %v7081_v14, %v9698_v41  ;;  %v3692_v55 = vpop.f32.mrb[111].mxu1  ;;  %v3718_v59 = vmax.f32 %v3698_v40, 0.0 }
 0x60b   : > { %5072 = vmatprep.subr.bf16.mxu0 %v7788_v36  ;;  %5298 = vmatprep.subr.bf16.mxu1 %v7791_v16  ;;  %v3693_v12 = vadd.f32 %v9698_v41, %v3692_v55  ;;  %v3716_v5 = vmax.f32 %v3690_v39, 0.0  ;;  %v7798_v41 = vld [vmem:[#allocation8 + $0x160] ss:$16 sps:$4 sm:$0xff]  }
 0x60c   : > { %v3719_v53 = vmax.f32 %v3701_v45, 0.0 }
 0x60d   : > { %v3717_v9 = vmax.f32 %v3693_v12, 0.0 }
 0x60e   : > { %5073 = vmatpush1.bf16.msra.mxu0 %v7786_v7  ;;  %5299 = vmatpush1.bf16.msra.mxu1 %v7789_v49  ;;  %v3727_v34 = vpack.c.bf16 %v3719_v53, %v3718_v59 }
 0x60f   : > { %5074 = vmatprep.subr.bf16.mxu0 %v7794_v25  ;;  %5300 = vmatprep.subr.bf16.mxu1 %v7797_v57  ;;  %v3726_v13 = vpack.c.bf16 %v3717_v9, %v3716_v5  ;;  %v7828_v9 = vld [vmem:[#allocation8 + $0x200] ss:$16 sps:$4 sm:$0xff]  }
 0x610   : > { %4025 = vmatmul.mubr.bf16.gmra.mrb[132].mxu0 %v3725_v37  ;;  %4138 = vmatmul.mubr.bf16.gmra.mrb[132].mxu1 %v3725_v37 }
 0x611   : > { %4034 = vmatprep.mubr.bf16.mxu0 %v8216_v0  ;;  %4147 = vmatprep.mubr.bf16.mxu1 %v8216_v0 }
 0x612   : > { %5075 = vmatpush1.bf16.msra.mxu0 %v7792_v31  ;;  %5301 = vmatpush1.bf16.msra.mxu1 %v7795_v56 }
 0x613   : > { %5076 = vmatprep.subr.bf16.mxu0 %v7800_v19  ;;  %5302 = vmatprep.subr.bf16.mxu1 %v7803_v6  ;;  %v7831_v19 = vld [vmem:[#allocation8 + $0x208] ss:$16 sps:$4 sm:$0xff]  }
 0x616   : > { %5077 = vmatpush1.bf16.msra.mxu0 %v7798_v41  ;;  %5303 = vmatpush1.bf16.msra.mxu1 %v7801_v42  ;;  %v7836_v42 = vld [vmem:[#allocation8 + $0x224] ss:$16 sps:$4 sm:$0xff]  }
 0x617   : > { %5078 = vmatprep.subr.bf16.mxu0 %v7806_v17  ;;  %5304 = vmatprep.subr.bf16.mxu1 %v7809_v44  ;;  %v7839_v17 = vld [vmem:[#allocation8 + $0x22c] ss:$16 sps:$4 sm:$0xff]  }
 0x618   : > { %4035 = vmatmul.mubr.bf16.gmra.mrb[136].mxu0 %v3726_v13  ;;  %4148 = vmatmul.mubr.bf16.gmra.mrb[136].mxu1 %v3726_v13 }
 0x619   : > { %4044 = vmatprep.mubr.bf16.mxu0 %v8216_v0  ;;  %4157 = vmatprep.mubr.bf16.mxu1 %v8216_v0  ;;  %v7822_v0 = vld [vmem:[#allocation8 + $0x1e0] ss:$16 sps:$4 sm:$0xff]  }
 0x61a   : > { %5079 = vmatpush1.bf16.msra.mxu0 %v7804_v20  ;;  %5305 = vmatpush1.bf16.msra.mxu1 %v7807_v22 }
 0x61b   : > { %5080 = vmatprep.subr.bf16.mxu0 %v7812_v21  ;;  %5306 = vmatprep.subr.bf16.mxu1 %v7815_v24 }
 0x61e   : > { %5081 = vmatpush1.bf16.msra.mxu0 %v7810_v27  ;;  %5307 = vmatpush1.bf16.msra.mxu1 %v7813_v1 }
 0x61f   : > { %5082 = vmatprep.subr.bf16.mxu0 %v7818_v10  ;;  %5308 = vmatprep.subr.bf16.mxu1 %v7821_v29  ;;  %v7834_v29 = vld [vmem:[#allocation8 + $0x220] ss:$16 sps:$4 sm:$0xff]  }
 0x620   : > { %4045 = vmatmul.mubr.bf16.gmra.mrb[140].mxu0 %v3727_v34  ;;  %4158 = vmatmul.mubr.bf16.gmra.mrb[140].mxu1 %v3727_v34 }
 0x622   : > { %5083 = vmatpush1.bf16.msra.mxu0 %v7816_v38  ;;  %5309 = vmatpush1.bf16.msra.mxu1 %v7819_v18 }
 0x623   : > { %5084 = vmatprep.subr.bf16.mxu0 %v7824_v52  ;;  %5310 = vmatprep.subr.bf16.mxu1 %v7827_v15  ;;  %v7837_v52 = vld [vmem:[#allocation8 + $0x228] ss:$16 sps:$4 sm:$0xff]   ;;  %v7842_v15 = vld [vmem:[#allocation8 + $0x244] ss:$16 sps:$4 sm:$0xff]  }
 0x626   : > { %5085 = vmatpush1.bf16.msra.mxu0 %v7822_v0  ;;  %5311 = vmatpush1.bf16.msra.mxu1 %v7825_v23 }
 0x627   : > { %5167 = vmatprep.subr.bf16.mxu0 %v7830_v33  ;;  %5393 = vmatprep.subr.bf16.mxu1 %v7833_v28 }
 0x6b8   : > { %v3976_v3 = vpop.f32.mrb[112].mxu0  ;;  %v4089_v51 = vpop.f32.mrb[112].mxu1 }
 0x6b9   : > { %v3977_v43 = vadd.f32 %v3976_v3, %v9734_v35  ;;  %v4090_v47 = vadd.f32 %v4089_v51, %v9737_v61  ;;  %v3978_v50 = vpop.f32.mrb[113].mxu0  ;;  %v4091_v30 = vpop.f32.mrb[113].mxu1 }
 0x6ba   : > { %v3979_v2 = vadd.f32 %v3978_v50, %v9740_v8  ;;  %v4092_v37 = vadd.f32 %v4091_v30, %v9743_v11  ;;  %v3980_v4 = vpop.f32.mrb[114].mxu0  ;;  %v4093_v26 = vpop.f32.mrb[114].mxu1 }
 0x6bb   : > { %v3981_v63 = vadd.f32 %v3980_v4, %v9734_v35  ;;  %v4094_v36 = vadd.f32 %v4093_v26, %v9737_v61  ;;  %v3982_v16 = vpop.f32.mrb[115].mxu0  ;;  %v4095_v54 = vpop.f32.mrb[115].mxu1  ;;  %v4168_v7 = vmax.f32 %v3977_v43, 0.0  ;;  %v4170_v49 = vmax.f32 %v4090_v47, 0.0  ;;  %v7840_v4 = vld [vmem:[#allocation8 + $0x240] ss:$16 sps:$4 sm:$0xff]  }
 0x6bc   : > { %v3983_v40 = vadd.f32 %v3982_v16, %v9740_v8  ;;  %v4096_v62 = vadd.f32 %v4095_v54, %v9743_v11  ;;  %v4169_v25 = vmax.f32 %v3979_v2, 0.0  ;;  %v4171_v57 = vmax.f32 %v4092_v37, 0.0  ;;  %v7843_v26 = vld [vmem:[#allocation8 + $0x248] ss:$16 sps:$4 sm:$0xff]   ;;  %v7848_v16 = vld [vmem:[#allocation8 + $0x264] ss:$16 sps:$4 sm:$0xff]  }
 0x6bd   : > { %v4172_v39 = vmax.f32 %v3981_v63, 0.0  ;;  %v4174_v14 = vmax.f32 %v4094_v36, 0.0  ;;  %v7851_v54 = vld [vmem:[#allocation8 + $0x26c] ss:$16 sps:$4 sm:$0xff]  }
 0x6be   : > { %v4173_v45 = vmax.f32 %v3983_v40, 0.0  ;;  %v4175_v55 = vmax.f32 %v4096_v62, 0.0 }
 0x6bf   : > { %v4232_v12 = vpack.c.bf16 %v4172_v39, %v4168_v7  ;;  %v9753_v59 = vpack.c.bf16 %v4174_v14, %v4170_v49 }
 0x6c0   : > { %v4233_v53 = vpack.c.bf16 %v4173_v45, %v4169_v25  ;;  %v9755_v31 = vpack.c.bf16 %v4175_v55, %v4171_v57  ;;  %v3986_v56 = vpop.f32.mrb[116].mxu0  ;;  %v4099_v5 = vpop.f32.mrb[116].mxu1 }
 0x6c1   : > { %v3987_v6 = vadd.f32 %v3986_v56, %v9734_v35  ;;  %v4100_v34 = vadd.f32 %v4099_v5, %v9737_v61  ;;  %v3988_v13 = vpop.f32.mrb[117].mxu0  ;;  %v4101_v41 = vpop.f32.mrb[117].mxu1  ;;  %v7846_v56 = vld [vmem:[#allocation8 + $0x260] ss:$16 sps:$4 sm:$0xff]   ;;  %v7849_v5 = vld [vmem:[#allocation8 + $0x268] ss:$16 sps:$4 sm:$0xff]  }
 0x6c2   : > { %v3989_v44 = vadd.f32 %v3988_v13, %v9740_v8  ;;  %v4102_v20 = vadd.f32 %v4101_v41, %v9743_v11  ;;  %v3990_v22 = vpop.f32.mrb[118].mxu0  ;;  %v4103_v21 = vpop.f32.mrb[118].mxu1  ;;  %5086 = vmatprep.mubr.bf16.mxu0 %v4233_v53  ;;  %5312 = vmatprep.mubr.bf16.mxu1 %v4233_v53 }
 0x6c3   : > { %v3991_v24 = vadd.f32 %v3990_v22, %v9734_v35  ;;  %v4104_v27 = vadd.f32 %v4103_v21, %v9737_v61  ;;  %v3992_v1 = vpop.f32.mrb[119].mxu0  ;;  %v4105_v38 = vpop.f32.mrb[119].mxu1  ;;  %5087 = vmatmul.mubr.bf16.vlgmr.msra.gmra.mrb[144].mxu0 %v4232_v12  ;;  %5313 = vmatmul.mubr.bf16.vlgmr.msra.gmra.mrb[144].mxu1 %v4232_v12  ;;  %v4176_v0 = vmax.f32 %v3987_v6, 0.0  ;;  %v4178_v23 = vmax.f32 %v4100_v34, 0.0  ;;  %v7854_v6 = vld [vmem:[#allocation8 + $0x284] ss:$16 sps:$4 sm:$0xff]  }
 0x6c4   : > { %v3993_v10 = vadd.f32 %v3992_v1, %v9740_v8  ;;  %v4106_v18 = vadd.f32 %v4105_v38, %v9743_v11  ;;  %5168 = vmatpush1.bf16.msra.mxu0 %v7828_v9  ;;  %5394 = vmatpush1.bf16.msra.mxu1 %v7831_v19  ;;  %v4177_v3 = vmax.f32 %v3989_v44, 0.0  ;;  %v4179_v51 = vmax.f32 %v4102_v20, 0.0  ;;  %v7857_v34 = vld [vmem:[#allocation8 + $0x28c] ss:$16 sps:$4 sm:$0xff]  }
 0x6c5   : > { %v4180_v33 = vmax.f32 %v3991_v24, 0.0  ;;  %v4182_v28 = vmax.f32 %v4104_v27, 0.0  ;;  %5169 = vmatprep.subr.bf16.mxu0 %v7836_v42  ;;  %5395 = vmatprep.subr.bf16.mxu1 %v7839_v17 }
 0x6c6   : > { %v4181_v43 = vmax.f32 %v3993_v10, 0.0  ;;  %v4183_v47 = vmax.f32 %v4106_v18, 0.0 }
 0x6c7   : > { %v4236_v50 = vpack.c.bf16 %v4180_v33, %v4176_v0  ;;  %v9765_v30 = vpack.c.bf16 %v4182_v28, %v4178_v23  ;;  %v7860_v28 = vld [vmem:[#allocation8 + $0x2a4] ss:$16 sps:$4 sm:$0xff]  }
 0x6c8   : > { %v4237_v2 = vpack.c.bf16 %v4181_v43, %v4177_v3  ;;  %v9767_v37 = vpack.c.bf16 %v4183_v47, %v4179_v51  ;;  %5170 = vmatpush1.bf16.msra.mxu0 %v7834_v29  ;;  %5396 = vmatpush1.bf16.msra.mxu1 %v7837_v52  ;;  %v7852_v29 = vld [vmem:[#allocation8 + $0x280] ss:$16 sps:$4 sm:$0xff]   ;;  %v7855_v52 = vld [vmem:[#allocation8 + $0x288] ss:$16 sps:$4 sm:$0xff]  }
 0x6c9   : > { %5171 = vmatprep.subr.bf16.mxu0 %v7842_v15  ;;  %5397 = vmatprep.subr.bf16.mxu1 %v7845_v32  ;;  %v7863_v32 = vld [vmem:[#allocation8 + $0x2ac] ss:$16 sps:$4 sm:$0xff]  }
 0x6ca   : > { %v3996_v63 = vpop.f32.mrb[120].mxu0  ;;  %v4109_v36 = vpop.f32.mrb[120].mxu1  ;;  %5096 = vmatprep.mubr.bf16.mxu0 %v4237_v2  ;;  %5322 = vmatprep.mubr.bf16.mxu1 %v4237_v2 }
 0x6cb   : > { %v3997_v40 = vadd.f32 %v3996_v63, %v9734_v35  ;;  %v4110_v62 = vadd.f32 %v4109_v36, %v9737_v61  ;;  %v3998_v7 = vpop.f32.mrb[121].mxu0  ;;  %v4111_v49 = vpop.f32.mrb[121].mxu1  ;;  %5097 = vmatmul.mubr.bf16.gmra.mrb[148].mxu0 %v4236_v50  ;;  %5323 = vmatmul.mubr.bf16.gmra.mrb[148].mxu1 %v4236_v50 }
 0x6cc   : > { %v3999_v39 = vadd.f32 %v3998_v7, %v9740_v8  ;;  %v4112_v14 = vadd.f32 %v4111_v49, %v9743_v11  ;;  %v4000_v25 = vpop.f32.mrb[122].mxu0  ;;  %v4113_v57 = vpop.f32.mrb[122].mxu1  ;;  %5172 = vmatpush1.bf16.msra.mxu0 %v7840_v4  ;;  %5398 = vmatpush1.bf16.msra.mxu1 %v7843_v26 }
 0x6cd   : > { %v4001_v45 = vadd.f32 %v4000_v25, %v9734_v35  ;;  %v4114_v55 = vadd.f32 %v4113_v57, %v9737_v61  ;;  %v4002_v12 = vpop.f32.mrb[123].mxu0  ;;  %v4115_v53 = vpop.f32.mrb[123].mxu1  ;;  %5173 = vmatprep.subr.bf16.mxu0 %v7848_v16  ;;  %5399 = vmatprep.subr.bf16.mxu1 %v7851_v54  ;;  %v4184_v13 = vmax.f32 %v3997_v40, 0.0  ;;  %v4186_v41 = vmax.f32 %v4110_v62, 0.0  ;;  %v7858_v16 = vld [vmem:[#allocation8 + $0x2a0] ss:$16 sps:$4 sm:$0xff]  }
 0x6ce   : > { %v4003_v9 = vadd.f32 %v4002_v12, %v9740_v8  ;;  %v4116_v19 = vadd.f32 %v4115_v53, %v9743_v11  ;;  %v4185_v44 = vmax.f32 %v3999_v39, 0.0  ;;  %v4187_v20 = vmax.f32 %v4112_v14, 0.0  ;;  %v7861_v54 = vld [vmem:[#allocation8 + $0x2a8] ss:$16 sps:$4 sm:$0xff]   ;;  %v7866_v40 = vld [vmem:[#allocation8 + $0x2c4] ss:$16 sps:$4 sm:$0xff]  }
 0x6cf   : > { %v4188_v42 = vmax.f32 %v4001_v45, 0.0  ;;  %v4190_v17 = vmax.f32 %v4114_v55, 0.0  ;;  %v7869_v14 = vld [vmem:[#allocation8 + $0x2cc] ss:$16 sps:$4 sm:$0xff]  }
 0x6d0   : > { %v4189_v22 = vmax.f32 %v4003_v9, 0.0  ;;  %v4191_v21 = vmax.f32 %v4116_v19, 0.0  ;;  %5174 = vmatpush1.bf16.msra.mxu0 %v7846_v56  ;;  %5400 = vmatpush1.bf16.msra.mxu1 %v7849_v5  ;;  %v7864_v9 = vld [vmem:[#allocation8 + $0x2c0] ss:$16 sps:$4 sm:$0xff]   ;;  %v7867_v19 = vld [vmem:[#allocation8 + $0x2c8] ss:$16 sps:$4 sm:$0xff]  }
 0x6d1   : > { %v4240_v24 = vpack.c.bf16 %v4188_v42, %v4184_v13  ;;  %v9777_v27 = vpack.c.bf16 %v4190_v17, %v4186_v41  ;;  %5175 = vmatprep.subr.bf16.mxu0 %v7854_v6  ;;  %5401 = vmatprep.subr.bf16.mxu1 %v7857_v34  ;;  %v7872_v13 = vld [vmem:[#allocation8 + $0x2e4] ss:$16 sps:$4 sm:$0xff]   ;;  %v7875_v41 = vld [vmem:[#allocation8 + $0x2ec] ss:$16 sps:$4 sm:$0xff]  }
 0x6d2   : > { %v4241_v1 = vpack.c.bf16 %v4189_v22, %v4185_v44  ;;  %v9779_v38 = vpack.c.bf16 %v4191_v21, %v4187_v20  ;;  %v4006_v10 = vpop.f32.mrb[124].mxu0  ;;  %v4119_v18 = vpop.f32.mrb[124].mxu1 }
 0x6d3   : > { %v4007_v15 = vadd.f32 %v4006_v10, %v9734_v35  ;;  %v4120_v0 = vadd.f32 %v4119_v18, %v9737_v61  ;;  %v4008_v23 = vpop.f32.mrb[125].mxu0  ;;  %v4121_v33 = vpop.f32.mrb[125].mxu1 }
 0x6d4   : > { %v4009_v3 = vadd.f32 %v4008_v23, %v9740_v8  ;;  %v4122_v51 = vadd.f32 %v4121_v33, %v9743_v11  ;;  %v4010_v43 = vpop.f32.mrb[126].mxu0  ;;  %v4123_v47 = vpop.f32.mrb[126].mxu1  ;;  %5106 = vmatprep.mubr.bf16.mxu0 %v4241_v1  ;;  %5332 = vmatprep.mubr.bf16.mxu1 %v4241_v1 }
 0x6d5   : > { %v4011_v50 = vadd.f32 %v4010_v43, %v9734_v35  ;;  %v4124_v2 = vadd.f32 %v4123_v47, %v9737_v61  ;;  %v4012_v4 = vpop.f32.mrb[127].mxu0  ;;  %v4125_v26 = vpop.f32.mrb[127].mxu1  ;;  %5107 = vmatmul.mubr.bf16.gmra.mrb[152].mxu0 %v4240_v24  ;;  %5333 = vmatmul.mubr.bf16.gmra.mrb[152].mxu1 %v4240_v24  ;;  %v4192_v62 = vmax.f32 %v4007_v15, 0.0  ;;  %v4194_v7 = vmax.f32 %v4120_v0, 0.0  ;;  %v7870_v15 = vld [vmem:[#allocation8 + $0x2e0] ss:$16 sps:$4 sm:$0xff]  }
 0x6d6   : > { %v4013_v63 = vadd.f32 %v4012_v4, %v9740_v8  ;;  %v4126_v36 = vadd.f32 %v4125_v26, %v9743_v11  ;;  %5176 = vmatpush1.bf16.msra.mxu0 %v7852_v29  ;;  %5402 = vmatpush1.bf16.msra.mxu1 %v7855_v52  ;;  %v4193_v25 = vmax.f32 %v4009_v3, 0.0  ;;  %v4195_v57 = vmax.f32 %v4122_v51, 0.0  ;;  %v7873_v0 = vld [vmem:[#allocation8 + $0x2e8] ss:$16 sps:$4 sm:$0xff]  }
 0x6d7   : > { %v4196_v49 = vmax.f32 %v4011_v50, 0.0  ;;  %v4198_v39 = vmax.f32 %v4124_v2, 0.0  ;;  %5177 = vmatprep.subr.bf16.mxu0 %v7860_v28  ;;  %5403 = vmatprep.subr.bf16.mxu1 %v7863_v32  ;;  %v7878_v28 = vld [vmem:[#allocation8 + $0x304] ss:$16 sps:$4 sm:$0xff]   ;;  %v7881_v32 = vld [vmem:[#allocation8 + $0x30c] ss:$16 sps:$4 sm:$0xff]  }
 0x6d8   : > { %v4197_v45 = vmax.f32 %v4013_v63, 0.0  ;;  %v4199_v55 = vmax.f32 %v4126_v36, 0.0 }
 0x6d9   : > { %v4244_v12 = vpack.c.bf16 %v4196_v49, %v4192_v62  ;;  %v9789_v53 = vpack.c.bf16 %v4198_v39, %v4194_v7  ;;  %v7876_v7 = vld [vmem:[#allocation8 + $0x300] ss:$16 sps:$4 sm:$0xff]   ;;  %v7879_v49 = vld [vmem:[#allocation8 + $0x308] ss:$16 sps:$4 sm:$0xff]  }
 0x6da   : > { %v4245_v56 = vpack.c.bf16 %v4197_v45, %v4193_v25  ;;  %v9791_v5 = vpack.c.bf16 %v4199_v55, %v4195_v57  ;;  %5178 = vmatpush1.bf16.msra.mxu0 %v7858_v16  ;;  %5404 = vmatpush1.bf16.msra.mxu1 %v7861_v54  ;;  %v7884_v45 = vld [vmem:[#allocation8 + $0x324] ss:$16 sps:$4 sm:$0xff]   ;;  %v7887_v55 = vld [vmem:[#allocation8 + $0x32c] ss:$16 sps:$4 sm:$0xff]  }
 0x6db   : > { %v4016_v6 = vpop.f32.mrb[128].mxu0  ;;  %v4129_v34 = vpop.f32.mrb[128].mxu1  ;;  %5179 = vmatprep.subr.bf16.mxu0 %v7866_v40  ;;  %5405 = vmatprep.subr.bf16.mxu1 %v7869_v14 }
 0x6dc   : > { %v4017_v42 = vadd.f32 %v4016_v6, %v9734_v35  ;;  %v4130_v17 = vadd.f32 %v4129_v34, %v9737_v61  ;;  %v4018_v44 = vpop.f32.mrb[129].mxu0  ;;  %v4131_v20 = vpop.f32.mrb[129].mxu1  ;;  %5116 = vmatprep.mubr.bf16.mxu0 %v4245_v56  ;;  %5342 = vmatprep.mubr.bf16.mxu1 %v4245_v56 }
 0x6dd   : > { %v4019_v22 = vadd.f32 %v4018_v44, %v9740_v8  ;;  %v4132_v21 = vadd.f32 %v4131_v20, %v9743_v11  ;;  %v4020_v24 = vpop.f32.mrb[130].mxu0  ;;  %v4133_v1 = vpop.f32.mrb[130].mxu1  ;;  %5117 = vmatmul.mubr.bf16.gmra.mrb[156].mxu0 %v4244_v12  ;;  %5343 = vmatmul.mubr.bf16.gmra.mrb[156].mxu1 %v4244_v12  ;;  %v7882_v44 = vld [vmem:[#allocation8 + $0x320] ss:$16 sps:$4 sm:$0xff]   ;;  %v7885_v20 = vld [vmem:[#allocation8 + $0x328] ss:$16 sps:$4 sm:$0xff]  }
 0x6de   : > { %v4021_v10 = vadd.f32 %v4020_v24, %v9734_v35  ;;  %v4134_v18 = vadd.f32 %v4133_v1, %v9737_v61  ;;  %v4022_v29 = vpop.f32.mrb[131].mxu0  ;;  %v4135_v52 = vpop.f32.mrb[131].mxu1  ;;  %5180 = vmatpush1.bf16.msra.mxu0 %v7864_v9  ;;  %5406 = vmatpush1.bf16.msra.mxu1 %v7867_v19  ;;  %v4200_v3 = vmax.f32 %v4017_v42, 0.0  ;;  %v4202_v51 = vmax.f32 %v4130_v17, 0.0 }
 0x6df   : > { %v4023_v23 = vadd.f32 %v4022_v29, %v9740_v8  ;;  %v4136_v33 = vadd.f32 %v4135_v52, %v9743_v11  ;;  %5181 = vmatprep.subr.bf16.mxu0 %v7872_v13  ;;  %5407 = vmatprep.subr.bf16.mxu1 %v7875_v41  ;;  %v4201_v50 = vmax.f32 %v4019_v22, 0.0  ;;  %v4203_v2 = vmax.f32 %v4132_v21, 0.0  ;;  %v7890_v22 = vld [vmem:[#allocation8 + $0x344] ss:$16 sps:$4 sm:$0xff]  }
 0x6e0   : > { %v4204_v43 = vmax.f32 %v4021_v10, 0.0  ;;  %v4206_v47 = vmax.f32 %v4134_v18, 0.0  ;;  %v7893_v18 = vld [vmem:[#allocation8 + $0x34c] ss:$16 sps:$4 sm:$0xff]  }
 0x6e1   : > { %v4205_v4 = vmax.f32 %v4023_v23, 0.0  ;;  %v4207_v26 = vmax.f32 %v4136_v33, 0.0 }
 0x6e2   : > { %v4248_v63 = vpack.c.bf16 %v4204_v43, %v4200_v3  ;;  %v9801_v36 = vpack.c.bf16 %v4206_v47, %v4202_v51  ;;  %5182 = vmatpush1.bf16.msra.mxu0 %v7870_v15  ;;  %5408 = vmatpush1.bf16.msra.mxu1 %v7873_v0  ;;  %v7888_v43 = vld [vmem:[#allocation8 + $0x340] ss:$16 sps:$4 sm:$0xff]   ;;  %v7891_v47 = vld [vmem:[#allocation8 + $0x348] ss:$16 sps:$4 sm:$0xff]  }
 0x6e3   : > { %v4249_v16 = vpack.c.bf16 %v4205_v4, %v4201_v50  ;;  %v9803_v54 = vpack.c.bf16 %v4207_v26, %v4203_v2  ;;  %v4026_v40 = vpop.f32.mrb[132].mxu0  ;;  %v4139_v62 = vpop.f32.mrb[132].mxu1  ;;  %5183 = vmatprep.subr.bf16.mxu0 %v7878_v28  ;;  %5409 = vmatprep.subr.bf16.mxu1 %v7881_v32 }
 0x6e4   : > { %v4027_v39 = vadd.f32 %v4026_v40, %v9734_v35  ;;  %v4140_v14 = vadd.f32 %v4139_v62, %v9737_v61  ;;  %v4028_v25 = vpop.f32.mrb[133].mxu0  ;;  %v4141_v57 = vpop.f32.mrb[133].mxu1 }
 0x6e5   : > { %v4029_v12 = vadd.f32 %v4028_v25, %v9740_v8  ;;  %v4142_v56 = vadd.f32 %v4141_v57, %v9743_v11  ;;  %v4030_v9 = vpop.f32.mrb[134].mxu0  ;;  %v4143_v19 = vpop.f32.mrb[134].mxu1  ;;  %5126 = vmatprep.mubr.bf16.mxu0 %v4249_v16  ;;  %5352 = vmatprep.mubr.bf16.mxu1 %v4249_v16  ;;  %v7899_v16 = vld [vmem:[#allocation8 + $0x36c] ss:$16 sps:$4 sm:$0xff]  }
 0x6e6   : > { %v4031_v6 = vadd.f32 %v4030_v9, %v9734_v35  ;;  %v4144_v34 = vadd.f32 %v4143_v19, %v9737_v61  ;;  %v4032_v13 = vpop.f32.mrb[135].mxu0  ;;  %v4145_v41 = vpop.f32.mrb[135].mxu1  ;;  %5127 = vmatmul.mubr.bf16.gmra.mrb[160].mxu0 %v4248_v63  ;;  %5353 = vmatmul.mubr.bf16.gmra.mrb[160].mxu1 %v4248_v63  ;;  %v4208_v21 = vmax.f32 %v4027_v39, 0.0  ;;  %v4210_v24 = vmax.f32 %v4140_v14, 0.0  ;;  %v7896_v63 = vld [vmem:[#allocation8 + $0x364] ss:$16 sps:$4 sm:$0xff]  }
 0x6e7   : > { %v4033_v42 = vadd.f32 %v4032_v13, %v9740_v8  ;;  %v4146_v17 = vadd.f32 %v4145_v41, %v9743_v11  ;;  %5184 = vmatpush1.bf16.msra.mxu0 %v7876_v7  ;;  %5410 = vmatpush1.bf16.msra.mxu1 %v7879_v49  ;;  %v4209_v29 = vmax.f32 %v4029_v12, 0.0  ;;  %v4211_v52 = vmax.f32 %v4142_v56, 0.0  ;;  %v7894_v12 = vld [vmem:[#allocation8 + $0x360] ss:$16 sps:$4 sm:$0xff]   ;;  %v7897_v56 = vld [vmem:[#allocation8 + $0x368] ss:$16 sps:$4 sm:$0xff]  }
 0x6e8   : > { %v4212_v1 = vmax.f32 %v4031_v6, 0.0  ;;  %v4214_v10 = vmax.f32 %v4144_v34, 0.0  ;;  %5185 = vmatprep.subr.bf16.mxu0 %v7884_v45  ;;  %5411 = vmatprep.subr.bf16.mxu1 %v7887_v55  ;;  %v7902_v9 = vld [vmem:[#allocation8 + $0x384] ss:$16 sps:$4 sm:$0xff]   ;;  %v7905_v41 = vld [vmem:[#allocation8 + $0x38c] ss:$16 sps:$4 sm:$0xff]  }
 0x6e9   : > { %v4213_v15 = vmax.f32 %v4033_v42, 0.0  ;;  %v4215_v0 = vmax.f32 %v4146_v17, 0.0 }
 0x6ea   : > { %v4252_v23 = vpack.c.bf16 %v4212_v1, %v4208_v21  ;;  %v9813_v33 = vpack.c.bf16 %v4214_v10, %v4210_v24 }
 0x6eb   : > { %v4253_v28 = vpack.c.bf16 %v4213_v15, %v4209_v29  ;;  %v9815_v32 = vpack.c.bf16 %v4215_v0, %v4211_v52  ;;  %5186 = vmatpush1.bf16.msra.mxu0 %v7882_v44  ;;  %v4036_v3 = vpop.f32.mrb[136].mxu0  ;;  %v4149_v51 = vpop.f32.mrb[136].mxu1  ;;  %5412 = vmatpush1.bf16.msra.mxu1 %v7885_v20  ;;  %v7900_v29 = vld [vmem:[#allocation8 + $0x380] ss:$16 sps:$4 sm:$0xff]   ;;  %v7903_v52 = vld [vmem:[#allocation8 + $0x388] ss:$16 sps:$4 sm:$0xff]  }
 0x6ec   : > { %v4037_v50 = vadd.f32 %v4036_v3, %v9734_v35  ;;  %v4150_v2 = vadd.f32 %v4149_v51, %v9737_v61  ;;  %v4038_v4 = vpop.f32.mrb[137].mxu0  ;;  %v4151_v26 = vpop.f32.mrb[137].mxu1  ;;  %5187 = vmatprep.subr.bf16.mxu0 %v7890_v22  ;;  %5413 = vmatprep.subr.bf16.mxu1 %v7893_v18  ;;  %v7908_v3 = vld [vmem:[#allocation8 + $0x3a4] ss:$16 sps:$4 sm:$0xff]   ;;  %v7911_v51 = vld [vmem:[#allocation8 + $0x3ac] ss:$16 sps:$4 sm:$0xff]  }
 0x6ed   : > { %v4039_v40 = vadd.f32 %v4038_v4, %v9740_v8  ;;  %v4152_v62 = vadd.f32 %v4151_v26, %v9743_v11  ;;  %v4040_v7 = vpop.f32.mrb[138].mxu0  ;;  %v4153_v49 = vpop.f32.mrb[138].mxu1  ;;  %5136 = vmatprep.mubr.bf16.mxu0 %v4253_v28  ;;  %5362 = vmatprep.mubr.bf16.mxu1 %v4253_v28 }
 0x6ee   : > { %v4041_v39 = vadd.f32 %v4040_v7, %v9734_v35  ;;  %v4154_v14 = vadd.f32 %v4153_v49, %v9737_v61  ;;  %v4042_v25 = vpop.f32.mrb[139].mxu0  ;;  %v4155_v57 = vpop.f32.mrb[139].mxu1  ;;  %5137 = vmatmul.mubr.bf16.gmra.mrb[164].mxu0 %v4252_v23  ;;  %5363 = vmatmul.mubr.bf16.gmra.mrb[164].mxu1 %v4252_v23  ;;  %v4216_v19 = vmax.f32 %v4037_v50, 0.0  ;;  %v4218_v6 = vmax.f32 %v4150_v2, 0.0  ;;  %v7906_v7 = vld [vmem:[#allocation8 + $0x3a0] ss:$16 sps:$4 sm:$0xff]  }
 0x6ef   : > { %v4043_v45 = vadd.f32 %v4042_v25, %v9740_v8  ;;  %v4156_v55 = vadd.f32 %v4155_v57, %v9743_v11  ;;  %5188 = vmatpush1.bf16.msra.mxu0 %v7888_v43  ;;  %5414 = vmatpush1.bf16.msra.mxu1 %v7891_v47  ;;  %v4217_v42 = vmax.f32 %v4039_v40, 0.0  ;;  %v4219_v17 = vmax.f32 %v4152_v62, 0.0  ;;  %v7909_v49 = vld [vmem:[#allocation8 + $0x3a8] ss:$16 sps:$4 sm:$0xff]  }
 0x6f0   : > { %v4220_v34 = vmax.f32 %v4041_v39, 0.0  ;;  %v4222_v13 = vmax.f32 %v4154_v14, 0.0  ;;  %5189 = vmatprep.subr.bf16.mxu0 %v7896_v63  ;;  %5415 = vmatprep.subr.bf16.mxu1 %v7899_v16  ;;  %v7914_v39 = vld [vmem:[#allocation8 + $0x3c4] ss:$16 sps:$4 sm:$0xff]  }
 0x6f1   : > { %v4221_v44 = vmax.f32 %v4043_v45, 0.0  ;;  %v4223_v20 = vmax.f32 %v4156_v55, 0.0 }
 0x6f2   : > { %v4256_v22 = vpack.c.bf16 %v4220_v34, %v4216_v19  ;;  %v9825_v21 = vpack.c.bf16 %v4222_v13, %v4218_v6  ;;  %v7912_v6 = vld [vmem:[#allocation8 + $0x3c0] ss:$16 sps:$4 sm:$0xff]   ;;  %v7915_v34 = vld [vmem:[#allocation8 + $0x3c8] ss:$16 sps:$4 sm:$0xff]   ;;  %v7920_v13 = vld [vmem:[#allocation8 + $0x3e4] ss:$16 sps:$4 sm:$0xff]  }
 0x6f3   : > { %v4257_v24 = vpack.c.bf16 %v4221_v44, %v4217_v42  ;;  %v9827_v1 = vpack.c.bf16 %v4223_v20, %v4219_v17  ;;  %5190 = vmatpush1.bf16.msra.mxu0 %v7894_v12  ;;  %v4046_v10 = vpop.f32.mrb[140].mxu0  ;;  %v4159_v18 = vpop.f32.mrb[140].mxu1  ;;  %5416 = vmatpush1.bf16.msra.mxu1 %v7897_v56  ;;  %v7918_v42 = vld [vmem:[#allocation8 + $0x3e0] ss:$16 sps:$4 sm:$0xff]   ;;  %v7921_v17 = vld [vmem:[#allocation8 + $0x3e8] ss:$16 sps:$4 sm:$0xff]  }
 0x6f4   : > { %v4047_v15 = vadd.f32 %v4046_v10, %v9734_v35  ;;  %v4160_v0 = vadd.f32 %v4159_v18, %v9737_v61  ;;  %v4048_v23 = vpop.f32.mrb[141].mxu0  ;;  %v4161_v28 = vpop.f32.mrb[141].mxu1  ;;  %5191 = vmatprep.subr.bf16.mxu0 %v7902_v9  ;;  %5417 = vmatprep.subr.bf16.mxu1 %v7905_v41  ;;  %v7923_v41 = vld [vmem:[#allocation8 + $0x3ec] ss:$16 sps:$4 sm:$0xff]   ;;  %v7924_v44 = vld [vmem:[%s10230_s20 + $0x40] sm:$0xff]  }
 0x6f5   : > { %v4049_v43 = vadd.f32 %v4048_v23, %v9740_v8  ;;  %v4162_v47 = vadd.f32 %v4161_v28, %v9743_v11  ;;  %v4050_v50 = vpop.f32.mrb[142].mxu0  ;;  %v4163_v2 = vpop.f32.mrb[142].mxu1  ;;  %5146 = vmatprep.mubr.bf16.mxu0 %v4257_v24  ;;  %5372 = vmatprep.mubr.bf16.mxu1 %v4257_v24  ;;  %v7926_v20 = vld [vmem:[%s10230_s20 + $0xc0] sm:$0xff]   ;;  %v7928_v24 = vld [vmem:[%s10230_s20 + $0x48] sm:$0xff]   ;;  %v7938_v23 = vld [vmem:[%s10230_s20 + $0xd8] sm:$0xff]  }
 0x6f6   : > { %v4051_v4 = vadd.f32 %v4050_v50, %v9734_v35  ;;  %v4164_v26 = vadd.f32 %v4163_v2, %v9737_v61  ;;  %v4052_v63 = vpop.f32.mrb[143].mxu0  ;;  %v4165_v16 = vpop.f32.mrb[143].mxu1  ;;  %5147 = vmatmul.mubr.bf16.gmra.mrb[168].mxu0 %v4256_v22  ;;  %5373 = vmatmul.mubr.bf16.gmra.mrb[168].mxu1 %v4256_v22  ;;  %v4224_v14 = vmax.f32 %v4047_v15, 0.0  ;;  %v4226_v25 = vmax.f32 %v4160_v0, 0.0  ;;  %v7917_v35 = vld [vmem:[#allocation8 + $0x3cc] ss:$16 sps:$4 sm:$0xff]  }
 0x6f7   : > { %v4053_v40 = vadd.f32 %v4052_v63, %v9740_v8  ;;  %v4166_v62 = vadd.f32 %v4165_v16, %v9743_v11  ;;  %5192 = vmatpush1.bf16.msra.mxu0 %v7900_v29  ;;  %5418 = vmatpush1.bf16.msra.mxu1 %v7903_v52  ;;  %v4225_v61 = vmax.f32 %v4049_v43, 0.0  ;;  %v4227_v55 = vmax.f32 %v4162_v47, 0.0  ;;  %v7925_v22 = vld [vmem:[%s10230_s20] sm:$0xff]   ;;  %v7930_v10 = vld [vmem:[%s10230_s20 + $0xc8] sm:$0xff]   ;;  %v7932_v52 = vld [vmem:[%s10230_s20 + $0x50] sm:$0xff]  }
 0x6f8   : > { %v4228_v57 = vmax.f32 %v4051_v4, 0.0  ;;  %v4230_v45 = vmax.f32 %v4164_v26, 0.0  ;;  %5193 = vmatprep.subr.bf16.mxu0 %v7908_v3  ;;  %5419 = vmatprep.subr.bf16.mxu1 %v7911_v51  ;;  %v7929_v18 = vld [vmem:[%s10230_s20 + $0x8] sm:$0xff]   ;;  %v7935_v15 = vld [vmem:[%s10230_s20 + $0x90] sm:$0xff]   ;;  %v7936_v0 = vld [vmem:[%s10230_s20 + $0x58] sm:$0xff]  }
 0x6f9   : > { %v4229_v12 = vmax.f32 %v4053_v40, 0.0  ;;  %v4231_v56 = vmax.f32 %v4166_v62, 0.0  ;;  %v7931_v29 = vld [vmem:[%s10230_s20 + $0x88] sm:$0xff]   ;;  %v7937_v28 = vld [vmem:[%s10230_s20 + $0x18] sm:$0xff]   ;;  %v7940_v51 = vld [vmem:[%s10230_s20 + $0x60] sm:$0xff]  }
 0x6fa   : > { %v4260_v9 = vpack.c.bf16 %v4228_v57, %v4224_v14  ;;  %v9837_v8 = vpack.c.bf16 %v4230_v45, %v4226_v25  ;;  %v7939_v3 = vld [vmem:[%s10230_s20 + $0x98] sm:$0xff]   ;;  %v7943_v43 = vld [vmem:[%s10230_s20 + $0xa0] sm:$0xff]   ;;  %v7944_v47 = vld [vmem:[%s10230_s20 + $0x68] sm:$0xff]  }
 0x6fb   : > { %v4261_v11 = vpack.c.bf16 %v4229_v12, %v4225_v61  ;;  %v9839_v19 = vpack.c.bf16 %v4231_v56, %v4227_v55  ;;  %5194 = vmatpush1.bf16.msra.mxu0 %v7906_v7  ;;  %5420 = vmatpush1.bf16.msra.mxu1 %v7909_v49  ;;  %v7946_v50 = vld [vmem:[%s10230_s20 + $0xe8] sm:$0xff]   ;;  %v7948_v26 = vld [vmem:[%s10230_s20 + $0x70] sm:$0xff]  }
 0x6fc   : > { %5195 = vmatprep.subr.bf16.mxu0 %v7914_v39  ;;  %5421 = vmatprep.subr.bf16.mxu1 %v7917_v35  ;;  %v7945_v2 = vld [vmem:[%s10230_s20 + $0x28] sm:$0xff]   ;;  %v7951_v63 = vld [vmem:[%s10230_s20 + $0xb0] sm:$0xff]  }
 0x6fd   : > { %5156 = vmatprep.mubr.bf16.mxu0 %v4261_v11  ;;  %5382 = vmatprep.mubr.bf16.mxu1 %v4261_v11  ;;  %v7947_v4 = vld [vmem:[%s10230_s20 + $0xa8] sm:$0xff]  }
 0x6fe   : > { %5157 = vmatmul.mubr.bf16.gmra.mrb[172].mxu0 %v4260_v9  ;;  %5383 = vmatmul.mubr.bf16.gmra.mrb[172].mxu1 %v4260_v9 }
 0x6ff   : > { %5196 = vmatpush1.bf16.msra.mxu0 %v7912_v6  ;;  %5199 = vmatprep.mubr.bf16.mxu0 %v9755_v31 }
 0x700   : > { %5422 = vmatpush1.bf16.msra.mxu1 %v7915_v34  ;;  %5425 = vmatprep.mubr.bf16.mxu1 %v9755_v31  ;;  %v7927_v31 = vld [vmem:[%s10230_s20 + $0x80] sm:$0xff]  }
 0x701   : > { %5197 = vmatprep.subr.bf16.mxu0 %v7920_v13  ;;  %5423 = vmatprep.subr.bf16.mxu1 %v7923_v41 }
 0x703   : > { %5198 = vmatpush1.bf16.msra.mxu0 %v7918_v42 }
 0x704   : > { %5424 = vmatpush1.bf16.msra.mxu1 %v7921_v17  ;;  %6902 = vmatprep.subr.bf16.mxu0 %v7924_v44 }
 0x705   : > { %6966 = vmatprep.subr.bf16.mxu1 %v7926_v20 }
 0x706   : > { %5200 = vmatmul.mubr.bf16.vlgmr.msra.gmra.mrb[144].mxu0 %v9753_v59 }
 0x707   : > { %5426 = vmatmul.mubr.bf16.vlgmr.msra.gmra.mrb[144].mxu1 %v9753_v59  ;;  %5209 = vmatprep.mubr.bf16.mxu0 %v9767_v37  ;;  %v7934_v59 = vld [vmem:[%s10230_s20 + $0xd0] sm:$0xff]  }
 0x708   : > { %5435 = vmatprep.mubr.bf16.mxu1 %v9767_v37  ;;  %6903 = vmatpush3.bf16.msra.mxu0 %v7925_v22  ;;  %v7933_v37 = vld [vmem:[%s10230_s20 + $0x10] sm:$0xff]  }
 0x709   : > { %6967 = vmatpush3.bf16.msra.mxu1 %v7927_v31  ;;  %6904 = vmatprep.subr.bf16.mxu0 %v7928_v24 }
 0x70a   : > { %6968 = vmatprep.subr.bf16.mxu1 %v7930_v10 }
 0x70c   : > { %6905 = vmatpush3.bf16.msra.mxu0 %v7929_v18 }
 0x70d   : > { %6969 = vmatpush3.bf16.msra.mxu1 %v7931_v29  ;;  %6906 = vmatprep.subr.bf16.mxu0 %v7932_v52 }
 0x70e   : > { %5210 = vmatmul.mubr.bf16.gmra.mrb[148].mxu0 %v9765_v30  ;;  %6970 = vmatprep.subr.bf16.mxu1 %v7934_v59 }
 0x70f   : > { %5436 = vmatmul.mubr.bf16.gmra.mrb[148].mxu1 %v9765_v30  ;;  %5219 = vmatprep.mubr.bf16.mxu0 %v9779_v38  ;;  %v7942_v30 = vld [vmem:[%s10230_s20 + $0xe0] sm:$0xff]  }
 0x710   : > { %5445 = vmatprep.mubr.bf16.mxu1 %v9779_v38  ;;  %6907 = vmatpush3.bf16.msra.mxu0 %v7933_v37  ;;  %v7941_v38 = vld [vmem:[%s10230_s20 + $0x20] sm:$0xff]  }
 0x711   : > { %6971 = vmatpush3.bf16.msra.mxu1 %v7935_v15  ;;  %6908 = vmatprep.subr.bf16.mxu0 %v7936_v0 }
 0x712   : > { %6972 = vmatprep.subr.bf16.mxu1 %v7938_v23 }
 0x714   : > { %6909 = vmatpush3.bf16.msra.mxu0 %v7937_v28 }
 0x715   : > { %6973 = vmatpush3.bf16.msra.mxu1 %v7939_v3  ;;  %6910 = vmatprep.subr.bf16.mxu0 %v7940_v51 }
 0x716   : > { %5220 = vmatmul.mubr.bf16.gmra.mrb[152].mxu0 %v9777_v27  ;;  %6974 = vmatprep.subr.bf16.mxu1 %v7942_v30 }
 0x717   : > { %5446 = vmatmul.mubr.bf16.gmra.mrb[152].mxu1 %v9777_v27  ;;  %5229 = vmatprep.mubr.bf16.mxu0 %v9791_v5  ;;  %v7950_v27 = vld [vmem:[%s10230_s20 + $0xf0] sm:$0xff]  }
 0x718   : > { %5455 = vmatprep.mubr.bf16.mxu1 %v9791_v5  ;;  %6911 = vmatpush3.bf16.msra.mxu0 %v7941_v38  ;;  %v7949_v5 = vld [vmem:[%s10230_s20 + $0x30] sm:$0xff]  }
 0x719   : > { %6975 = vmatpush3.bf16.msra.mxu1 %v7943_v43  ;;  %6912 = vmatprep.subr.bf16.mxu0 %v7944_v47 }
 0x71a   : > { %6976 = vmatprep.subr.bf16.mxu1 %v7946_v50 }
 0x71c   : > { %6913 = vmatpush3.bf16.msra.mxu0 %v7945_v2 }
 0x71d   : > { %6977 = vmatpush3.bf16.msra.mxu1 %v7947_v4  ;;  %6914 = vmatprep.subr.bf16.mxu0 %v7948_v26 }
 0x71e   : > { %5230 = vmatmul.mubr.bf16.gmra.mrb[156].mxu0 %v9789_v53  ;;  %6978 = vmatprep.subr.bf16.mxu1 %v7950_v27 }
 0x71f   : > { %5456 = vmatmul.mubr.bf16.gmra.mrb[156].mxu1 %v9789_v53  ;;  %5239 = vmatprep.mubr.bf16.mxu0 %v9803_v54  ;;  %v7952_v53 = vld [vmem:[%s10230_s20 + $0x78] sm:$0xff]  }
 0x720   : > { %5465 = vmatprep.mubr.bf16.mxu1 %v9803_v54  ;;  %6915 = vmatpush3.bf16.msra.mxu0 %v7949_v5  ;;  %v7954_v54 = vld [vmem:[%s10230_s20 + $0xf8] sm:$0xff]  }
 0x721   : > { %6979 = vmatpush3.bf16.msra.mxu1 %v7951_v63  ;;  %6916 = vmatprep.subr.bf16.mxu0 %v7952_v53 }
 0x722   : > { %6980 = vmatprep.subr.bf16.mxu1 %v7954_v54 }
 0x726   : > { %5240 = vmatmul.mubr.bf16.gmra.mrb[160].mxu0 %v9801_v36 }
 0x727   : > { %5466 = vmatmul.mubr.bf16.gmra.mrb[160].mxu1 %v9801_v36  ;;  %5249 = vmatprep.mubr.bf16.mxu0 %v9815_v32  ;;  %v7953_v36 = vld [vmem:[%s10230_s20 + $0x38] sm:$0xff]  }
 0x728   : > { %5475 = vmatprep.mubr.bf16.mxu1 %v9815_v32  ;;  %6917 = vmatpush3.bf16.msra.mxu0 %v7953_v36  ;;  %v4392_v32 = vld [vmem:[%s10231_s19] sm:$0xf]  ;;  %s8136_s19 = sshll.u32 %s8219_s24, 4  ;;  %s8137_s19 = int_to_ptr.vmem [resolvable:$false] %s8136_s19 }
 0x729   : > { %v9979_v16 = vrot.slane %v4392_v32, %v8754_v48  ;;  %v9982_v40 = vrot.slane %v4392_v32, %v8768_v60  ;;  %s8138_s29 = scalar_lea.vmem %s8137_s19, 16384  ;;  %p8139_p8 = scmp.lt.s32.totalorder %s10106_s2, %s8137_s19 }
 0x72a   : > { %p8140_p11 = scmp.lt.s32.totalorder %s8138_s29, %s8132_s30 }
 0x72c   : > { %p8141_p13 = por %p8140_p11, %p8139_p8 }
 0x72e   : > { %5250 = vmatmul.mubr.bf16.gmra.mrb[164].mxu0 %v9813_v33  ;;  %p8142_p0 = pnand %p8141_p13, %p8135_p7 }
 0x72f   : > { %5476 = vmatmul.mubr.bf16.gmra.mrb[164].mxu1 %v9813_v33  ;;  %5259 = vmatprep.mubr.bf16.mxu0 %v9827_v1  ;;  %v7955_v33 = vld [vmem:[%s10230_s20 + $0xb8] sm:$0xff]  }
 0x730   : > { %5485 = vmatprep.mubr.bf16.mxu1 %v9827_v1  ;;  %6981 = vmatpush3.bf16.msra.mxu1 %v7955_v33  ;;  %v9976_v1 = vrot.slane %v4392_v32, %v8765_v58 }
 0x736   : > { %5260 = vmatmul.mubr.bf16.gmra.mrb[168].mxu0 %v9825_v21 }
 0x737   : > { %5486 = vmatmul.mubr.bf16.gmra.mrb[168].mxu1 %v9825_v21  ;;  %5269 = vmatprep.mubr.bf16.mxu0 %v9839_v19  ;;  %v9973_v21 = vrot.slane %v4392_v32, %v8749_v46 }
 0x738   : > { %5495 = vmatprep.mubr.bf16.mxu1 %v9839_v19 }
 0x73e   : > { %5270 = vmatmul.mubr.bf16.gmra.mrb[172].mxu0 %v9837_v8 }
 0x73f   : > { %5496 = vmatmul.mubr.bf16.gmra.mrb[172].mxu1 %v9837_v8 }
 0x7d9   : > { %v5201_v62 = vpop.f32.mrb[144].mxu0 }
 0x7da   : > { %v7146_v7 = vadd.f32 %v5201_v62, %v9973_v21  ;;  %v5427_v49 = vpop.f32.mrb[144].mxu1  ;;  %v5203_v39 = vpop.f32.mrb[145].mxu0 }
 0x7db   : > { %v7178_v14 = vadd.f32 %v5427_v49, %v9976_v1  ;;  %v7147_v25 = vadd.f32 %v5203_v39, %v9979_v16  ;;  %v5429_v46 = vpop.f32.mrb[145].mxu1  ;;  %v5205_v57 = vpop.f32.mrb[146].mxu0 }
 0x7dc   : > { %v7179_v58 = vadd.f32 %v5429_v46, %v9982_v40  ;;  %v7148_v45 = vadd.f32 %v5205_v57, %v9973_v21  ;;  %v5431_v48 = vpop.f32.mrb[146].mxu1  ;;  %v5207_v35 = vpop.f32.mrb[147].mxu0  ;;  %v5506_v12 = vmax.f32 %v7146_v7, 0.0 }
 0x7dd   : > { %v7180_v60 = vadd.f32 %v5431_v48, %v9976_v1  ;;  %v7149_v61 = vadd.f32 %v5207_v35, %v9979_v16  ;;  %v5433_v55 = vpop.f32.mrb[147].mxu1  ;;  %v5508_v8 = vmax.f32 %v7178_v14, 0.0  ;;  %v5507_v11 = vmax.f32 %v7147_v25, 0.0 }
 0x7de   : > { %v5510_v56 = vmax.f32 %v7148_v45, 0.0  ;;  %v7181_v9 = vadd.f32 %v5433_v55, %v9982_v40  ;;  %v5509_v34 = vmax.f32 %v7179_v58, 0.0 }
 0x7df   : > { %v5512_v19 = vmax.f32 %v7180_v60, 0.0  ;;  %v5511_v6 = vmax.f32 %v7149_v61, 0.0 }
 0x7e0   : > { %v5570_v13 = vpack.c.bf16 %v5510_v56, %v5506_v12  ;;  %v5513_v41 = vmax.f32 %v7181_v9, 0.0 }
 0x7e1   : > { %v5572_v42 = vpack.c.bf16 %v5512_v19, %v5508_v8  ;;  %v5571_v17 = vpack.c.bf16 %v5511_v6, %v5507_v11  ;;  %v5211_v44 = vpop.f32.mrb[148].mxu0 }
 0x7e2   : > { %v5573_v20 = vpack.c.bf16 %v5513_v41, %v5509_v34  ;;  %v7150_v22 = vadd.f32 %v5211_v44, %v9973_v21  ;;  %v5437_v31 = vpop.f32.mrb[148].mxu1  ;;  %v5213_v24 = vpop.f32.mrb[149].mxu0 }
 0x7e3   : > { %v7182_v10 = vadd.f32 %v5437_v31, %v9976_v1  ;;  %v7151_v18 = vadd.f32 %v5213_v24, %v9979_v16  ;;  %v5439_v29 = vpop.f32.mrb[149].mxu1  ;;  %v5215_v52 = vpop.f32.mrb[150].mxu0  ;;  %5897 = vmatprep.mubr.bf16.mxu0 %v5571_v17 }
 0x7e4   : > { %v7183_v59 = vadd.f32 %v5439_v29, %v9982_v40  ;;  %v7152_v37 = vadd.f32 %v5215_v52, %v9973_v21  ;;  %v5441_v15 = vpop.f32.mrb[150].mxu1  ;;  %5994 = vmatprep.mubr.bf16.mxu1 %v5573_v20  ;;  %v5217_v0 = vpop.f32.mrb[151].mxu0  ;;  %5898 = vmatmul.mubr.bf16.vlgmr.msra.gmra.mrb[176].mxu0 %v5570_v13  ;;  %v5514_v51 = vmax.f32 %v7150_v22, 0.0 }
 0x7e5   : > { %v7184_v23 = vadd.f32 %v5441_v15, %v9976_v1  ;;  %v7153_v28 = vadd.f32 %v5217_v0, %v9979_v16  ;;  %v5443_v3 = vpop.f32.mrb[151].mxu1  ;;  %5995 = vmatmul.mubr.bf16.vlgmr.msra.gmra.mrb[176].mxu1 %v5572_v42  ;;  %v5516_v43 = vmax.f32 %v7182_v10, 0.0  ;;  %v5515_v47 = vmax.f32 %v7151_v18, 0.0 }
 0x7e6   : > { %v5518_v30 = vmax.f32 %v7152_v37, 0.0  ;;  %v7185_v38 = vadd.f32 %v5443_v3, %v9982_v40  ;;  %v5517_v4 = vmax.f32 %v7183_v59, 0.0 }
 0x7e7   : > { %v5520_v50 = vmax.f32 %v7184_v23, 0.0  ;;  %v5519_v2 = vmax.f32 %v7153_v28, 0.0 }
 0x7e8   : > { %v5574_v26 = vpack.c.bf16 %v5518_v30, %v5514_v51  ;;  %v5521_v27 = vmax.f32 %v7185_v38, 0.0 }
 0x7e9   : > { %v5576_v5 = vpack.c.bf16 %v5520_v50, %v5516_v43  ;;  %v5575_v63 = vpack.c.bf16 %v5519_v2, %v5515_v47  ;;  %v5221_v53 = vpop.f32.mrb[152].mxu0 }
 0x7ea   : > { %v5577_v36 = vpack.c.bf16 %v5521_v27, %v5517_v4  ;;  %v7154_v54 = vadd.f32 %v5221_v53, %v9973_v21  ;;  %v5447_v33 = vpop.f32.mrb[152].mxu1  ;;  %v5223_v32 = vpop.f32.mrb[153].mxu0 }
 0x7eb   : > { %v7186_v62 = vadd.f32 %v5447_v33, %v9976_v1  ;;  %v7155_v7 = vadd.f32 %v5223_v32, %v9979_v16  ;;  %v5449_v49 = vpop.f32.mrb[153].mxu1  ;;  %v5225_v39 = vpop.f32.mrb[154].mxu0  ;;  %5905 = vmatprep.mubr.bf16.mxu0 %v5575_v63 }
 0x7ec   : > { %v7187_v14 = vadd.f32 %v5449_v49, %v9982_v40  ;;  %v7156_v25 = vadd.f32 %v5225_v39, %v9973_v21  ;;  %v5451_v46 = vpop.f32.mrb[154].mxu1  ;;  %6002 = vmatprep.mubr.bf16.mxu1 %v5577_v36  ;;  %v5227_v57 = vpop.f32.mrb[155].mxu0  ;;  %5906 = vmatmul.mubr.bf16.gmra.mrb[180].mxu0 %v5574_v26  ;;  %v5522_v35 = vmax.f32 %v7154_v54, 0.0 }
 0x7ed   : > { %v7188_v58 = vadd.f32 %v5451_v46, %v9976_v1  ;;  %v7157_v45 = vadd.f32 %v5227_v57, %v9979_v16  ;;  %v5453_v48 = vpop.f32.mrb[155].mxu1  ;;  %6003 = vmatmul.mubr.bf16.gmra.mrb[180].mxu1 %v5576_v5  ;;  %v5524_v55 = vmax.f32 %v7186_v62, 0.0  ;;  %v5523_v12 = vmax.f32 %v7155_v7, 0.0 }
 0x7ee   : > { %v5526_v60 = vmax.f32 %v7156_v25, 0.0  ;;  %v7189_v61 = vadd.f32 %v5453_v48, %v9982_v40  ;;  %v5525_v8 = vmax.f32 %v7187_v14, 0.0 }
 0x7ef   : > { %v5528_v56 = vmax.f32 %v7188_v58, 0.0  ;;  %v5527_v9 = vmax.f32 %v7157_v45, 0.0 }
 0x7f0   : > { %v5578_v11 = vpack.c.bf16 %v5526_v60, %v5522_v35  ;;  %v5529_v19 = vmax.f32 %v7189_v61, 0.0 }
 0x7f1   : > { %v5580_v6 = vpack.c.bf16 %v5528_v56, %v5524_v55  ;;  %v5579_v34 = vpack.c.bf16 %v5527_v9, %v5523_v12  ;;  %v5231_v13 = vpop.f32.mrb[156].mxu0 }
 0x7f2   : > { %v5581_v41 = vpack.c.bf16 %v5529_v19, %v5525_v8  ;;  %v7158_v42 = vadd.f32 %v5231_v13, %v9973_v21  ;;  %v5457_v17 = vpop.f32.mrb[156].mxu1  ;;  %v5233_v44 = vpop.f32.mrb[157].mxu0 }
 0x7f3   : > { %v7190_v20 = vadd.f32 %v5457_v17, %v9976_v1  ;;  %v7159_v22 = vadd.f32 %v5233_v44, %v9979_v16  ;;  %v5459_v31 = vpop.f32.mrb[157].mxu1  ;;  %v5235_v24 = vpop.f32.mrb[158].mxu0  ;;  %5913 = vmatprep.mubr.bf16.mxu0 %v5579_v34 }
 0x7f4   : > { %v7191_v10 = vadd.f32 %v5459_v31, %v9982_v40  ;;  %v7160_v18 = vadd.f32 %v5235_v24, %v9973_v21  ;;  %v5461_v29 = vpop.f32.mrb[158].mxu1  ;;  %6010 = vmatprep.mubr.bf16.mxu1 %v5581_v41  ;;  %v5237_v52 = vpop.f32.mrb[159].mxu0  ;;  %5914 = vmatmul.mubr.bf16.gmra.mrb[184].mxu0 %v5578_v11  ;;  %v5530_v0 = vmax.f32 %v7158_v42, 0.0 }
 0x7f5   : > { %v7192_v59 = vadd.f32 %v5461_v29, %v9976_v1  ;;  %v7161_v37 = vadd.f32 %v5237_v52, %v9979_v16  ;;  %v5463_v15 = vpop.f32.mrb[159].mxu1  ;;  %6011 = vmatmul.mubr.bf16.gmra.mrb[184].mxu1 %v5580_v6  ;;  %v5532_v3 = vmax.f32 %v7190_v20, 0.0  ;;  %v5531_v51 = vmax.f32 %v7159_v22, 0.0 }
 0x7f6   : > { %v5534_v23 = vmax.f32 %v7160_v18, 0.0  ;;  %v7193_v28 = vadd.f32 %v5463_v15, %v9982_v40  ;;  %v5533_v43 = vmax.f32 %v7191_v10, 0.0 }
 0x7f7   : > { %v5536_v30 = vmax.f32 %v7192_v59, 0.0  ;;  %v5535_v38 = vmax.f32 %v7161_v37, 0.0 }
 0x7f8   : > { %v5582_v47 = vpack.c.bf16 %v5534_v23, %v5530_v0  ;;  %v5537_v50 = vmax.f32 %v7193_v28, 0.0 }
 0x7f9   : > { %v5584_v2 = vpack.c.bf16 %v5536_v30, %v5532_v3  ;;  %v5583_v4 = vpack.c.bf16 %v5535_v38, %v5531_v51  ;;  %v5241_v26 = vpop.f32.mrb[160].mxu0 }
 0x7fa   : > { %v5585_v27 = vpack.c.bf16 %v5537_v50, %v5533_v43  ;;  %v7162_v5 = vadd.f32 %v5241_v26, %v9973_v21  ;;  %v5467_v63 = vpop.f32.mrb[160].mxu1  ;;  %v5243_v53 = vpop.f32.mrb[161].mxu0 }
 0x7fb   : > { %v7194_v36 = vadd.f32 %v5467_v63, %v9976_v1  ;;  %v7163_v54 = vadd.f32 %v5243_v53, %v9979_v16  ;;  %v5469_v33 = vpop.f32.mrb[161].mxu1  ;;  %v5245_v32 = vpop.f32.mrb[162].mxu0  ;;  %5921 = vmatprep.mubr.bf16.mxu0 %v5583_v4 }
 0x7fc   : > { %v7195_v62 = vadd.f32 %v5469_v33, %v9982_v40  ;;  %v7164_v7 = vadd.f32 %v5245_v32, %v9973_v21  ;;  %v5471_v49 = vpop.f32.mrb[162].mxu1  ;;  %6018 = vmatprep.mubr.bf16.mxu1 %v5585_v27  ;;  %v5247_v39 = vpop.f32.mrb[163].mxu0  ;;  %5922 = vmatmul.mubr.bf16.gmra.mrb[188].mxu0 %v5582_v47  ;;  %v5538_v57 = vmax.f32 %v7162_v5, 0.0 }
 0x7fd   : > { %v7196_v14 = vadd.f32 %v5471_v49, %v9976_v1  ;;  %v7165_v25 = vadd.f32 %v5247_v39, %v9979_v16  ;;  %v5473_v46 = vpop.f32.mrb[163].mxu1  ;;  %6019 = vmatmul.mubr.bf16.gmra.mrb[188].mxu1 %v5584_v2  ;;  %v5540_v48 = vmax.f32 %v7194_v36, 0.0  ;;  %v5539_v35 = vmax.f32 %v7163_v54, 0.0 }
 0x7fe   : > { %v5542_v58 = vmax.f32 %v7164_v7, 0.0  ;;  %v7197_v45 = vadd.f32 %v5473_v46, %v9982_v40  ;;  %v5541_v55 = vmax.f32 %v7195_v62, 0.0 }
 0x7ff   : > { %v5544_v60 = vmax.f32 %v7196_v14, 0.0  ;;  %v5543_v61 = vmax.f32 %v7165_v25, 0.0 }
 0x800   : > { %v5586_v12 = vpack.c.bf16 %v5542_v58, %v5538_v57  ;;  %v5545_v56 = vmax.f32 %v7197_v45, 0.0 }
 0x801   : > { %v5588_v9 = vpack.c.bf16 %v5544_v60, %v5540_v48  ;;  %v5587_v8 = vpack.c.bf16 %v5543_v61, %v5539_v35  ;;  %v5251_v11 = vpop.f32.mrb[164].mxu0 }
 0x802   : > { %v5589_v19 = vpack.c.bf16 %v5545_v56, %v5541_v55  ;;  %v7166_v6 = vadd.f32 %v5251_v11, %v9973_v21  ;;  %v5477_v34 = vpop.f32.mrb[164].mxu1  ;;  %v5253_v13 = vpop.f32.mrb[165].mxu0 }
 0x803   : > { %v7198_v41 = vadd.f32 %v5477_v34, %v9976_v1  ;;  %v7167_v42 = vadd.f32 %v5253_v13, %v9979_v16  ;;  %v5479_v17 = vpop.f32.mrb[165].mxu1  ;;  %v5255_v44 = vpop.f32.mrb[166].mxu0  ;;  %5929 = vmatprep.mubr.bf16.mxu0 %v5587_v8 }
 0x804   : > { %v7199_v20 = vadd.f32 %v5479_v17, %v9982_v40  ;;  %v7168_v22 = vadd.f32 %v5255_v44, %v9973_v21  ;;  %v5481_v31 = vpop.f32.mrb[166].mxu1  ;;  %6026 = vmatprep.mubr.bf16.mxu1 %v5589_v19  ;;  %v5257_v24 = vpop.f32.mrb[167].mxu0  ;;  %5930 = vmatmul.mubr.bf16.gmra.mrb[192].mxu0 %v5586_v12  ;;  %v5546_v52 = vmax.f32 %v7166_v6, 0.0 }
 0x805   : > { %v7200_v10 = vadd.f32 %v5481_v31, %v9976_v1  ;;  %v7169_v18 = vadd.f32 %v5257_v24, %v9979_v16  ;;  %v5483_v29 = vpop.f32.mrb[167].mxu1  ;;  %6027 = vmatmul.mubr.bf16.gmra.mrb[192].mxu1 %v5588_v9  ;;  %v5548_v15 = vmax.f32 %v7198_v41, 0.0  ;;  %v5547_v0 = vmax.f32 %v7167_v42, 0.0 }
 0x806   : > { %v5550_v59 = vmax.f32 %v7168_v22, 0.0  ;;  %v7201_v37 = vadd.f32 %v5483_v29, %v9982_v40  ;;  %v5549_v3 = vmax.f32 %v7199_v20, 0.0 }
 0x807   : > { %v5552_v23 = vmax.f32 %v7200_v10, 0.0  ;;  %v5551_v28 = vmax.f32 %v7169_v18, 0.0 }
 0x808   : > { %v5590_v51 = vpack.c.bf16 %v5550_v59, %v5546_v52  ;;  %v5553_v30 = vmax.f32 %v7201_v37, 0.0 }
 0x809   : > { %v5592_v38 = vpack.c.bf16 %v5552_v23, %v5548_v15  ;;  %v5591_v43 = vpack.c.bf16 %v5551_v28, %v5547_v0  ;;  %v5261_v47 = vpop.f32.mrb[168].mxu0 }
 0x80a   : > { %v5593_v50 = vpack.c.bf16 %v5553_v30, %v5549_v3  ;;  %v7170_v2 = vadd.f32 %v5261_v47, %v9973_v21  ;;  %v5487_v4 = vpop.f32.mrb[168].mxu1  ;;  %v5263_v26 = vpop.f32.mrb[169].mxu0 }
 0x80b   : > { %v7202_v27 = vadd.f32 %v5487_v4, %v9976_v1  ;;  %v7171_v5 = vadd.f32 %v5263_v26, %v9979_v16  ;;  %v5489_v63 = vpop.f32.mrb[169].mxu1  ;;  %v5265_v53 = vpop.f32.mrb[170].mxu0  ;;  %5937 = vmatprep.mubr.bf16.mxu0 %v5591_v43 }
 0x80c   : > { %v7203_v36 = vadd.f32 %v5489_v63, %v9982_v40  ;;  %v7172_v54 = vadd.f32 %v5265_v53, %v9973_v21  ;;  %v5491_v33 = vpop.f32.mrb[170].mxu1  ;;  %6034 = vmatprep.mubr.bf16.mxu1 %v5593_v50  ;;  %v5267_v32 = vpop.f32.mrb[171].mxu0  ;;  %5938 = vmatmul.mubr.bf16.gmra.mrb[196].mxu0 %v5590_v51  ;;  %v5554_v39 = vmax.f32 %v7170_v2, 0.0 }
 0x80d   : > { %v7204_v62 = vadd.f32 %v5491_v33, %v9976_v1  ;;  %v7173_v7 = vadd.f32 %v5267_v32, %v9979_v16  ;;  %v5493_v49 = vpop.f32.mrb[171].mxu1  ;;  %6035 = vmatmul.mubr.bf16.gmra.mrb[196].mxu1 %v5592_v38  ;;  %v5556_v46 = vmax.f32 %v7202_v27, 0.0  ;;  %v5555_v57 = vmax.f32 %v7171_v5, 0.0 }
 0x80e   : > { %v5558_v14 = vmax.f32 %v7172_v54, 0.0  ;;  %v7205_v25 = vadd.f32 %v5493_v49, %v9982_v40  ;;  %v5557_v48 = vmax.f32 %v7203_v36, 0.0 }
 0x80f   : > { %v5560_v58 = vmax.f32 %v7204_v62, 0.0  ;;  %v5559_v45 = vmax.f32 %v7173_v7, 0.0 }
 0x810   : > { %v5594_v35 = vpack.c.bf16 %v5558_v14, %v5554_v39  ;;  %v5561_v60 = vmax.f32 %v7205_v25, 0.0 }
 0x811   : > { %v5596_v61 = vpack.c.bf16 %v5560_v58, %v5556_v46  ;;  %v5595_v55 = vpack.c.bf16 %v5559_v45, %v5555_v57  ;;  %v5271_v12 = vpop.f32.mrb[172].mxu0 }
 0x812   : > { %v5597_v56 = vpack.c.bf16 %v5561_v60, %v5557_v48  ;;  %v7174_v9 = vadd.f32 %v5271_v12, %v9973_v21  ;;  %v5497_v8 = vpop.f32.mrb[172].mxu1  ;;  %v5273_v11 = vpop.f32.mrb[173].mxu0 }
 0x813   : > { %v7206_v19 = vadd.f32 %v5497_v8, %v9976_v1  ;;  %v7175_v6 = vadd.f32 %v5273_v11, %v9979_v16  ;;  %v5499_v34 = vpop.f32.mrb[173].mxu1  ;;  %v5275_v13 = vpop.f32.mrb[174].mxu0  ;;  %5945 = vmatprep.mubr.bf16.mxu0 %v5595_v55 }
 0x814   : > { %v7207_v41 = vadd.f32 %v5499_v34, %v9982_v40  ;;  %v7176_v42 = vadd.f32 %v5275_v13, %v9973_v21  ;;  %v5501_v17 = vpop.f32.mrb[174].mxu1  ;;  %6042 = vmatprep.mubr.bf16.mxu1 %v5597_v56  ;;  %v5277_v44 = vpop.f32.mrb[175].mxu0  ;;  %5946 = vmatmul.mubr.bf16.gmra.mrb[200].mxu0 %v5594_v35  ;;  %v5562_v24 = vmax.f32 %v7174_v9, 0.0 }
 0x815   : > { %v7208_v20 = vadd.f32 %v5501_v17, %v9976_v1  ;;  %v7177_v22 = vadd.f32 %v5277_v44, %v9979_v16  ;;  %v5503_v31 = vpop.f32.mrb[175].mxu1  ;;  %6043 = vmatmul.mubr.bf16.gmra.mrb[200].mxu1 %v5596_v61  ;;  %v5564_v29 = vmax.f32 %v7206_v19, 0.0  ;;  %v5563_v52 = vmax.f32 %v7175_v6, 0.0 }
 0x816   : > { %v5566_v10 = vmax.f32 %v7176_v42, 0.0  ;;  %v7209_v18 = vadd.f32 %v5503_v31, %v9982_v40  ;;  %v5565_v15 = vmax.f32 %v7207_v41, 0.0  ;;  %v10051_v40 = vld [vmem:[%s10232_s1] ss:$0 sm:$0xff] }
 0x817   : > { %v5568_v59 = vmax.f32 %v7208_v20, 0.0  ;;  %v5567_v37 = vmax.f32 %v7177_v22, 0.0 }
 0x818   : > { %v5598_v21 = vpack.c.bf16 %v5566_v10, %v5562_v24  ;;  %v5569_v0 = vmax.f32 %v7209_v18, 0.0 }
 0x819   : > { %v5600_v23 = vpack.c.bf16 %v5568_v59, %v5564_v29  ;;  %v5599_v28 = vpack.c.bf16 %v5567_v37, %v5563_v52 }
 0x81a   : > { %v5601_v3 = vpack.c.bf16 %v5569_v0, %v5565_v15 }
 0x81b   : > { %5953 = vmatprep.mubr.bf16.mxu0 %v5599_v28 }
 0x81c   : > { %6050 = vmatprep.mubr.bf16.mxu1 %v5601_v3  ;;  %5954 = vmatmul.mubr.bf16.gmra.mrb[204].mxu0 %v5598_v21 }
 0x81d   : > { %6051 = vmatmul.mubr.bf16.gmra.mrb[204].mxu1 %v5600_v23 }
 0x8b7   : > { %v6918_v1 = vpop.f32.mrb[176].mxu0 }
 0x8b8   : > { %v6982_v16 = vpop.f32.mrb[176].mxu1  ;;  %v6919_v51 = vpop.f32.mrb[177].mxu0 }
 0x8b9   : > { %v6920_v30 = vadd.f32 %v6919_v51, %v6918_v1  ;;  %v6983_v38 = vpop.f32.mrb[177].mxu1  ;;  %v6921_v43 = vpop.f32.mrb[178].mxu0 }
 0x8ba   : > { %v6984_v47 = vadd.f32 %v6983_v38, %v6982_v16  ;;  %v6985_v50 = vpop.f32.mrb[178].mxu1  ;;  %v6922_v2 = vpop.f32.mrb[179].mxu0 }
 0x8bb   : > { %v5900_v4 = vadd.f32 %v6920_v30, %v10051_v40  ;;  %v6923_v26 = vadd.f32 %v6922_v2, %v6921_v43  ;;  %v6986_v27 = vpop.f32.mrb[179].mxu1 }
 0x8bc   : > { %v6987_v5 = vadd.f32 %v6986_v27, %v6985_v50 }
 0x8bd   : > { %v5997_v63 = vadd.f32 %v6984_v47, %v5900_v4  ;;  %v5903_v53 = vadd.f32 %v6923_v26, %v10051_v40 }
 0x8bf   : > { %6059 = vst.msk [vmem:[%s9271_s6] sm:$0xff] %vm801_vm0, %v5997_v63  ;;  %v6000_v36 = vadd.f32 %v6987_v5, %v5903_v53  ;;  %v6924_v54 = vpop.f32.mrb[180].mxu0 }
 0x8c0   : > { %v6988_v33 = vpop.f32.mrb[180].mxu1  ;;  %v6925_v32 = vpop.f32.mrb[181].mxu0 }
 0x8c1   : > { %6060 = vst.msk [vmem:[%s9271_s6 + $0x20] sm:$0xff] %vm801_vm0, %v6000_v36  ;;  %v6926_v62 = vadd.f32 %v6925_v32, %v6924_v54  ;;  %v6989_v7 = vpop.f32.mrb[181].mxu1  ;;  %v6927_v49 = vpop.f32.mrb[182].mxu0 }
 0x8c2   : > { %v6990_v39 = vadd.f32 %v6989_v7, %v6988_v33  ;;  %v6991_v14 = vpop.f32.mrb[182].mxu1  ;;  %v6928_v25 = vpop.f32.mrb[183].mxu0 }
 0x8c3   : > { %v5908_v46 = vadd.f32 %v6926_v62, %v10051_v40  ;;  %v6929_v57 = vadd.f32 %v6928_v25, %v6927_v49  ;;  %v6992_v58 = vpop.f32.mrb[183].mxu1 }
 0x8c4   : > { %v6993_v45 = vadd.f32 %v6992_v58, %v6991_v14 }
 0x8c5   : > { %v6005_v48 = vadd.f32 %v6990_v39, %v5908_v46  ;;  %v5911_v35 = vadd.f32 %v6929_v57, %v10051_v40 }
 0x8c7   : > { %6061 = vst.msk [vmem:[%s9271_s6 + $0x40] sm:$0xff] %vm801_vm0, %v6005_v48  ;;  %v6008_v60 = vadd.f32 %v6993_v45, %v5911_v35  ;;  %v6930_v61 = vpop.f32.mrb[184].mxu0 }
 0x8c8   : > { %v6994_v55 = vpop.f32.mrb[184].mxu1  ;;  %v6931_v12 = vpop.f32.mrb[185].mxu0 }
 0x8c9   : > { %6062 = vst.msk [vmem:[%s9271_s6 + $0x60] sm:$0xff] %vm801_vm0, %v6008_v60  ;;  %v6932_v56 = vadd.f32 %v6931_v12, %v6930_v61  ;;  %v6995_v9 = vpop.f32.mrb[185].mxu1  ;;  %v6933_v8 = vpop.f32.mrb[186].mxu0 }
 0x8ca   : > { %v6996_v11 = vadd.f32 %v6995_v9, %v6994_v55  ;;  %v6997_v19 = vpop.f32.mrb[186].mxu1  ;;  %v6934_v6 = vpop.f32.mrb[187].mxu0 }
 0x8cb   : > { %v5916_v34 = vadd.f32 %v6932_v56, %v10051_v40  ;;  %v6935_v13 = vadd.f32 %v6934_v6, %v6933_v8  ;;  %v6998_v41 = vpop.f32.mrb[187].mxu1 }
 0x8cc   : > { %v6999_v42 = vadd.f32 %v6998_v41, %v6997_v19 }
 0x8cd   : > { %v6013_v17 = vadd.f32 %v6996_v11, %v5916_v34  ;;  %v5919_v44 = vadd.f32 %v6935_v13, %v10051_v40 }
 0x8cf   : > { %6063 = vst.msk [vmem:[%s9271_s6 + $0x80] sm:$0xff] %vm801_vm0, %v6013_v17  ;;  %v6016_v20 = vadd.f32 %v6999_v42, %v5919_v44  ;;  %v6936_v22 = vpop.f32.mrb[188].mxu0 }
 0x8d0   : > { %v7000_v31 = vpop.f32.mrb[188].mxu1  ;;  %v6937_v24 = vpop.f32.mrb[189].mxu0 }
 0x8d1   : > { %6064 = vst.msk [vmem:[%s9271_s6 + $0xa0] sm:$0xff] %vm801_vm0, %v6016_v20  ;;  %v6938_v10 = vadd.f32 %v6937_v24, %v6936_v22  ;;  %v7001_v18 = vpop.f32.mrb[189].mxu1  ;;  %v6939_v29 = vpop.f32.mrb[190].mxu0 }
 0x8d2   : > { %v7002_v52 = vadd.f32 %v7001_v18, %v7000_v31  ;;  %v7003_v59 = vpop.f32.mrb[190].mxu1  ;;  %v6940_v37 = vpop.f32.mrb[191].mxu0 }
 0x8d3   : > { %v5924_v15 = vadd.f32 %v6938_v10, %v10051_v40  ;;  %v6941_v21 = vadd.f32 %v6940_v37, %v6939_v29  ;;  %v7004_v0 = vpop.f32.mrb[191].mxu1 }
 0x8d4   : > { %v7005_v23 = vadd.f32 %v7004_v0, %v7003_v59 }
 0x8d5   : > { %v6021_v28 = vadd.f32 %v7002_v52, %v5924_v15  ;;  %v5927_v3 = vadd.f32 %v6941_v21, %v10051_v40 }
 0x8d7   : > { %6065 = vst.msk [vmem:[%s9271_s6 + $0xc0] sm:$0xff] %vm801_vm0, %v6021_v28  ;;  %v6024_v1 = vadd.f32 %v7005_v23, %v5927_v3  ;;  %v6942_v16 = vpop.f32.mrb[192].mxu0 }
 0x8d8   : > { %v7006_v51 = vpop.f32.mrb[192].mxu1  ;;  %v6943_v30 = vpop.f32.mrb[193].mxu0 }
 0x8d9   : > { %6066 = vst.msk [vmem:[%s9271_s6 + $0xe0] sm:$0xff] %vm801_vm0, %v6024_v1  ;;  %v6944_v38 = vadd.f32 %v6943_v30, %v6942_v16  ;;  %v7007_v43 = vpop.f32.mrb[193].mxu1  ;;  %v6945_v47 = vpop.f32.mrb[194].mxu0 }
 0x8da   : > { %v7008_v50 = vadd.f32 %v7007_v43, %v7006_v51  ;;  %v7009_v2 = vpop.f32.mrb[194].mxu1  ;;  %v6946_v4 = vpop.f32.mrb[195].mxu0 }
 0x8db   : > { %v5932_v26 = vadd.f32 %v6944_v38, %v10051_v40  ;;  %v6947_v27 = vadd.f32 %v6946_v4, %v6945_v47  ;;  %v7010_v5 = vpop.f32.mrb[195].mxu1 }
 0x8dc   : > { %v7011_v63 = vadd.f32 %v7010_v5, %v7009_v2 }
 0x8dd   : > { %v6029_v53 = vadd.f32 %v7008_v50, %v5932_v26  ;;  %v5935_v36 = vadd.f32 %v6947_v27, %v10051_v40 }
 0x8df   : > { %6067 = vst.msk [vmem:[%s9271_s6 + $0x100] sm:$0xff] %vm801_vm0, %v6029_v53  ;;  %v6032_v54 = vadd.f32 %v7011_v63, %v5935_v36  ;;  %v6948_v33 = vpop.f32.mrb[196].mxu0 }
 0x8e0   : > { %v7012_v32 = vpop.f32.mrb[196].mxu1  ;;  %v6949_v62 = vpop.f32.mrb[197].mxu0 }
 0x8e1   : > { %6068 = vst.msk [vmem:[%s9271_s6 + $0x120] sm:$0xff] %vm801_vm0, %v6032_v54  ;;  %v6950_v7 = vadd.f32 %v6949_v62, %v6948_v33  ;;  %v7013_v49 = vpop.f32.mrb[197].mxu1  ;;  %v6951_v39 = vpop.f32.mrb[198].mxu0 }
 0x8e2   : > { %v7014_v14 = vadd.f32 %v7013_v49, %v7012_v32  ;;  %v7015_v25 = vpop.f32.mrb[198].mxu1  ;;  %v6952_v46 = vpop.f32.mrb[199].mxu0 }
 0x8e3   : > { %v5940_v57 = vadd.f32 %v6950_v7, %v10051_v40  ;;  %v6953_v58 = vadd.f32 %v6952_v46, %v6951_v39  ;;  %v7016_v45 = vpop.f32.mrb[199].mxu1 }
 0x8e4   : > { %v7017_v48 = vadd.f32 %v7016_v45, %v7015_v25 }
 0x8e5   : > { %v6037_v35 = vadd.f32 %v7014_v14, %v5940_v57  ;;  %v5943_v60 = vadd.f32 %v6953_v58, %v10051_v40 }
 0x8e7   : > { %6069 = vst.msk [vmem:[%s9271_s6 + $0x140] sm:$0xff] %vm801_vm0, %v6037_v35  ;;  %v6040_v61 = vadd.f32 %v7017_v48, %v5943_v60  ;;  %v6954_v55 = vpop.f32.mrb[200].mxu0 }
 0x8e8   : > { %v7018_v12 = vpop.f32.mrb[200].mxu1  ;;  %v6955_v56 = vpop.f32.mrb[201].mxu0 }
 0x8e9   : > { %6070 = vst.msk [vmem:[%s9271_s6 + $0x160] sm:$0xff] %vm801_vm0, %v6040_v61  ;;  %v6956_v9 = vadd.f32 %v6955_v56, %v6954_v55  ;;  %v7019_v8 = vpop.f32.mrb[201].mxu1  ;;  %v6957_v11 = vpop.f32.mrb[202].mxu0 }
 0x8ea   : > { %v7020_v19 = vadd.f32 %v7019_v8, %v7018_v12  ;;  %v7021_v6 = vpop.f32.mrb[202].mxu1  ;;  %v6958_v34 = vpop.f32.mrb[203].mxu0 }
 0x8eb   : > { %v5948_v13 = vadd.f32 %v6956_v9, %v10051_v40  ;;  %v6959_v41 = vadd.f32 %v6958_v34, %v6957_v11  ;;  %v7022_v42 = vpop.f32.mrb[203].mxu1 }
 0x8ec   : > { %v7023_v17 = vadd.f32 %v7022_v42, %v7021_v6 }
 0x8ed   : > { %v6045_v44 = vadd.f32 %v7020_v19, %v5948_v13  ;;  %v5951_v20 = vadd.f32 %v6959_v41, %v10051_v40 }
 0x8ef   : > { %6071 = vst.msk [vmem:[%s9271_s6 + $0x180] sm:$0xff] %vm801_vm0, %v6045_v44  ;;  %v6048_v22 = vadd.f32 %v7023_v17, %v5951_v20  ;;  %v6960_v31 = vpop.f32.mrb[204].mxu0 }
 0x8f0   : > { %v7024_v24 = vpop.f32.mrb[204].mxu1  ;;  %v6961_v10 = vpop.f32.mrb[205].mxu0 }
 0x8f1   : > { %6072 = vst.msk [vmem:[%s9271_s6 + $0x1a0] sm:$0xff] %vm801_vm0, %v6048_v22  ;;  %v6962_v18 = vadd.f32 %v6961_v10, %v6960_v31  ;;  %v7025_v29 = vpop.f32.mrb[205].mxu1  ;;  %v6963_v52 = vpop.f32.mrb[206].mxu0 }
 0x8f2   : > { %v7026_v59 = vadd.f32 %v7025_v29, %v7024_v24  ;;  %v7027_v37 = vpop.f32.mrb[206].mxu1  ;;  %v6964_v15 = vpop.f32.mrb[207].mxu0 }
 0x8f3   : > { %v5956_v21 = vadd.f32 %v6962_v18, %v10051_v40  ;;  %v6965_v0 = vadd.f32 %v6964_v15, %v6963_v52  ;;  %v7028_v23 = vpop.f32.mrb[207].mxu1 }
 0x8f4   : > { %v7029_v28 = vadd.f32 %v7028_v23, %v7027_v37 }
 0x8f5   : > { %v6053_v3 = vadd.f32 %v7026_v59, %v5956_v21  ;;  %v5959_v1 = vadd.f32 %v6965_v0, %v10051_v40 }
 0x8f7   : > { %6073 = vst.msk [vmem:[%s9271_s6 + $0x1c0] sm:$0xff] %vm801_vm0, %v6053_v3  ;;  %v6056_v16 = vadd.f32 %v7029_v28, %v5959_v1 }
 0x8f9   : > { %6074 = vst.msk [vmem:[%s9271_s6 + $0x1e0] sm:$0xff] %vm801_vm0, %v6056_v16 }
 0x8fa   : > { %8145 = shalt.err (!%p8142_p0)
}
 0x8fb   : > { %s8146_s26 = scalar_lea.hbm %s10102_s27, 8192  ;;  %s8150_s1 = scalar_lea.hbm %s10234_s16, 16384 }
 0x8fc   : > { %p8147_p5 = scmp.ne.s32.totalorder %s10102_s27, %s8146_s26  ;;  %p8151_p10 = scmp.lt.u32.totalorder %s10102_s27, %s10234_s16 }
 0x8fd   : > { %p8152_p12 = scmp.lt.u32.totalorder %s8150_s1, %s8146_s26  ;;  %p8154_p2 = scmp.lt.u32.totalorder %s8146_s26, %s10102_s27 }
 0x8fe   : > { %p8148_p6 = pnand %p8147_p5, %p10235_p3 }
 0x8ff   : > { %p8153_p1 = por %p8152_p12, %p8151_p10 }
 0x900   : > { %p8149_p9 = pneg %p8148_p6 }
 0x901   : > { %p8155_p4 = por %p8154_p2, %p8153_p1 }
 0x903   : > { %p8156_p7 = pnand %p8155_p4, %p8149_p9 }
 0x905   : > { %8159 = shalt.err (!%p8156_p7)
}
 0x906   : > { %s8220_s15 = smov 512  }
 0x907   : > { %7354 = dma.vmem_to_hbm [thread:$0]  (%p10235_p3), %s10106_s2, 8192, %s10102_s27, %s10112_s0, %s8220_s15, %s8220_s15, %s8217_s23  }
 0x908 PF: > { %s10236_s30 = sld [smem:[#allocation17_spill]]  ;;  %s10237_s24 = sld [smem:[#allocation15_spill]] }
 0x909   : > { %s10238_s19 = sld [smem:[#allocation21_spill]] }
 0x90e   : > { %p7381_p8 = scmp.ge.s32.totalorder %s10236_s30, 2  ;;  %s6217_s29 = sand.u32 1, %s10237_s24  }
 0x90f   : > { %p10239_p11 = scmp.ne.s32.totalorder %s10238_s19, 0  ;;  %s6218_s26 = scalar_lea.sflag [#allocation4], %s6217_s29 }
 0x911   : > { %p7370_p13 = pnand %p7381_p8, %p10239_p11 }
 0x913   : > { %8189 = dma.done.wait (!%p7370_p13), %s6218_s26, 8192  }
 0x914   : > { %8191 = vsyncadd (!%p7370_p13), %s6218_s26, 4294959104  ;;  %s10240_s30 = sld [smem:[#allocation18_spill]]  ;;  %s10241_s6 = sld [smem:[#allocation16_spill]] }
 0x915   : > { %s10242_s29 = sld [smem:[#allocation19_spill]]  ;;  %s10243_s27 = smov %s8198_s28 }
 0x91a   : > { %p31_p0 = scmp.ge.s32.totalorder %s10240_s30, 4   ;;  %s10244_s28 = smov %s10241_s6 }
 0x91c   :  { %33 = sbr.rel (!%p31_p0) target bundleno = 15 (0xf), region = 147 }
 0x923   :  { %6223 = vsyncpa [#allocation3], 1 }
 0x924   :  { %6225 = vsyncpa [#allocation3 + $0x1], 1 }
 0x925   :  { %6226 = vsyncpa [#allocation6], 1 }
 0x926   :  { %6227 = vsyncpa [#allocation9], 1 }
 0x927   :  { %6228 = vsyncpa [#allocation4], 1 }
 0x928   :  { %6230 = vsyncpa [#allocation4 + $0x1], 1 }

</bundles_post_ra>
